<compile_context>
chip_gen: v5e
topology: v5e:2x2
jax: 0.10.0
libtpu: 0.0.40
codegen_flags: <defaults>
</compile_context>

<pallas_src>
import functools

import jax
import jax.numpy as jnp
import numpy as np
from jax.experimental import pallas as pl
from jax.experimental.pallas import tpu as pltpu

NB_INPUTS = 70
NB_HIDDEN = 128
NUM_LAYERS = 1


def _round_up(x, m):
    return ((x + m - 1) // m) * m


def _lstm_kernel(x_ref, wih_ref, whh_ref, b_ref,
                 out_ref, hn_ref, cn_ref,
                 *, seq_len, mask_tail):
    """One batch-tile x one time-block of the LSTM recurrence.

    x_ref:   (T_BLK, B_t, I_pad) bf16
    wih_ref: (I_pad, 4H) bf16     whh_ref: (H, 4H) bf16     b_ref: (1, 4H) f32
    out_ref: (T_BLK, B_t, H) f32  hidden trajectory for this block
    hn_ref / cn_ref: (B_t, H) f32 resident carry (constant block index over t)
    """
    tb = pl.program_id(1)                 # time-block index
    t_blk = x_ref.shape[0]
    H = hn_ref.shape[-1]

    @pl.when(tb == 0)
    def _():
        hn_ref[...] = jnp.zeros_like(hn_ref)
        cn_ref[...] = jnp.zeros_like(cn_ref)

    # Hoist weight / bias loads out of the unrolled time loop.
    wih = wih_ref[...]                    # (I_pad, 4H) bf16
    whh = whh_ref[...]                    # (H, 4H)    bf16
    bias = b_ref[...]                     # (1, 4H)    f32

    h = hn_ref[...]                       # (B_t, H) f32 carry
    c = cn_ref[...]

    for tt in range(t_blk):               # static, fully-unrolled recurrence
        x_t = x_ref[tt]                   # (B_t, I_pad) bf16, full-tile load
        gates = (jnp.dot(x_t, wih, preferred_element_type=jnp.float32)
                 + jnp.dot(h.astype(jnp.bfloat16), whh,
                           preferred_element_type=jnp.float32)
                 + bias)                  # (B_t, 4H) f32
        i_g = jax.nn.sigmoid(gates[:, 0 * H:1 * H])
        f_g = jax.nn.sigmoid(gates[:, 1 * H:2 * H])
        g_g = jnp.tanh(gates[:, 2 * H:3 * H])
        o_g = jax.nn.sigmoid(gates[:, 3 * H:4 * H])
        c_new = f_g * c + i_g * g_g
        h_new = o_g * jnp.tanh(c_new)
        if mask_tail:
            # Padded tail timesteps must not advance the recurrence.
            valid = (tb * t_blk + tt) < seq_len
            c = jnp.where(valid, c_new, c)
            h = jnp.where(valid, h_new, h)
        else:
            c, h = c_new, h_new
        out_ref[tt] = h.astype(out_ref.dtype)

    hn_ref[...] = h
    cn_ref[...] = c


@jax.jit
def lstm_model_forward(x, w_ih, w_hh, b_ih, b_hh, w_fc, b_fc):
    """x: (batch, seq, NB_INPUTS) float32.

    Returns (out, (h_n, c_n)):
      out: (batch, seq, 1)
      h_n, c_n: (NUM_LAYERS=1, batch, NB_HIDDEN)
    """
    B, S, I = x.shape
    H = NB_HIDDEN

    # Padding / tiling decisions (all static).
    I_pad = _round_up(I, 128)                     # 70 -> 128: unmasked lane loads
    if B <= 128:
        B_pad = _round_up(B, 8)                   # full sublane occupancy
        b_tile = B_pad
    else:
        B_pad = _round_up(B, 128)
        b_tile = 128                              # multiple batch tiles (megacore)
    t_blk = min(32, _round_up(S, 8))              # timesteps per grid step
    S_pad = _round_up(S, t_blk)
    mask_tail = S_pad != S

    # Time-major, zero-padded, bf16 input so every MXU feed is a full tile.
    x_tm = jnp.zeros((S_pad, B_pad, I_pad), jnp.bfloat16)
    x_tm = x_tm.at[:S, :B, :I].set(jnp.transpose(x, (1, 0, 2)).astype(jnp.bfloat16))

    wih_t = jnp.zeros((I_pad, 4 * H), jnp.bfloat16)
    wih_t = wih_t.at[:I, :].set(w_ih.T.astype(jnp.bfloat16))   # (I_pad, 4H)
    whh_t = w_hh.T.astype(jnp.bfloat16)                        # (H, 4H)
    bias = (b_ih + b_hh).reshape(1, 4 * H).astype(jnp.float32)

    grid = (B_pad // b_tile, S_pad // t_blk)
    kernel = functools.partial(_lstm_kernel, seq_len=S, mask_tail=mask_tail)

    hs, h_n, c_n = pl.pallas_call(
        kernel,
        out_shape=(
            jax.ShapeDtypeStruct((S_pad, B_pad, H), jnp.float32),  # hidden traj
            jax.ShapeDtypeStruct((B_pad, H), jnp.float32),         # h_n
            jax.ShapeDtypeStruct((B_pad, H), jnp.float32),         # c_n
        ),
        grid_spec=pltpu.PrefetchScalarGridSpec(
            num_scalar_prefetch=0,
            grid=grid,
            in_specs=[
                pl.BlockSpec((t_blk, b_tile, I_pad), lambda b, t: (t, b, 0)),  # x
                pl.BlockSpec((I_pad, 4 * H), lambda b, t: (0, 0)),             # W_ih^T
                pl.BlockSpec((H, 4 * H), lambda b, t: (0, 0)),                 # W_hh^T
                pl.BlockSpec((1, 4 * H), lambda b, t: (0, 0)),                 # bias
            ],
            out_specs=[
                pl.BlockSpec((t_blk, b_tile, H), lambda b, t: (t, b, 0)),      # hs
                pl.BlockSpec((b_tile, H), lambda b, t: (b, 0)),                # h carry
                pl.BlockSpec((b_tile, H), lambda b, t: (b, 0)),                # c carry
            ],
        ),
        compiler_params=pltpu.CompilerParams(
            dimension_semantics=("parallel", "arbitrary")),
    )(x_tm, wih_t, whh_t, bias)

    # fc head outside the kernel: one dense matmul over the whole trajectory.
    hs = hs[:S, :B, :]                                     # (S, B, H)
    out = jnp.einsum('sbh,oh->bso', hs, w_fc) + b_fc       # (B, S, 1)
    h_n = h_n[:B][None]                                    # (1, B, H)
    c_n = c_n[:B][None]
    return out, (h_n, c_n)


def _reference_forward(x, w_ih, w_hh, b_ih, b_hh, w_fc, b_fc):
    """Pure-JAX f32 reference mirroring torch.nn.LSTM(batch_first=True) + Linear."""
    B, S, I = x.shape
    H = NB_HIDDEN

    def step(carry, x_t):
        h, c = carry
        gates = x_t @ w_ih.T + b_ih + h @ w_hh.T + b_hh
        i = jax.nn.sigmoid(gates[:, 0 * H:1 * H])
        f = jax.nn.sigmoid(gates[:, 1 * H:2 * H])
        g = jnp.tanh(gates[:, 2 * H:3 * H])
        o = jax.nn.sigmoid(gates[:, 3 * H:4 * H])
        c = f * c + i * g
        h = o * jnp.tanh(c)
        return (h, c), h

    h0 = jnp.zeros((B, H), jnp.float32)
    c0 = jnp.zeros((B, H), jnp.float32)
    (h_n, c_n), hs = jax.lax.scan(step, (h0, c0), jnp.transpose(x, (1, 0, 2)))
    out = jnp.transpose(hs, (1, 0, 2)) @ w_fc.T + b_fc
    return out, (h_n[None], c_n[None])


if __name__ == "__main__":
    key = jax.random.PRNGKey(0)
    B, S = 4, 8
    ks = jax.random.split(key, 8)

    bound = 1.0 / np.sqrt(NB_HIDDEN)
    x = jax.random.normal(ks[0], (B, S, NB_INPUTS), jnp.float32)
    w_ih = jax.random.uniform(ks[1], (4 * NB_HIDDEN, NB_INPUTS), jnp.float32, -bound, bound)
    w_hh = jax.random.uniform(ks[2], (4 * NB_HIDDEN, NB_HIDDEN), jnp.float32, -bound, bound)
    b_ih = jax.random.uniform(ks[3], (4 * NB_HIDDEN,), jnp.float32, -bound, bound)
    b_hh = jax.random.uniform(ks[4], (4 * NB_HIDDEN,), jnp.float32, -bound, bound)
    w_fc = jax.random.uniform(ks[5], (1, NB_HIDDEN), jnp.float32, -bound, bound)
    b_fc = jax.random.uniform(ks[6], (1,), jnp.float32, -bound, bound)

    out, (h_n, c_n) = lstm_model_forward(x, w_ih, w_hh, b_ih, b_hh, w_fc, b_fc)
    jax.block_until_ready((out, h_n, c_n))

    ref_out, (ref_h, ref_c) = _reference_forward(x, w_ih, w_hh, b_ih, b_hh, w_fc, b_fc)
    # bf16 MXU operands vs f32 reference -> slightly looser tolerance.
    np.testing.assert_allclose(np.asarray(out), np.asarray(ref_out), rtol=2e-2, atol=2e-2)
    np.testing.assert_allclose(np.asarray(h_n), np.asarray(ref_h), rtol=2e-2, atol=2e-2)
    np.testing.assert_allclose(np.asarray(c_n), np.asarray(ref_c), rtol=2e-2, atol=2e-2)

    print("KERNEL_OK")
</pallas_src>

<mosaic_0001>
module attributes {stable_mosaic.version = 11 : i64} {
  func.func @_lstm_kernel(%arg0: i32, %arg1: i32, %arg2: memref<8x8x128xbf16, #tpu.memory_space<vmem>>, %arg3: memref<128x512xbf16, #tpu.memory_space<vmem>>, %arg4: memref<128x512xbf16, #tpu.memory_space<vmem>>, %arg5: memref<1x512xf32, #tpu.memory_space<vmem>>, %arg6: memref<8x8x128xf32, #tpu.memory_space<vmem>>, %arg7: memref<8x128xf32, #tpu.memory_space<vmem>>, %arg8: memref<8x128xf32, #tpu.memory_space<vmem>>) attributes {dimension_semantics = [#tpu.dimension_semantics<parallel>, #tpu.dimension_semantics<arbitrary>], iteration_bounds = array<i64: 1, 1>, scalar_prefetch = 0 : i64, scratch_operands = 0 : i64, tpu.core_type = #tpu.core_type<tc>, window_params = [{transform_indices = @transform_0, window_bounds = array<i64: 8, 8, 128>}, {pipeline_mode = #tpu.pipeline_mode<synchronous>, transform_indices = @transform_1, window_bounds = array<i64: 128, 512>}, {pipeline_mode = #tpu.pipeline_mode<synchronous>, transform_indices = @transform_2, window_bounds = array<i64: 128, 512>}, {pipeline_mode = #tpu.pipeline_mode<synchronous>, transform_indices = @transform_3, window_bounds = array<i64: 1, 512>}, {transform_indices = @transform_4, window_bounds = array<i64: 8, 8, 128>}, {transform_indices = @transform_5, window_bounds = array<i64: 8, 128>}, {transform_indices = @transform_6, window_bounds = array<i64: 8, 128>}]} {
    %c0_i32 = arith.constant 0 : i32
    %0 = arith.cmpi eq, %arg1, %c0_i32 : i32
    %1 = arith.extui %0 : i1 to i32
    %c0_i32_0 = arith.constant 0 : i32
    %2 = arith.cmpi ne, %1, %c0_i32_0 : i32
    scf.if %2 {
      %cst_94 = arith.constant 0.000000e+00 : f32
      %298 = vector.broadcast %cst_94 : f32 to vector<8x128xf32>
      %c0_95 = arith.constant 0 : index
      %c0_96 = arith.constant 0 : index
      %299 = vector.load %arg7[%c0_95, %c0_96] : memref<8x128xf32, #tpu.memory_space<vmem>>, vector<8x128xf32>
      tpu.vector_store %arg7[%c0_95, %c0_96], %298 {strides = array<i32>} : memref<8x128xf32, #tpu.memory_space<vmem>>, vector<8x128xf32>,
      %cst_97 = arith.constant 0.000000e+00 : f32
      %300 = vector.broadcast %cst_97 : f32 to vector<8x128xf32>
      %c0_98 = arith.constant 0 : index
      %c0_99 = arith.constant 0 : index
      %301 = vector.load %arg8[%c0_98, %c0_99] : memref<8x128xf32, #tpu.memory_space<vmem>>, vector<8x128xf32>
      tpu.vector_store %arg8[%c0_98, %c0_99], %300 {strides = array<i32>} : memref<8x128xf32, #tpu.memory_space<vmem>>, vector<8x128xf32>,
    } else {
    }
    %c0 = arith.constant 0 : index
    %c0_1 = arith.constant 0 : index
    %3 = vector.load %arg3[%c0, %c0_1] : memref<128x512xbf16, #tpu.memory_space<vmem>>, vector<128x512xbf16>
    %c0_2 = arith.constant 0 : index
    %c0_3 = arith.constant 0 : index
    %4 = vector.load %arg4[%c0_2, %c0_3] : memref<128x512xbf16, #tpu.memory_space<vmem>>, vector<128x512xbf16>
    %c0_4 = arith.constant 0 : index
    %c0_5 = arith.constant 0 : index
    %5 = vector.load %arg5[%c0_4, %c0_5] : memref<1x512xf32, #tpu.memory_space<vmem>>, vector<1x512xf32>
    %c0_6 = arith.constant 0 : index
    %c0_7 = arith.constant 0 : index
    %6 = vector.load %arg7[%c0_6, %c0_7] : memref<8x128xf32, #tpu.memory_space<vmem>>, vector<8x128xf32>
    %c0_8 = arith.constant 0 : index
    %c0_9 = arith.constant 0 : index
    %7 = vector.load %arg8[%c0_8, %c0_9] : memref<8x128xf32, #tpu.memory_space<vmem>>, vector<8x128xf32>
    %c0_10 = arith.constant 0 : index
    %c0_11 = arith.constant 0 : index
    %c0_12 = arith.constant 0 : index
    %8 = vector.load %arg2[%c0_10, %c0_11, %c0_12] : memref<8x8x128xbf16, #tpu.memory_space<vmem>>, vector<1x8x128xbf16>
    %9 = vector.shape_cast %8 : vector<1x8x128xbf16> to vector<8x128xbf16>
    %cst = arith.constant dense<0.000000e+00> : vector<8x512xf32>
    %10 = tpu.matmul %9, %3, %cst {dimension_numbers = #tpu.dot_dimension_numbers<[1], [0], [0], [1], [0, 0, 1, 1], [], []>} : vector<8x128xbf16>, vector<128x512xbf16>, vector<8x512xf32> -> vector<8x512xf32>
    %11 = arith.truncf %6 : vector<8x128xf32> to vector<8x128xbf16>
    %cst_13 = arith.constant dense<0.000000e+00> : vector<8x512xf32>
    %12 = tpu.matmul %11, %4, %cst_13 {dimension_numbers = #tpu.dot_dimension_numbers<[1], [0], [0], [1], [0, 0, 1, 1], [], []>} : vector<8x128xbf16>, vector<128x512xbf16>, vector<8x512xf32> -> vector<8x512xf32>
    %13 = arith.addf %10, %12 : vector<8x512xf32>
    %14 = vector.broadcast %5 : vector<1x512xf32> to vector<8x512xf32>
    %15 = arith.addf %13, %14 : vector<8x512xf32>
    %16 = vector.extract_strided_slice %15 {offsets = [0, 0], sizes = [8, 128], strides = [1, 1]} : vector<8x512xf32> to vector<8x128xf32>
    %17 = arith.negf %16 : vector<8x128xf32>
    %18 = math.exp %17 : vector<8x128xf32>
    %cst_14 = arith.constant 1.000000e+00 : f32
    %19 = vector.broadcast %cst_14 : f32 to vector<8x128xf32>
    %20 = arith.addf %19, %18 : vector<8x128xf32>
    %21 = arith.divf %19, %20 : vector<8x128xf32>
    %22 = vector.extract_strided_slice %15 {offsets = [0, 128], sizes = [8, 128], strides = [1, 1]} : vector<8x512xf32> to vector<8x128xf32>
    %23 = arith.negf %22 : vector<8x128xf32>
    %24 = math.exp %23 : vector<8x128xf32>
    %cst_15 = arith.constant 1.000000e+00 : f32
    %25 = vector.broadcast %cst_15 : f32 to vector<8x128xf32>
    %26 = arith.addf %25, %24 : vector<8x128xf32>
    %27 = arith.divf %25, %26 : vector<8x128xf32>
    %28 = vector.extract_strided_slice %15 {offsets = [0, 256], sizes = [8, 128], strides = [1, 1]} : vector<8x512xf32> to vector<8x128xf32>
    %29 = math.tanh %28 : vector<8x128xf32>
    %30 = vector.extract_strided_slice %15 {offsets = [0, 384], sizes = [8, 128], strides = [1, 1]} : vector<8x512xf32> to vector<8x128xf32>
    %31 = arith.negf %30 : vector<8x128xf32>
    %32 = math.exp %31 : vector<8x128xf32>
    %cst_16 = arith.constant 1.000000e+00 : f32
    %33 = vector.broadcast %cst_16 : f32 to vector<8x128xf32>
    %34 = arith.addf %33, %32 : vector<8x128xf32>
    %35 = arith.divf %33, %34 : vector<8x128xf32>
    %36 = arith.mulf %27, %7 : vector<8x128xf32>
    %37 = arith.mulf %21, %29 : vector<8x128xf32>
    %38 = arith.addf %36, %37 : vector<8x128xf32>
    %39 = math.tanh %38 : vector<8x128xf32>
    %40 = arith.mulf %35, %39 : vector<8x128xf32>
    %c0_17 = arith.constant 0 : index
    %c0_18 = arith.constant 0 : index
    %c0_19 = arith.constant 0 : index
    %41 = vector.load %arg6[%c0_17, %c0_18, %c0_19] : memref<8x8x128xf32, #tpu.memory_space<vmem>>, vector<1x8x128xf32>
    %42 = vector.shape_cast %41 : vector<1x8x128xf32> to vector<8x128xf32>
    %43 = vector.shape_cast %40 : vector<8x128xf32> to vector<1x8x128xf32>
    tpu.vector_store %arg6[%c0_17, %c0_18, %c0_19], %43 {strides = array<i32>} : memref<8x8x128xf32, #tpu.memory_space<vmem>>, vector<1x8x128xf32>,
    %c1 = arith.constant 1 : index
    %c0_20 = arith.constant 0 : index
    %c0_21 = arith.constant 0 : index
    %44 = vector.load %arg2[%c1, %c0_20, %c0_21] : memref<8x8x128xbf16, #tpu.memory_space<vmem>>, vector<1x8x128xbf16>
    %45 = vector.shape_cast %44 : vector<1x8x128xbf16> to vector<8x128xbf16>
    %cst_22 = arith.constant dense<0.000000e+00> : vector<8x512xf32>
    %46 = tpu.matmul %45, %3, %cst_22 {dimension_numbers = #tpu.dot_dimension_numbers<[1], [0], [0], [1], [0, 0, 1, 1], [], []>} : vector<8x128xbf16>, vector<128x512xbf16>, vector<8x512xf32> -> vector<8x512xf32>
    %47 = arith.truncf %40 : vector<8x128xf32> to vector<8x128xbf16>
    %cst_23 = arith.constant dense<0.000000e+00> : vector<8x512xf32>
    %48 = tpu.matmul %47, %4, %cst_23 {dimension_numbers = #tpu.dot_dimension_numbers<[1], [0], [0], [1], [0, 0, 1, 1], [], []>} : vector<8x128xbf16>, vector<128x512xbf16>, vector<8x512xf32> -> vector<8x512xf32>
    %49 = arith.addf %46, %48 : vector<8x512xf32>
    %50 = vector.broadcast %5 : vector<1x512xf32> to vector<8x512xf32>
    %51 = arith.addf %49, %50 : vector<8x512xf32>
    %52 = vector.extract_strided_slice %51 {offsets = [0, 0], sizes = [8, 128], strides = [1, 1]} : vector<8x512xf32> to vector<8x128xf32>
    %53 = arith.negf %52 : vector<8x128xf32>
    %54 = math.exp %53 : vector<8x128xf32>
    %cst_24 = arith.constant 1.000000e+00 : f32
    %55 = vector.broadcast %cst_24 : f32 to vector<8x128xf32>
    %56 = arith.addf %55, %54 : vector<8x128xf32>
    %57 = arith.divf %55, %56 : vector<8x128xf32>
    %58 = vector.extract_strided_slice %51 {offsets = [0, 128], sizes = [8, 128], strides = [1, 1]} : vector<8x512xf32> to vector<8x128xf32>
    %59 = arith.negf %58 : vector<8x128xf32>
    %60 = math.exp %59 : vector<8x128xf32>
    %cst_25 = arith.constant 1.000000e+00 : f32
    %61 = vector.broadcast %cst_25 : f32 to vector<8x128xf32>
    %62 = arith.addf %61, %60 : vector<8x128xf32>
    %63 = arith.divf %61, %62 : vector<8x128xf32>
    %64 = vector.extract_strided_slice %51 {offsets = [0, 256], sizes = [8, 128], strides = [1, 1]} : vector<8x512xf32> to vector<8x128xf32>
    %65 = math.tanh %64 : vector<8x128xf32>
    %66 = vector.extract_strided_slice %51 {offsets = [0, 384], sizes = [8, 128], strides = [1, 1]} : vector<8x512xf32> to vector<8x128xf32>
    %67 = arith.negf %66 : vector<8x128xf32>
    %68 = math.exp %67 : vector<8x128xf32>
    %cst_26 = arith.constant 1.000000e+00 : f32
    %69 = vector.broadcast %cst_26 : f32 to vector<8x128xf32>
    %70 = arith.addf %69, %68 : vector<8x128xf32>
    %71 = arith.divf %69, %70 : vector<8x128xf32>
    %72 = arith.mulf %63, %38 : vector<8x128xf32>
    %73 = arith.mulf %57, %65 : vector<8x128xf32>
    %74 = arith.addf %72, %73 : vector<8x128xf32>
    %75 = math.tanh %74 : vector<8x128xf32>
    %76 = arith.mulf %71, %75 : vector<8x128xf32>
    %c1_27 = arith.constant 1 : index
    %c0_28 = arith.constant 0 : index
    %c0_29 = arith.constant 0 : index
    %77 = vector.load %arg6[%c1_27, %c0_28, %c0_29] : memref<8x8x128xf32, #tpu.memory_space<vmem>>, vector<1x8x128xf32>
    %78 = vector.shape_cast %77 : vector<1x8x128xf32> to vector<8x128xf32>
    %79 = vector.shape_cast %76 : vector<8x128xf32> to vector<1x8x128xf32>
    tpu.vector_store %arg6[%c1_27, %c0_28, %c0_29], %79 {strides = array<i32>} : memref<8x8x128xf32, #tpu.memory_space<vmem>>, vector<1x8x128xf32>,
    %c2 = arith.constant 2 : index
    %c0_30 = arith.constant 0 : index
    %c0_31 = arith.constant 0 : index
    %80 = vector.load %arg2[%c2, %c0_30, %c0_31] : memref<8x8x128xbf16, #tpu.memory_space<vmem>>, vector<1x8x128xbf16>
    %81 = vector.shape_cast %80 : vector<1x8x128xbf16> to vector<8x128xbf16>
    %cst_32 = arith.constant dense<0.000000e+00> : vector<8x512xf32>
    %82 = tpu.matmul %81, %3, %cst_32 {dimension_numbers = #tpu.dot_dimension_numbers<[1], [0], [0], [1], [0, 0, 1, 1], [], []>} : vector<8x128xbf16>, vector<128x512xbf16>, vector<8x512xf32> -> vector<8x512xf32>
    %83 = arith.truncf %76 : vector<8x128xf32> to vector<8x128xbf16>
    %cst_33 = arith.constant dense<0.000000e+00> : vector<8x512xf32>
    %84 = tpu.matmul %83, %4, %cst_33 {dimension_numbers = #tpu.dot_dimension_numbers<[1], [0], [0], [1], [0, 0, 1, 1], [], []>} : vector<8x128xbf16>, vector<128x512xbf16>, vector<8x512xf32> -> vector<8x512xf32>
    %85 = arith.addf %82, %84 : vector<8x512xf32>
    %86 = vector.broadcast %5 : vector<1x512xf32> to vector<8x512xf32>
    %87 = arith.addf %85, %86 : vector<8x512xf32>
    %88 = vector.extract_strided_slice %87 {offsets = [0, 0], sizes = [8, 128], strides = [1, 1]} : vector<8x512xf32> to vector<8x128xf32>
    %89 = arith.negf %88 : vector<8x128xf32>
    %90 = math.exp %89 : vector<8x128xf32>
    %cst_34 = arith.constant 1.000000e+00 : f32
    %91 = vector.broadcast %cst_34 : f32 to vector<8x128xf32>
    %92 = arith.addf %91, %90 : vector<8x128xf32>
    %93 = arith.divf %91, %92 : vector<8x128xf32>
    %94 = vector.extract_strided_slice %87 {offsets = [0, 128], sizes = [8, 128], strides = [1, 1]} : vector<8x512xf32> to vector<8x128xf32>
    %95 = arith.negf %94 : vector<8x128xf32>
    %96 = math.exp %95 : vector<8x128xf32>
    %cst_35 = arith.constant 1.000000e+00 : f32
    %97 = vector.broadcast %cst_35 : f32 to vector<8x128xf32>
    %98 = arith.addf %97, %96 : vector<8x128xf32>
    %99 = arith.divf %97, %98 : vector<8x128xf32>
    %100 = vector.extract_strided_slice %87 {offsets = [0, 256], sizes = [8, 128], strides = [1, 1]} : vector<8x512xf32> to vector<8x128xf32>
    %101 = math.tanh %100 : vector<8x128xf32>
    %102 = vector.extract_strided_slice %87 {offsets = [0, 384], sizes = [8, 128], strides = [1, 1]} : vector<8x512xf32> to vector<8x128xf32>
    %103 = arith.negf %102 : vector<8x128xf32>
    %104 = math.exp %103 : vector<8x128xf32>
    %cst_36 = arith.constant 1.000000e+00 : f32
    %105 = vector.broadcast %cst_36 : f32 to vector<8x128xf32>
    %106 = arith.addf %105, %104 : vector<8x128xf32>
    %107 = arith.divf %105, %106 : vector<8x128xf32>
    %108 = arith.mulf %99, %74 : vector<8x128xf32>
    %109 = arith.mulf %93, %101 : vector<8x128xf32>
    %110 = arith.addf %108, %109 : vector<8x128xf32>
    %111 = math.tanh %110 : vector<8x128xf32>
    %112 = arith.mulf %107, %111 : vector<8x128xf32>
    %c2_37 = arith.constant 2 : index
    %c0_38 = arith.constant 0 : index
    %c0_39 = arith.constant 0 : index
    %113 = vector.load %arg6[%c2_37, %c0_38, %c0_39] : memref<8x8x128xf32, #tpu.memory_space<vmem>>, vector<1x8x128xf32>
    %114 = vector.shape_cast %113 : vector<1x8x128xf32> to vector<8x128xf32>
    %115 = vector.shape_cast %112 : vector<8x128xf32> to vector<1x8x128xf32>
    tpu.vector_store %arg6[%c2_37, %c0_38, %c0_39], %115 {strides = array<i32>} : memref<8x8x128xf32, #tpu.memory_space<vmem>>, vector<1x8x128xf32>,
    %c3 = arith.constant 3 : index
    %c0_40 = arith.constant 0 : index
    %c0_41 = arith.constant 0 : index
    %116 = vector.load %arg2[%c3, %c0_40, %c0_41] : memref<8x8x128xbf16, #tpu.memory_space<vmem>>, vector<1x8x128xbf16>
    %117 = vector.shape_cast %116 : vector<1x8x128xbf16> to vector<8x128xbf16>
    %cst_42 = arith.constant dense<0.000000e+00> : vector<8x512xf32>
    %118 = tpu.matmul %117, %3, %cst_42 {dimension_numbers = #tpu.dot_dimension_numbers<[1], [0], [0], [1], [0, 0, 1, 1], [], []>} : vector<8x128xbf16>, vector<128x512xbf16>, vector<8x512xf32> -> vector<8x512xf32>
    %119 = arith.truncf %112 : vector<8x128xf32> to vector<8x128xbf16>
    %cst_43 = arith.constant dense<0.000000e+00> : vector<8x512xf32>
    %120 = tpu.matmul %119, %4, %cst_43 {dimension_numbers = #tpu.dot_dimension_numbers<[1], [0], [0], [1], [0, 0, 1, 1], [], []>} : vector<8x128xbf16>, vector<128x512xbf16>, vector<8x512xf32> -> vector<8x512xf32>
    %121 = arith.addf %118, %120 : vector<8x512xf32>
    %122 = vector.broadcast %5 : vector<1x512xf32> to vector<8x512xf32>
    %123 = arith.addf %121, %122 : vector<8x512xf32>
    %124 = vector.extract_strided_slice %123 {offsets = [0, 0], sizes = [8, 128], strides = [1, 1]} : vector<8x512xf32> to vector<8x128xf32>
    %125 = arith.negf %124 : vector<8x128xf32>
    %126 = math.exp %125 : vector<8x128xf32>
    %cst_44 = arith.constant 1.000000e+00 : f32
    %127 = vector.broadcast %cst_44 : f32 to vector<8x128xf32>
    %128 = arith.addf %127, %126 : vector<8x128xf32>
    %129 = arith.divf %127, %128 : vector<8x128xf32>
    %130 = vector.extract_strided_slice %123 {offsets = [0, 128], sizes = [8, 128], strides = [1, 1]} : vector<8x512xf32> to vector<8x128xf32>
    %131 = arith.negf %130 : vector<8x128xf32>
    %132 = math.exp %131 : vector<8x128xf32>
    %cst_45 = arith.constant 1.000000e+00 : f32
    %133 = vector.broadcast %cst_45 : f32 to vector<8x128xf32>
    %134 = arith.addf %133, %132 : vector<8x128xf32>
    %135 = arith.divf %133, %134 : vector<8x128xf32>
    %136 = vector.extract_strided_slice %123 {offsets = [0, 256], sizes = [8, 128], strides = [1, 1]} : vector<8x512xf32> to vector<8x128xf32>
    %137 = math.tanh %136 : vector<8x128xf32>
    %138 = vector.extract_strided_slice %123 {offsets = [0, 384], sizes = [8, 128], strides = [1, 1]} : vector<8x512xf32> to vector<8x128xf32>
    %139 = arith.negf %138 : vector<8x128xf32>
    %140 = math.exp %139 : vector<8x128xf32>
    %cst_46 = arith.constant 1.000000e+00 : f32
    %141 = vector.broadcast %cst_46 : f32 to vector<8x128xf32>
    %142 = arith.addf %141, %140 : vector<8x128xf32>
    %143 = arith.divf %141, %142 : vector<8x128xf32>
    %144 = arith.mulf %135, %110 : vector<8x128xf32>
    %145 = arith.mulf %129, %137 : vector<8x128xf32>
    %146 = arith.addf %144, %145 : vector<8x128xf32>
    %147 = math.tanh %146 : vector<8x128xf32>
    %148 = arith.mulf %143, %147 : vector<8x128xf32>
    %c3_47 = arith.constant 3 : index
    %c0_48 = arith.constant 0 : index
    %c0_49 = arith.constant 0 : index
    %149 = vector.load %arg6[%c3_47, %c0_48, %c0_49] : memref<8x8x128xf32, #tpu.memory_space<vmem>>, vector<1x8x128xf32>
    %150 = vector.shape_cast %149 : vector<1x8x128xf32> to vector<8x128xf32>
    %151 = vector.shape_cast %148 : vector<8x128xf32> to vector<1x8x128xf32>
    tpu.vector_store %arg6[%c3_47, %c0_48, %c0_49], %151 {strides = array<i32>} : memref<8x8x128xf32, #tpu.memory_space<vmem>>, vector<1x8x128xf32>,
    %c4 = arith.constant 4 : index
    %c0_50 = arith.constant 0 : index
    %c0_51 = arith.constant 0 : index
    %152 = vector.load %arg2[%c4, %c0_50, %c0_51] : memref<8x8x128xbf16, #tpu.memory_space<vmem>>, vector<1x8x128xbf16>
    %153 = vector.shape_cast %152 : vector<1x8x128xbf16> to vector<8x128xbf16>
    %cst_52 = arith.constant dense<0.000000e+00> : vector<8x512xf32>
    %154 = tpu.matmul %153, %3, %cst_52 {dimension_numbers = #tpu.dot_dimension_numbers<[1], [0], [0], [1], [0, 0, 1, 1], [], []>} : vector<8x128xbf16>, vector<128x512xbf16>, vector<8x512xf32> -> vector<8x512xf32>
    %155 = arith.truncf %148 : vector<8x128xf32> to vector<8x128xbf16>
    %cst_53 = arith.constant dense<0.000000e+00> : vector<8x512xf32>
    %156 = tpu.matmul %155, %4, %cst_53 {dimension_numbers = #tpu.dot_dimension_numbers<[1], [0], [0], [1], [0, 0, 1, 1], [], []>} : vector<8x128xbf16>, vector<128x512xbf16>, vector<8x512xf32> -> vector<8x512xf32>
    %157 = arith.addf %154, %156 : vector<8x512xf32>
    %158 = vector.broadcast %5 : vector<1x512xf32> to vector<8x512xf32>
    %159 = arith.addf %157, %158 : vector<8x512xf32>
    %160 = vector.extract_strided_slice %159 {offsets = [0, 0], sizes = [8, 128], strides = [1, 1]} : vector<8x512xf32> to vector<8x128xf32>
    %161 = arith.negf %160 : vector<8x128xf32>
    %162 = math.exp %161 : vector<8x128xf32>
    %cst_54 = arith.constant 1.000000e+00 : f32
    %163 = vector.broadcast %cst_54 : f32 to vector<8x128xf32>
    %164 = arith.addf %163, %162 : vector<8x128xf32>
    %165 = arith.divf %163, %164 : vector<8x128xf32>
    %166 = vector.extract_strided_slice %159 {offsets = [0, 128], sizes = [8, 128], strides = [1, 1]} : vector<8x512xf32> to vector<8x128xf32>
    %167 = arith.negf %166 : vector<8x128xf32>
    %168 = math.exp %167 : vector<8x128xf32>
    %cst_55 = arith.constant 1.000000e+00 : f32
    %169 = vector.broadcast %cst_55 : f32 to vector<8x128xf32>
    %170 = arith.addf %169, %168 : vector<8x128xf32>
    %171 = arith.divf %169, %170 : vector<8x128xf32>
    %172 = vector.extract_strided_slice %159 {offsets = [0, 256], sizes = [8, 128], strides = [1, 1]} : vector<8x512xf32> to vector<8x128xf32>
    %173 = math.tanh %172 : vector<8x128xf32>
    %174 = vector.extract_strided_slice %159 {offsets = [0, 384], sizes = [8, 128], strides = [1, 1]} : vector<8x512xf32> to vector<8x128xf32>
    %175 = arith.negf %174 : vector<8x128xf32>
    %176 = math.exp %175 : vector<8x128xf32>
    %cst_56 = arith.constant 1.000000e+00 : f32
    %177 = vector.broadcast %cst_56 : f32 to vector<8x128xf32>
    %178 = arith.addf %177, %176 : vector<8x128xf32>
    %179 = arith.divf %177, %178 : vector<8x128xf32>
    %180 = arith.mulf %171, %146 : vector<8x128xf32>
    %181 = arith.mulf %165, %173 : vector<8x128xf32>
    %182 = arith.addf %180, %181 : vector<8x128xf32>
    %183 = math.tanh %182 : vector<8x128xf32>
    %184 = arith.mulf %179, %183 : vector<8x128xf32>
    %c4_57 = arith.constant 4 : index
    %c0_58 = arith.constant 0 : index
    %c0_59 = arith.constant 0 : index
    %185 = vector.load %arg6[%c4_57, %c0_58, %c0_59] : memref<8x8x128xf32, #tpu.memory_space<vmem>>, vector<1x8x128xf32>
    %186 = vector.shape_cast %185 : vector<1x8x128xf32> to vector<8x128xf32>
    %187 = vector.shape_cast %184 : vector<8x128xf32> to vector<1x8x128xf32>
    tpu.vector_store %arg6[%c4_57, %c0_58, %c0_59], %187 {strides = array<i32>} : memref<8x8x128xf32, #tpu.memory_space<vmem>>, vector<1x8x128xf32>,
    %c5 = arith.constant 5 : index
    %c0_60 = arith.constant 0 : index
    %c0_61 = arith.constant 0 : index
    %188 = vector.load %arg2[%c5, %c0_60, %c0_61] : memref<8x8x128xbf16, #tpu.memory_space<vmem>>, vector<1x8x128xbf16>
    %189 = vector.shape_cast %188 : vector<1x8x128xbf16> to vector<8x128xbf16>
    %cst_62 = arith.constant dense<0.000000e+00> : vector<8x512xf32>
    %190 = tpu.matmul %189, %3, %cst_62 {dimension_numbers = #tpu.dot_dimension_numbers<[1], [0], [0], [1], [0, 0, 1, 1], [], []>} : vector<8x128xbf16>, vector<128x512xbf16>, vector<8x512xf32> -> vector<8x512xf32>
    %191 = arith.truncf %184 : vector<8x128xf32> to vector<8x128xbf16>
    %cst_63 = arith.constant dense<0.000000e+00> : vector<8x512xf32>
    %192 = tpu.matmul %191, %4, %cst_63 {dimension_numbers = #tpu.dot_dimension_numbers<[1], [0], [0], [1], [0, 0, 1, 1], [], []>} : vector<8x128xbf16>, vector<128x512xbf16>, vector<8x512xf32> -> vector<8x512xf32>
    %193 = arith.addf %190, %192 : vector<8x512xf32>
    %194 = vector.broadcast %5 : vector<1x512xf32> to vector<8x512xf32>
    %195 = arith.addf %193, %194 : vector<8x512xf32>
    %196 = vector.extract_strided_slice %195 {offsets = [0, 0], sizes = [8, 128], strides = [1, 1]} : vector<8x512xf32> to vector<8x128xf32>
    %197 = arith.negf %196 : vector<8x128xf32>
    %198 = math.exp %197 : vector<8x128xf32>
    %cst_64 = arith.constant 1.000000e+00 : f32
    %199 = vector.broadcast %cst_64 : f32 to vector<8x128xf32>
    %200 = arith.addf %199, %198 : vector<8x128xf32>
    %201 = arith.divf %199, %200 : vector<8x128xf32>
    %202 = vector.extract_strided_slice %195 {offsets = [0, 128], sizes = [8, 128], strides = [1, 1]} : vector<8x512xf32> to vector<8x128xf32>
    %203 = arith.negf %202 : vector<8x128xf32>
    %204 = math.exp %203 : vector<8x128xf32>
    %cst_65 = arith.constant 1.000000e+00 : f32
    %205 = vector.broadcast %cst_65 : f32 to vector<8x128xf32>
    %206 = arith.addf %205, %204 : vector<8x128xf32>
    %207 = arith.divf %205, %206 : vector<8x128xf32>
    %208 = vector.extract_strided_slice %195 {offsets = [0, 256], sizes = [8, 128], strides = [1, 1]} : vector<8x512xf32> to vector<8x128xf32>
    %209 = math.tanh %208 : vector<8x128xf32>
    %210 = vector.extract_strided_slice %195 {offsets = [0, 384], sizes = [8, 128], strides = [1, 1]} : vector<8x512xf32> to vector<8x128xf32>
    %211 = arith.negf %210 : vector<8x128xf32>
    %212 = math.exp %211 : vector<8x128xf32>
    %cst_66 = arith.constant 1.000000e+00 : f32
    %213 = vector.broadcast %cst_66 : f32 to vector<8x128xf32>
    %214 = arith.addf %213, %212 : vector<8x128xf32>
    %215 = arith.divf %213, %214 : vector<8x128xf32>
    %216 = arith.mulf %207, %182 : vector<8x128xf32>
    %217 = arith.mulf %201, %209 : vector<8x128xf32>
    %218 = arith.addf %216, %217 : vector<8x128xf32>
    %219 = math.tanh %218 : vector<8x128xf32>
    %220 = arith.mulf %215, %219 : vector<8x128xf32>
    %c5_67 = arith.constant 5 : index
    %c0_68 = arith.constant 0 : index
    %c0_69 = arith.constant 0 : index
    %221 = vector.load %arg6[%c5_67, %c0_68, %c0_69] : memref<8x8x128xf32, #tpu.memory_space<vmem>>, vector<1x8x128xf32>
    %222 = vector.shape_cast %221 : vector<1x8x128xf32> to vector<8x128xf32>
    %223 = vector.shape_cast %220 : vector<8x128xf32> to vector<1x8x128xf32>
    tpu.vector_store %arg6[%c5_67, %c0_68, %c0_69], %223 {strides = array<i32>} : memref<8x8x128xf32, #tpu.memory_space<vmem>>, vector<1x8x128xf32>,
    %c6 = arith.constant 6 : index
    %c0_70 = arith.constant 0 : index
    %c0_71 = arith.constant 0 : index
    %224 = vector.load %arg2[%c6, %c0_70, %c0_71] : memref<8x8x128xbf16, #tpu.memory_space<vmem>>, vector<1x8x128xbf16>
    %225 = vector.shape_cast %224 : vector<1x8x128xbf16> to vector<8x128xbf16>
    %cst_72 = arith.constant dense<0.000000e+00> : vector<8x512xf32>
    %226 = tpu.matmul %225, %3, %cst_72 {dimension_numbers = #tpu.dot_dimension_numbers<[1], [0], [0], [1], [0, 0, 1, 1], [], []>} : vector<8x128xbf16>, vector<128x512xbf16>, vector<8x512xf32> -> vector<8x512xf32>
    %227 = arith.truncf %220 : vector<8x128xf32> to vector<8x128xbf16>
    %cst_73 = arith.constant dense<0.000000e+00> : vector<8x512xf32>
    %228 = tpu.matmul %227, %4, %cst_73 {dimension_numbers = #tpu.dot_dimension_numbers<[1], [0], [0], [1], [0, 0, 1, 1], [], []>} : vector<8x128xbf16>, vector<128x512xbf16>, vector<8x512xf32> -> vector<8x512xf32>
    %229 = arith.addf %226, %228 : vector<8x512xf32>
    %230 = vector.broadcast %5 : vector<1x512xf32> to vector<8x512xf32>
    %231 = arith.addf %229, %230 : vector<8x512xf32>
    %232 = vector.extract_strided_slice %231 {offsets = [0, 0], sizes = [8, 128], strides = [1, 1]} : vector<8x512xf32> to vector<8x128xf32>
    %233 = arith.negf %232 : vector<8x128xf32>
    %234 = math.exp %233 : vector<8x128xf32>
    %cst_74 = arith.constant 1.000000e+00 : f32
    %235 = vector.broadcast %cst_74 : f32 to vector<8x128xf32>
    %236 = arith.addf %235, %234 : vector<8x128xf32>
    %237 = arith.divf %235, %236 : vector<8x128xf32>
    %238 = vector.extract_strided_slice %231 {offsets = [0, 128], sizes = [8, 128], strides = [1, 1]} : vector<8x512xf32> to vector<8x128xf32>
    %239 = arith.negf %238 : vector<8x128xf32>
    %240 = math.exp %239 : vector<8x128xf32>
    %cst_75 = arith.constant 1.000000e+00 : f32
    %241 = vector.broadcast %cst_75 : f32 to vector<8x128xf32>
    %242 = arith.addf %241, %240 : vector<8x128xf32>
    %243 = arith.divf %241, %242 : vector<8x128xf32>
    %244 = vector.extract_strided_slice %231 {offsets = [0, 256], sizes = [8, 128], strides = [1, 1]} : vector<8x512xf32> to vector<8x128xf32>
    %245 = math.tanh %244 : vector<8x128xf32>
    %246 = vector.extract_strided_slice %231 {offsets = [0, 384], sizes = [8, 128], strides = [1, 1]} : vector<8x512xf32> to vector<8x128xf32>
    %247 = arith.negf %246 : vector<8x128xf32>
    %248 = math.exp %247 : vector<8x128xf32>
    %cst_76 = arith.constant 1.000000e+00 : f32
    %249 = vector.broadcast %cst_76 : f32 to vector<8x128xf32>
    %250 = arith.addf %249, %248 : vector<8x128xf32>
    %251 = arith.divf %249, %250 : vector<8x128xf32>
    %252 = arith.mulf %243, %218 : vector<8x128xf32>
    %253 = arith.mulf %237, %245 : vector<8x128xf32>
    %254 = arith.addf %252, %253 : vector<8x128xf32>
    %255 = math.tanh %254 : vector<8x128xf32>
    %256 = arith.mulf %251, %255 : vector<8x128xf32>
    %c6_77 = arith.constant 6 : index
    %c0_78 = arith.constant 0 : index
    %c0_79 = arith.constant 0 : index
    %257 = vector.load %arg6[%c6_77, %c0_78, %c0_79] : memref<8x8x128xf32, #tpu.memory_space<vmem>>, vector<1x8x128xf32>
    %258 = vector.shape_cast %257 : vector<1x8x128xf32> to vector<8x128xf32>
    %259 = vector.shape_cast %256 : vector<8x128xf32> to vector<1x8x128xf32>
    tpu.vector_store %arg6[%c6_77, %c0_78, %c0_79], %259 {strides = array<i32>} : memref<8x8x128xf32, #tpu.memory_space<vmem>>, vector<1x8x128xf32>,
    %c7 = arith.constant 7 : index
    %c0_80 = arith.constant 0 : index
    %c0_81 = arith.constant 0 : index
    %260 = vector.load %arg2[%c7, %c0_80, %c0_81] : memref<8x8x128xbf16, #tpu.memory_space<vmem>>, vector<1x8x128xbf16>
    %261 = vector.shape_cast %260 : vector<1x8x128xbf16> to vector<8x128xbf16>
    %cst_82 = arith.constant dense<0.000000e+00> : vector<8x512xf32>
    %262 = tpu.matmul %261, %3, %cst_82 {dimension_numbers = #tpu.dot_dimension_numbers<[1], [0], [0], [1], [0, 0, 1, 1], [], []>} : vector<8x128xbf16>, vector<128x512xbf16>, vector<8x512xf32> -> vector<8x512xf32>
    %263 = arith.truncf %256 : vector<8x128xf32> to vector<8x128xbf16>
    %cst_83 = arith.constant dense<0.000000e+00> : vector<8x512xf32>
    %264 = tpu.matmul %263, %4, %cst_83 {dimension_numbers = #tpu.dot_dimension_numbers<[1], [0], [0], [1], [0, 0, 1, 1], [], []>} : vector<8x128xbf16>, vector<128x512xbf16>, vector<8x512xf32> -> vector<8x512xf32>
    %265 = arith.addf %262, %264 : vector<8x512xf32>
    %266 = vector.broadcast %5 : vector<1x512xf32> to vector<8x512xf32>
    %267 = arith.addf %265, %266 : vector<8x512xf32>
    %268 = vector.extract_strided_slice %267 {offsets = [0, 0], sizes = [8, 128], strides = [1, 1]} : vector<8x512xf32> to vector<8x128xf32>
    %269 = arith.negf %268 : vector<8x128xf32>
    %270 = math.exp %269 : vector<8x128xf32>
    %cst_84 = arith.constant 1.000000e+00 : f32
    %271 = vector.broadcast %cst_84 : f32 to vector<8x128xf32>
    %272 = arith.addf %271, %270 : vector<8x128xf32>
    %273 = arith.divf %271, %272 : vector<8x128xf32>
    %274 = vector.extract_strided_slice %267 {offsets = [0, 128], sizes = [8, 128], strides = [1, 1]} : vector<8x512xf32> to vector<8x128xf32>
    %275 = arith.negf %274 : vector<8x128xf32>
    %276 = math.exp %275 : vector<8x128xf32>
    %cst_85 = arith.constant 1.000000e+00 : f32
    %277 = vector.broadcast %cst_85 : f32 to vector<8x128xf32>
    %278 = arith.addf %277, %276 : vector<8x128xf32>
    %279 = arith.divf %277, %278 : vector<8x128xf32>
    %280 = vector.extract_strided_slice %267 {offsets = [0, 256], sizes = [8, 128], strides = [1, 1]} : vector<8x512xf32> to vector<8x128xf32>
    %281 = math.tanh %280 : vector<8x128xf32>
    %282 = vector.extract_strided_slice %267 {offsets = [0, 384], sizes = [8, 128], strides = [1, 1]} : vector<8x512xf32> to vector<8x128xf32>
    %283 = arith.negf %282 : vector<8x128xf32>
    %284 = math.exp %283 : vector<8x128xf32>
    %cst_86 = arith.constant 1.000000e+00 : f32
    %285 = vector.broadcast %cst_86 : f32 to vector<8x128xf32>
    %286 = arith.addf %285, %284 : vector<8x128xf32>
    %287 = arith.divf %285, %286 : vector<8x128xf32>
    %288 = arith.mulf %279, %254 : vector<8x128xf32>
    %289 = arith.mulf %273, %281 : vector<8x128xf32>
    %290 = arith.addf %288, %289 : vector<8x128xf32>
    %291 = math.tanh %290 : vector<8x128xf32>
    %292 = arith.mulf %287, %291 : vector<8x128xf32>
    %c7_87 = arith.constant 7 : index
    %c0_88 = arith.constant 0 : index
    %c0_89 = arith.constant 0 : index
    %293 = vector.load %arg6[%c7_87, %c0_88, %c0_89] : memref<8x8x128xf32, #tpu.memory_space<vmem>>, vector<1x8x128xf32>
    %294 = vector.shape_cast %293 : vector<1x8x128xf32> to vector<8x128xf32>
    %295 = vector.shape_cast %292 : vector<8x128xf32> to vector<1x8x128xf32>
    tpu.vector_store %arg6[%c7_87, %c0_88, %c0_89], %295 {strides = array<i32>} : memref<8x8x128xf32, #tpu.memory_space<vmem>>, vector<1x8x128xf32>,
    %c0_90 = arith.constant 0 : index
    %c0_91 = arith.constant 0 : index
    %296 = vector.load %arg7[%c0_90, %c0_91] : memref<8x128xf32, #tpu.memory_space<vmem>>, vector<8x128xf32>
    tpu.vector_store %arg7[%c0_90, %c0_91], %292 {strides = array<i32>} : memref<8x128xf32, #tpu.memory_space<vmem>>, vector<8x128xf32>,
    %c0_92 = arith.constant 0 : index
    %c0_93 = arith.constant 0 : index
    %297 = vector.load %arg8[%c0_92, %c0_93] : memref<8x128xf32, #tpu.memory_space<vmem>>, vector<8x128xf32>
    tpu.vector_store %arg8[%c0_92, %c0_93], %290 {strides = array<i32>} : memref<8x128xf32, #tpu.memory_space<vmem>>, vector<8x128xf32>,
    return
  }
  func.func @transform_0(%arg0: i32, %arg1: i32) -> (i32, i32, i32) {
    %c0_i32 = arith.constant 0 : i32
    %c0_i32_0 = arith.constant 0 : i32
    return %arg1, %arg0, %c0_i32 : i32, i32, i32
  }
  func.func @transform_1(%arg0: i32, %arg1: i32) -> (i32, i32) {
    %c0_i32 = arith.constant 0 : i32
    %c0_i32_0 = arith.constant 0 : i32
    %c0_i32_1 = arith.constant 0 : i32
    return %c0_i32, %c0_i32_0 : i32, i32
  }
  func.func @transform_2(%arg0: i32, %arg1: i32) -> (i32, i32) {
    %c0_i32 = arith.constant 0 : i32
    %c0_i32_0 = arith.constant 0 : i32
    %c0_i32_1 = arith.constant 0 : i32
    return %c0_i32, %c0_i32_0 : i32, i32
  }
  func.func @transform_3(%arg0: i32, %arg1: i32) -> (i32, i32) {
    %c0_i32 = arith.constant 0 : i32
    %c0_i32_0 = arith.constant 0 : i32
    %c0_i32_1 = arith.constant 0 : i32
    return %c0_i32, %c0_i32_0 : i32, i32
  }
  func.func @transform_4(%arg0: i32, %arg1: i32) -> (i32, i32, i32) {
    %c0_i32 = arith.constant 0 : i32
    %c0_i32_0 = arith.constant 0 : i32
    return %arg1, %arg0, %c0_i32 : i32, i32, i32
  }
  func.func @transform_5(%arg0: i32, %arg1: i32) -> (i32, i32) {
    %c0_i32 = arith.constant 0 : i32
    %c0_i32_0 = arith.constant 0 : i32
    return %arg0, %c0_i32 : i32, i32
  }
  func.func @transform_6(%arg0: i32, %arg1: i32) -> (i32, i32) {
    %c0_i32 = arith.constant 0 : i32
    %c0_i32_0 = arith.constant 0 : i32
    return %arg0, %c0_i32 : i32, i32
  }
}

</mosaic_0001>

<bundles_post_ra>
// kernel: lstm_model_forward.1
= control target key start
LH: loop header
LB: loop body
LE: loop exit
PB: predicated region body
PF: predicated region fallthrough
CT: control target
= control target key end

     0   :  { %s3514_s2 = inlined_call_operand.vmem [shape: bf16[128,512], index: 2, kind: input, shape index: {}]   ;;  %s3515_s1 = inlined_call_operand.vmem [shape: bf16[128,512], index: 1, kind: input, shape index: {}]   ;;  %s3516_s0 = inlined_call_operand.vmem [shape: bf16[8,8,128], index: 0, kind: input, shape index: {}]   ;;  %s3517_s3 = inlined_call_operand.vmem [shape: f32[1,512], index: 3, kind: input, shape index: {}]   ;;  %s3518_s4 = inlined_call_operand.vmem [shape: f32[8,8,128], index: 4, kind: output, shape index: {0}]   ;;  %s3519_s6 = inlined_call_operand.vmem [shape: f32[8,128], index: 6, kind: output, shape index: {2}]   ;;  %s3520_s5 = inlined_call_operand.vmem [shape: f32[8,128], index: 5, kind: output, shape index: {1}]  }
   0x1   :  { %v1956_v0 = vld [vmem:[%s3514_s2 + $0xe0] sm:$0xf]  ;;  %v2198_v1 = vld [vmem:[%s3514_s2 + $0xec] sm:$0xf0]  ;;  %v2196_v2 = vld [vmem:[%s3514_s2 + $0xe4] sm:$0xf] }
   0x2   :  { %v2374_v3 = vor.u32 %v2198_v1, %v1956_v0  ;;  %v1958_v4 = vld [vmem:[%s3514_s2 + $0xf0] sm:$0xf0]  ;;  %v1964_v5 = vld [vmem:[%s3514_s2 + $0xe8] sm:$0xf]  ;;  %v2199_v6 = vld [vmem:[%s3514_s2 + $0xf4] sm:$0xf0] }
   0x3   :  { %v2385_v7 = vor.u32 %v2196_v2, %v1958_v4  ;;  %v2387_v8 = vor.u32 %v2199_v6, %v1964_v5  ;;  %v2197_v9 = vld [vmem:[%s3514_s2 + $0xec] sm:$0xf]  ;;  %v1966_v10 = vld [vmem:[%s3514_s2 + $0xf8] sm:$0xf0]  ;;  %v1940_v11 = vld [vmem:[%s3514_s2 + $0xc0] sm:$0xf] }
   0x4   :  { %255 = vmatpush.bf16.msra.mxu0 %v2374_v3  ;;  %v2399_v12 = vor.u32 %v2197_v9, %v1966_v10  ;;  %v2194_v13 = vld [vmem:[%s3514_s2 + $0xcc] sm:$0xf0]  ;;  %v2192_v14 = vld [vmem:[%s3514_s2 + $0xc4] sm:$0xf]  ;;  %v1942_v15 = vld [vmem:[%s3514_s2 + $0xd0] sm:$0xf0] }
   0x5   :  { %268 = vmatpush.bf16.msra.mxu1 %v2385_v7  ;;  %281 = vmatpush.bf16.msra.mxu2 %v2387_v8  ;;  %v2412_v16 = vor.u32 %v2194_v13, %v1940_v11  ;;  %v2414_v17 = vor.u32 %v2192_v14, %v1942_v15  ;;  %v1948_v18 = vld [vmem:[%s3514_s2 + $0xc8] sm:$0xf]  ;;  %v2195_v19 = vld [vmem:[%s3514_s2 + $0xd4] sm:$0xf0]  ;;  %v2193_v20 = vld [vmem:[%s3514_s2 + $0xcc] sm:$0xf] }
   0x6   :  { %294 = vmatpush.bf16.msra.mxu3 %v2399_v12  ;;  %v2426_v21 = vor.u32 %v2195_v19, %v1948_v18  ;;  %v1950_v22 = vld [vmem:[%s3514_s2 + $0xd8] sm:$0xf0]  ;;  %v1924_v23 = vld [vmem:[%s3514_s2 + $0xa0] sm:$0xf]  ;;  %v2190_v24 = vld [vmem:[%s3514_s2 + $0xac] sm:$0xf0] }
   0x7   :  { %v2437_v25 = vor.u32 %v2193_v20, %v1950_v22  ;;  %v2188_v26 = vld [vmem:[%s3514_s2 + $0xa4] sm:$0xf]  ;;  %v1926_v27 = vld [vmem:[%s3514_s2 + $0xb0] sm:$0xf0]  ;;  %v1932_v28 = vld [vmem:[%s3514_s2 + $0xa8] sm:$0xf]  ;;  %v2449_v29 = vor.u32 %v2190_v24, %v1924_v23 }
   0x8   :  { %256 = vmatpush.bf16.msra.mxu0 %v2412_v16  ;;  %v2191_v30 = vld [vmem:[%s3514_s2 + $0xb4] sm:$0xf0]  ;;  %v2189_v31 = vld [vmem:[%s3514_s2 + $0xac] sm:$0xf]  ;;  %v1934_v32 = vld [vmem:[%s3514_s2 + $0xb8] sm:$0xf0]  ;;  %v2462_v33 = vor.u32 %v2188_v26, %v1926_v27 }
   0x9   :  { %269 = vmatpush.bf16.msra.mxu1 %v2414_v17  ;;  %282 = vmatpush.bf16.msra.mxu2 %v2426_v21  ;;  %v2464_v34 = vor.u32 %v2191_v30, %v1932_v28  ;;  %v1908_v35 = vld [vmem:[%s3514_s2 + $0x80] sm:$0xf]  ;;  %v2186_v36 = vld [vmem:[%s3514_s2 + $0x8c] sm:$0xf0]  ;;  %v2184_v37 = vld [vmem:[%s3514_s2 + $0x84] sm:$0xf]  ;;  %v2476_v38 = vor.u32 %v2189_v31, %v1934_v32 }
   0xa   :  { %295 = vmatpush.bf16.msra.mxu3 %v2437_v25  ;;  %v1910_v39 = vld [vmem:[%s3514_s2 + $0x90] sm:$0xf0]  ;;  %v1916_v40 = vld [vmem:[%s3514_s2 + $0x88] sm:$0xf]  ;;  %v2187_v41 = vld [vmem:[%s3514_s2 + $0x94] sm:$0xf0]  ;;  %v2494_v44 = vor.u32 %v2186_v36, %v1908_v35 }
   0xb   :  { %v2185_v42 = vld [vmem:[%s3514_s2 + $0x8c] sm:$0xf]  ;;  %v1918_v43 = vld [vmem:[%s3514_s2 + $0x98] sm:$0xf0]  ;;  %v2498_v45 = vor.u32 %v2184_v37, %v1910_v39  ;;  %v2500_v46 = vor.u32 %v2187_v41, %v1916_v40  ;;  %v1892_v47 = vld [vmem:[%s3514_s2 + $0x60] sm:$0xf] }
   0xc   :  { %257 = vmatpush.bf16.msra.mxu0 %v2449_v29  ;;  %v2182_v48 = vld [vmem:[%s3514_s2 + $0x6c] sm:$0xf0]  ;;  %v2180_v49 = vld [vmem:[%s3514_s2 + $0x64] sm:$0xf]  ;;  %v2512_v50 = vor.u32 %v2185_v42, %v1918_v43  ;;  %v1894_v51 = vld [vmem:[%s3514_s2 + $0x70] sm:$0xf0] }
   0xd   :  { %270 = vmatpush.bf16.msra.mxu1 %v2462_v33  ;;  %283 = vmatpush.bf16.msra.mxu2 %v2464_v34  ;;  %v1900_v52 = vld [vmem:[%s3514_s2 + $0x68] sm:$0xf]  ;;  %v2183_v53 = vld [vmem:[%s3514_s2 + $0x74] sm:$0xf0]  ;;  %v2181_v54 = vld [vmem:[%s3514_s2 + $0x6c] sm:$0xf]  ;;  %v2530_v56 = vor.u32 %v2182_v48, %v1892_v47  ;;  %v2534_v57 = vor.u32 %v2180_v49, %v1894_v51 }
   0xe   :  { %296 = vmatpush.bf16.msra.mxu3 %v2476_v38  ;;  %v1902_v55 = vld [vmem:[%s3514_s2 + $0x78] sm:$0xf0]  ;;  %v2536_v58 = vor.u32 %v2183_v53, %v1900_v52  ;;  %v1876_v59 = vld [vmem:[%s3514_s2 + $0x40] sm:$0xf]  ;;  %v2178_v60 = vld [vmem:[%s3514_s2 + $0x4c] sm:$0xf0] }
   0xf   :  { %v2176_v61 = vld [vmem:[%s3514_s2 + $0x44] sm:$0xf]  ;;  %v2548_v62 = vor.u32 %v2181_v54, %v1902_v55  ;;  %v1878_v63 = vld [vmem:[%s3514_s2 + $0x50] sm:$0xf0]  ;;  %v1884_v0 = vld [vmem:[%s3514_s2 + $0x48] sm:$0xf]  ;;  %v2566_v5 = vor.u32 %v2178_v60, %v1876_v59 }
  0x10   :  { %258 = vmatpush.bf16.msra.mxu0 %v2494_v44  ;;  %v2179_v1 = vld [vmem:[%s3514_s2 + $0x54] sm:$0xf0]  ;;  %v2177_v2 = vld [vmem:[%s3514_s2 + $0x4c] sm:$0xf]  ;;  %v1886_v4 = vld [vmem:[%s3514_s2 + $0x58] sm:$0xf0]  ;;  %v2570_v6 = vor.u32 %v2176_v61, %v1878_v63 }
  0x11   :  { %271 = vmatpush.bf16.msra.mxu1 %v2498_v45  ;;  %284 = vmatpush.bf16.msra.mxu2 %v2500_v46  ;;  %v2572_v9 = vor.u32 %v2179_v1, %v1884_v0  ;;  %v1860_v10 = vld [vmem:[%s3514_s2 + $0x20] sm:$0xf]  ;;  %v2174_v11 = vld [vmem:[%s3514_s2 + $0x2c] sm:$0xf0]  ;;  %v2172_v13 = vld [vmem:[%s3514_s2 + $0x24] sm:$0xf]  ;;  %v2584_v14 = vor.u32 %v2177_v2, %v1886_v4 }
  0x12   :  { %297 = vmatpush.bf16.msra.mxu3 %v2512_v50  ;;  %v1862_v15 = vld [vmem:[%s3514_s2 + $0x30] sm:$0xf0]  ;;  %v1868_v18 = vld [vmem:[%s3514_s2 + $0x28] sm:$0xf]  ;;  %v2175_v19 = vld [vmem:[%s3514_s2 + $0x34] sm:$0xf0]  ;;  %v2602_v23 = vor.u32 %v2174_v11, %v1860_v10 }
  0x13   :  { %v2173_v20 = vld [vmem:[%s3514_s2 + $0x2c] sm:$0xf]  ;;  %v1870_v22 = vld [vmem:[%s3514_s2 + $0x38] sm:$0xf0]  ;;  %v1844_v24 = vld [vmem:[%s3514_s2] sm:$0xf]  ;;  %v2612_v27 = vor.u32 %v2172_v13, %v1862_v15  ;;  %v2614_v28 = vor.u32 %v2175_v19, %v1868_v18 }
  0x14   :  { %259 = vmatpush.bf16.msra.mxu0 %v2530_v56  ;;  %v2170_v26 = vld [vmem:[%s3514_s2 + $0xc] sm:$0xf0]  ;;  %v2168_v30 = vld [vmem:[%s3514_s2 + $0x4] sm:$0xf]  ;;  %v1846_v31 = vld [vmem:[%s3514_s2 + $0x10] sm:$0xf0]  ;;  %v2626_v35 = vor.u32 %v2173_v20, %v1870_v22 }
  0x15   :  { %272 = vmatpush.bf16.msra.mxu1 %v2534_v57  ;;  %285 = vmatpush.bf16.msra.mxu2 %v2536_v58  ;;  %v1852_v32 = vld [vmem:[%s3514_s2 + $0x8] sm:$0xf]  ;;  %v2171_v36 = vld [vmem:[%s3514_s2 + $0x14] sm:$0xf0]  ;;  %v2169_v37 = vld [vmem:[%s3514_s2 + $0xc] sm:$0xf]  ;;  %v2647_v43 = vor.u32 %v2170_v26, %v1844_v24  ;;  %v2660_v51 = vor.u32 %v2168_v30, %v1846_v31 }
  0x16   :  { %298 = vmatpush.bf16.msra.mxu3 %v2548_v62  ;;  %v1854_v39 = vld [vmem:[%s3514_s2 + $0x18] sm:$0xf0]  ;;  %v2084_v40 = vld [vmem:[%s3515_s1 + $0xe0] sm:$0xf]  ;;  %v2166_v41 = vld [vmem:[%s3515_s1 + $0xec] sm:$0xf0]  ;;  %v2662_v52 = vor.u32 %v2171_v36, %v1852_v32 }
  0x17   :  { %v2164_v42 = vld [vmem:[%s3515_s1 + $0xe4] sm:$0xf]  ;;  %v2086_v47 = vld [vmem:[%s3515_s1 + $0xf0] sm:$0xf0]  ;;  %v2092_v48 = vld [vmem:[%s3515_s1 + $0xe8] sm:$0xf]  ;;  %v2671_v55 = vor.u32 %v2169_v37, %v1854_v39  ;;  %v2673_v59 = vor.u32 %v2166_v41, %v2084_v40 }
  0x18   :  { %260 = vmatpush.bf16.msra.mxu0 %v2566_v5  ;;  %v2167_v49 = vld [vmem:[%s3515_s1 + $0xf4] sm:$0xf0]  ;;  %v2165_v53 = vld [vmem:[%s3515_s1 + $0xec] sm:$0xf]  ;;  %v2094_v54 = vld [vmem:[%s3515_s1 + $0xf8] sm:$0xf0]  ;;  %v2675_v60 = vor.u32 %v2164_v42, %v2086_v47 }
  0x19   :  { %273 = vmatpush.bf16.msra.mxu1 %v2570_v6  ;;  %286 = vmatpush.bf16.msra.mxu2 %v2572_v9  ;;  %v2677_v61 = vor.u32 %v2167_v49, %v2092_v48  ;;  %v2068_v63 = vld [vmem:[%s3515_s1 + $0xc0] sm:$0xf]  ;;  %v2162_v0 = vld [vmem:[%s3515_s1 + $0xcc] sm:$0xf0]  ;;  %v2160_v1 = vld [vmem:[%s3515_s1 + $0xc4] sm:$0xf]  ;;  %v2689_v2 = vor.u32 %v2165_v53, %v2094_v54 }
  0x1a   :  { %299 = vmatpush.bf16.msra.mxu3 %v2584_v14  ;;  %v2070_v4 = vld [vmem:[%s3515_s1 + $0xd0] sm:$0xf0]  ;;  %v2076_v10 = vld [vmem:[%s3515_s1 + $0xc8] sm:$0xf]  ;;  %v2163_v11 = vld [vmem:[%s3515_s1 + $0xd4] sm:$0xf0]  ;;  %v2710_v18 = vor.u32 %v2162_v0, %v2068_v63 }
  0x1b   :  { %v2161_v13 = vld [vmem:[%s3515_s1 + $0xcc] sm:$0xf]  ;;  %v2078_v15 = vld [vmem:[%s3515_s1 + $0xd8] sm:$0xf0]  ;;  %v2714_v19 = vor.u32 %v2160_v1, %v2070_v4  ;;  %v2716_v20 = vor.u32 %v2163_v11, %v2076_v10  ;;  %v2052_v22 = vld [vmem:[%s3515_s1 + $0xa0] sm:$0xf] }
  0x1c   :  { %261 = vmatpush.bf16.msra.mxu0 %v2602_v23  ;;  %v2158_v24 = vld [vmem:[%s3515_s1 + $0xac] sm:$0xf0]  ;;  %v2156_v26 = vld [vmem:[%s3515_s1 + $0xa4] sm:$0xf]  ;;  %v2728_v30 = vor.u32 %v2161_v13, %v2078_v15  ;;  %v2329_v31 = vmov 0.0|0.0  }
  0x1d   :  { %274 = vmatpush.bf16.msra.mxu1 %v2612_v27  ;;  %287 = vmatpush.bf16.msra.mxu2 %v2614_v28  ;;  %3581 = vst [vmem:[#allocation2_spill] sm:$0xff] %v2716_v20  ;;  %v2054_v32 = vld [vmem:[%s3515_s1 + $0xb0] sm:$0xf0]  ;;  %v2060_v36 = vld [vmem:[%s3515_s1 + $0xa8] sm:$0xf]  ;;  %v2746_v41 = vor.u32 %v2158_v24, %v2052_v22 }
  0x1e   :  { %300 = vmatpush.bf16.msra.mxu3 %v2626_v35  ;;  %3582 = vst [vmem:[#allocation3_spill] sm:$0xff] %v2728_v30  ;;  %v2159_v37 = vld [vmem:[%s3515_s1 + $0xb4] sm:$0xf0]  ;;  %v2157_v39 = vld [vmem:[%s3515_s1 + $0xac] sm:$0xf]  ;;  %v2750_v42 = vor.u32 %v2156_v26, %v2054_v32 }
  0x1f   :  { %v2062_v40 = vld [vmem:[%s3515_s1 + $0xb8] sm:$0xf0]  ;;  %3583 = vst [vmem:[#allocation4_spill] sm:$0xff] %v2746_v41  ;;  %v2752_v47 = vor.u32 %v2159_v37, %v2060_v36  ;;  %v2036_v48 = vld [vmem:[%s3515_s1 + $0x80] sm:$0xf] }
  0x20   :  { %262 = vmatpush.bf16.msra.mxu0 %v2647_v43  ;;  %3584 = vst [vmem:[#allocation5_spill] sm:$0xff] %v2750_v42  ;;  %v2154_v49 = vld [vmem:[%s3515_s1 + $0x8c] sm:$0xf0]  ;;  %v2152_v53 = vld [vmem:[%s3515_s1 + $0x84] sm:$0xf]  ;;  %v2764_v54 = vor.u32 %v2157_v39, %v2062_v40 }
  0x21   :  { %275 = vmatpush.bf16.msra.mxu1 %v2660_v51  ;;  %288 = vmatpush.bf16.msra.mxu2 %v2662_v52  ;;  %3585 = vst [vmem:[#allocation6_spill] sm:$0xff] %v2752_v47  ;;  %v2038_v63 = vld [vmem:[%s3515_s1 + $0x90] sm:$0xf0]  ;;  %v2044_v0 = vld [vmem:[%s3515_s1 + $0x88] sm:$0xf]  ;;  %v2782_v11 = vor.u32 %v2154_v49, %v2036_v48 }
  0x22   :  { %301 = vmatpush.bf16.msra.mxu3 %v2671_v55  ;;  %3586 = vst [vmem:[#allocation7_spill] sm:$0xff] %v2764_v54  ;;  %v2155_v1 = vld [vmem:[%s3515_s1 + $0x94] sm:$0xf0]  ;;  %v2153_v4 = vld [vmem:[%s3515_s1 + $0x8c] sm:$0xf]  ;;  %v2786_v13 = vor.u32 %v2152_v53, %v2038_v63 }
  0x23   :  { %263 = vmatmul.bf16.vlgmr.msra.gmra.mxu0 %v2329_v31  ;;  %v2046_v10 = vld [vmem:[%s3515_s1 + $0x98] sm:$0xf0]  ;;  %3587 = vst [vmem:[#allocation8_spill] sm:$0xff] %v2782_v11  ;;  %v2788_v15 = vor.u32 %v2155_v1, %v2044_v0  ;;  %v2020_v22 = vld [vmem:[%s3515_s1 + $0x60] sm:$0xf] }
  0x24   :  { %467 = vmatpush.bf16.msrb.mxu0 %v2673_v59  ;;  %276 = vmatmul.bf16.vlgmr.msra.gmra.mxu1 %v2329_v31  ;;  %3588 = vst [vmem:[#allocation9_spill] sm:$0xff] %v2786_v13  ;;  %v2150_v24 = vld [vmem:[%s3515_s1 + $0x6c] sm:$0xf0]  ;;  %v2148_v26 = vld [vmem:[%s3515_s1 + $0x64] sm:$0xf] }
  0x25   :  { %480 = vmatpush.bf16.msrb.mxu1 %v2675_v60  ;;  %493 = vmatpush.bf16.msrb.mxu2 %v2677_v61  ;;  %3589 = vst [vmem:[#allocation10_spill] sm:$0xff] %v2788_v15  ;;  %v2022_v32 = vld [vmem:[%s3515_s1 + $0x70] sm:$0xf0]  ;;  %v2028_v36 = vld [vmem:[%s3515_s1 + $0x68] sm:$0xf]  ;;  %v2818_v48 = vor.u32 %v2150_v24, %v2020_v22 }
  0x26   :  { %506 = vmatpush.bf16.msrb.mxu3 %v2689_v2  ;;  %289 = vmatmul.bf16.vlgmr.msra.gmra.mxu2 %v2329_v31  ;;  %v2151_v37 = vld [vmem:[%s3515_s1 + $0x74] sm:$0xf0]  ;;  %v2149_v39 = vld [vmem:[%s3515_s1 + $0x6c] sm:$0xf]  ;;  %v2030_v40 = vld [vmem:[%s3515_s1 + $0x78] sm:$0xf0]  ;;  %v2822_v49 = vor.u32 %v2148_v26, %v2022_v32 }
  0x27   :  { %302 = vmatmul.bf16.vlgmr.msra.gmra.mxu3 %v2329_v31  ;;  %v2800_v31 = vor.u32 %v2153_v4, %v2046_v10  ;;  %3591 = vst [vmem:[#allocation12_spill] sm:$0xff] %v2818_v48  ;;  %v2824_v53 = vor.u32 %v2151_v37, %v2028_v36  ;;  %v2004_v63 = vld [vmem:[%s3515_s1 + $0x40] sm:$0xf]  ;;  %v2146_v0 = vld [vmem:[%s3515_s1 + $0x4c] sm:$0xf0]  ;;  %v2836_v4 = vor.u32 %v2149_v39, %v2030_v40 }
  0x28   :  { %468 = vmatpush.bf16.msrb.mxu0 %v2710_v18  ;;  %3592 = vst [vmem:[#allocation13_spill] sm:$0xff] %v2822_v49  ;;  %v2144_v1 = vld [vmem:[%s3515_s1 + $0x44] sm:$0xf]  ;;  %v2006_v10 = vld [vmem:[%s3515_s1 + $0x50] sm:$0xf0]  ;;  %v2854_v36 = vor.u32 %v2146_v0, %v2004_v63 }
  0x29   :  { %481 = vmatpush.bf16.msrb.mxu1 %v2714_v19  ;;  %494 = vmatpush.bf16.msrb.mxu2 %v2716_v20  ;;  %3590 = vst [vmem:[#allocation11_spill] sm:$0xff] %v2800_v31  ;;  %v2012_v22 = vld [vmem:[%s3515_s1 + $0x48] sm:$0xf]  ;;  %v2147_v24 = vld [vmem:[%s3515_s1 + $0x54] sm:$0xf0]  ;;  %v2858_v37 = vor.u32 %v2144_v1, %v2006_v10 }
  0x2a   :  { %507 = vmatpush.bf16.msrb.mxu3 %v2728_v30  ;;  %3593 = vst [vmem:[#allocation14_spill] sm:$0xff] %v2824_v53  ;;  %v2145_v26 = vld [vmem:[%s3515_s1 + $0x4c] sm:$0xf]  ;;  %v2014_v32 = vld [vmem:[%s3515_s1 + $0x58] sm:$0xf0]  ;;  %v2860_v39 = vor.u32 %v2147_v24, %v2012_v22 }
  0x2b   :  { %3594 = vst [vmem:[#allocation15_spill] sm:$0xff] %v2836_v4  ;;  %v1988_v40 = vld [vmem:[%s3515_s1 + $0x20] sm:$0xf]  ;;  %v2140_v63 = vld [vmem:[%s3515_s1 + $0x24] sm:$0xf]  ;;  %v2872_v0 = vor.u32 %v2145_v26, %v2014_v32 }
  0x2c   :  { %469 = vmatpush.bf16.msrb.mxu0 %v2746_v41  ;;  %3595 = vst [vmem:[#allocation16_spill] sm:$0xff] %v2854_v36  ;;  %v1990_v1 = vld [vmem:[%s3515_s1 + $0x30] sm:$0xf0]  ;;  %v1996_v10 = vld [vmem:[%s3515_s1 + $0x28] sm:$0xf] }
  0x2d   :  { %482 = vmatpush.bf16.msrb.mxu1 %v2750_v42  ;;  %495 = vmatpush.bf16.msrb.mxu2 %v2752_v47  ;;  %3596 = vst [vmem:[#allocation17_spill] sm:$0xff] %v2858_v37  ;;  %v2143_v22 = vld [vmem:[%s3515_s1 + $0x34] sm:$0xf0]  ;;  %v2141_v24 = vld [vmem:[%s3515_s1 + $0x2c] sm:$0xf] }
  0x2e   :  { %508 = vmatpush.bf16.msrb.mxu3 %v2764_v54  ;;  %3597 = vst [vmem:[#allocation18_spill] sm:$0xff] %v2860_v39  ;;  %v1998_v26 = vld [vmem:[%s3515_s1 + $0x38] sm:$0xf0] }
  0x2f   :  { %3598 = vst [vmem:[#allocation19_spill] sm:$0xff] %v2872_v0 }
  0x30   :  { %470 = vmatpush.bf16.msrb.mxu0 %v2782_v11 }
  0x31   :  { %483 = vmatpush.bf16.msrb.mxu1 %v2786_v13  ;;  %496 = vmatpush.bf16.msrb.mxu2 %v2788_v15 }
  0x32   :  { %509 = vmatpush.bf16.msrb.mxu3 %v2800_v31  ;;  %v2142_v31 = vld [vmem:[%s3515_s1 + $0x2c] sm:$0xf0] }
  0x33   :  { %v2890_v32 = vor.u32 %v2142_v31, %v1988_v40  ;;  %v2136_v31 = vld [vmem:[%s3515_s1 + $0x4] sm:$0xf]  ;;  %v2908_v40 = vor.u32 %v2141_v24, %v1998_v26  ;;  %v1982_v24 = vld [vmem:[%s3515_s1 + $0x18] sm:$0xf0] }
  0x34   :  { %471 = vmatpush.bf16.msrb.mxu0 %v2818_v48  ;;  %v2138_v48 = vld [vmem:[%s3515_s1 + $0xc] sm:$0xf0] }
  0x35   :  { %484 = vmatpush.bf16.msrb.mxu1 %v2822_v49  ;;  %497 = vmatpush.bf16.msrb.mxu2 %v2824_v53  ;;  %3599 = vst [vmem:[#allocation20_spill] sm:$0xff] %v2890_v32  ;;  %v2896_v53 = vor.u32 %v2143_v22, %v1996_v10  ;;  %v1972_v49 = vld [vmem:[%s3515_s1] sm:$0xf]  ;;  %v2139_v10 = vld [vmem:[%s3515_s1 + $0x14] sm:$0xf0] }
  0x36   :  { %510 = vmatpush.bf16.msrb.mxu3 %v2836_v4  ;;  %v2894_v4 = vor.u32 %v2140_v63, %v1990_v1  ;;  %3602 = vst [vmem:[#allocation23_spill] sm:$0xff] %v2908_v40  ;;  %v1974_v63 = vld [vmem:[%s3515_s1 + $0x10] sm:$0xf0]  ;;  %v1980_v1 = vld [vmem:[%s3515_s1 + $0x8] sm:$0xf]  ;;  %v2926_v26 = vor.u32 %v2138_v48, %v1972_v49 }
  0x37   :  { %3601 = vst [vmem:[#allocation22_spill] sm:$0xff] %v2896_v53  ;;  %v2137_v22 = vld [vmem:[%s3515_s1 + $0xc] sm:$0xf]  ;;  %v3608_v49 = vld [vmem:[#allocation12_spill] sm:$0xff] }
  0x38   :  { %472 = vmatpush.bf16.msrb.mxu0 %v2854_v36  ;;  %3600 = vst [vmem:[#allocation21_spill] sm:$0xff] %v2894_v4  ;;  %v3607_v48 = vld [vmem:[#allocation11_spill] sm:$0xff] }
  0x39   :  { %485 = vmatpush.bf16.msrb.mxu1 %v2858_v37  ;;  %498 = vmatpush.bf16.msrb.mxu2 %v2860_v39  ;;  %3603 = vst [vmem:[#allocation24_spill] sm:$0xff] %v2926_v26  ;;  %v2932_v39 = vor.u32 %v2139_v10, %v1980_v1  ;;  %v2935_v37 = vor.u32 %v2137_v22, %v1982_v24  ;;  %v3612_v1 = vld [vmem:[#allocation17_spill] sm:$0xff]  ;;  %v3613_v10 = vld [vmem:[#allocation18_spill] sm:$0xff]  ;;  %v3614_v22 = vld [vmem:[#allocation19_spill] sm:$0xff] }
  0x3a   :  { %511 = vmatpush.bf16.msrb.mxu3 %v2872_v0  ;;  %v2930_v0 = vor.u32 %v2136_v31, %v1974_v63  ;;  %v3610_v31 = vld [vmem:[#allocation14_spill] sm:$0xff]  ;;  %v3611_v63 = vld [vmem:[#allocation15_spill] sm:$0xff] }
  0x3b   :  { %3605 = vst [vmem:[#allocation26_spill] sm:$0xff] %v2932_v39 }
  0x3c   :  { %473 = vmatpush.bf16.msrb.mxu0 %v2890_v32  ;;  %3604 = vst [vmem:[#allocation25_spill] sm:$0xff] %v2930_v0  ;;  %v93_v32 = vld [vmem:[%s3516_s0] sm:$0xf]  ;;  %v3615_v24 = vld [vmem:[#allocation20_spill] sm:$0xff] }
  0x3d   :  { %486 = vmatpush.bf16.msrb.mxu1 %v2894_v4  ;;  %499 = vmatpush.bf16.msrb.mxu2 %v2896_v53  ;;  %3606 = vst [vmem:[#allocation27_spill] sm:$0xff] %v2935_v37 }
  0x3e   :  { %512 = vmatpush.bf16.msrb.mxu3 %v2908_v40 }
  0x40   :  { %474 = vmatpush.bf16.msrb.mxu0 %v2926_v26 }
  0x41   :  { %487 = vmatpush.bf16.msrb.mxu1 %v2930_v0  ;;  %500 = vmatpush.bf16.msrb.mxu2 %v2932_v39 }
  0x42   :  { %513 = vmatpush.bf16.msrb.mxu3 %v2935_v37 }
  0x43   :  { %475 = vmatmul.bf16.vlgmr.msrb.gmra.mxu0 %v93_v32 }
  0x44   :  { %599 = vmatpush.bf16.msra.mxu0 %v2374_v3  ;;  %488 = vmatmul.bf16.vlgmr.msrb.gmra.mxu1 %v93_v32 }
  0x45   :  { %612 = vmatpush.bf16.msra.mxu1 %v2385_v7  ;;  %501 = vmatmul.bf16.vlgmr.msrb.gmra.mxu2 %v93_v32 }
  0x46   :  { %514 = vmatmul.bf16.vlgmr.msrb.gmra.mxu3 %v93_v32  ;;  %625 = vmatpush.bf16.msra.mxu2 %v2387_v8  ;;  %v3609_v32 = vld [vmem:[#allocation13_spill] sm:$0xff] }
  0x47   :  { %638 = vmatpush.bf16.msra.mxu3 %v2399_v12 }
  0x48   :  { %600 = vmatpush.bf16.msra.mxu0 %v2412_v16 }
  0x49   :  { %613 = vmatpush.bf16.msra.mxu1 %v2414_v17 }
  0x4a   :  { %626 = vmatpush.bf16.msra.mxu2 %v2426_v21 }
  0x4b   :  { %639 = vmatpush.bf16.msra.mxu3 %v2437_v25 }
  0x4c   :  { %601 = vmatpush.bf16.msra.mxu0 %v2449_v29 }
  0x4d   :  { %614 = vmatpush.bf16.msra.mxu1 %v2462_v33 }
  0x4e   :  { %627 = vmatpush.bf16.msra.mxu2 %v2464_v34 }
  0x4f   :  { %640 = vmatpush.bf16.msra.mxu3 %v2476_v38 }
  0x50   :  { %602 = vmatpush.bf16.msra.mxu0 %v2494_v44 }
  0x51   :  { %615 = vmatpush.bf16.msra.mxu1 %v2498_v45 }
  0x52   :  { %628 = vmatpush.bf16.msra.mxu2 %v2500_v46 }
  0x53   :  { %641 = vmatpush.bf16.msra.mxu3 %v2512_v50 }
  0x54   :  { %603 = vmatpush.bf16.msra.mxu0 %v2530_v56 }
  0x55   :  { %616 = vmatpush.bf16.msra.mxu1 %v2534_v57 }
  0x56   :  { %629 = vmatpush.bf16.msra.mxu2 %v2536_v58 }
  0x57   :  { %642 = vmatpush.bf16.msra.mxu3 %v2548_v62 }
  0x58   :  { %604 = vmatpush.bf16.msra.mxu0 %v2566_v5 }
  0x59   :  { %617 = vmatpush.bf16.msra.mxu1 %v2570_v6 }
  0x5a   :  { %630 = vmatpush.bf16.msra.mxu2 %v2572_v9 }
  0x5b   :  { %643 = vmatpush.bf16.msra.mxu3 %v2584_v14 }
  0x5c   :  { %605 = vmatpush.bf16.msra.mxu0 %v2602_v23 }
  0x5d   :  { %618 = vmatpush.bf16.msra.mxu1 %v2612_v27 }
  0x5e   :  { %631 = vmatpush.bf16.msra.mxu2 %v2614_v28 }
  0x5f   :  { %644 = vmatpush.bf16.msra.mxu3 %v2626_v35 }
  0x60   :  { %606 = vmatpush.bf16.msra.mxu0 %v2647_v43 }
  0x61   :  { %619 = vmatpush.bf16.msra.mxu1 %v2660_v51 }
  0x62   :  { %632 = vmatpush.bf16.msra.mxu2 %v2662_v52 }
  0x63   :  { %645 = vmatpush.bf16.msra.mxu3 %v2671_v55 }
  0x64   :  { %651 = vmatpush.bf16.msrb.mxu0 %v2673_v59 }
  0x65   :  { %664 = vmatpush.bf16.msrb.mxu1 %v2675_v60 }
  0x66   :  { %677 = vmatpush.bf16.msrb.mxu2 %v2677_v61 }
  0x67   :  { %690 = vmatpush.bf16.msrb.mxu3 %v2689_v2 }
  0x68   :  { %652 = vmatpush.bf16.msrb.mxu0 %v2710_v18 }
  0x69   :  { %665 = vmatpush.bf16.msrb.mxu1 %v2714_v19 }
  0x6a   :  { %678 = vmatpush.bf16.msrb.mxu2 %v2716_v20 }
  0x6b   :  { %691 = vmatpush.bf16.msrb.mxu3 %v2728_v30 }
  0x6c   :  { %653 = vmatpush.bf16.msrb.mxu0 %v2746_v41 }
  0x6d   :  { %666 = vmatpush.bf16.msrb.mxu1 %v2750_v42 }
  0x6e   :  { %679 = vmatpush.bf16.msrb.mxu2 %v2752_v47 }
  0x6f   :  { %692 = vmatpush.bf16.msrb.mxu3 %v2764_v54 }
  0x70   :  { %654 = vmatpush.bf16.msrb.mxu0 %v2782_v11 }
  0x71   :  { %667 = vmatpush.bf16.msrb.mxu1 %v2786_v13 }
  0x72   :  { %680 = vmatpush.bf16.msrb.mxu2 %v2788_v15 }
  0x73   :  { %693 = vmatpush.bf16.msrb.mxu3 %v3607_v48 }
  0x74   :  { %655 = vmatpush.bf16.msrb.mxu0 %v3608_v49 }
  0x75   :  { %668 = vmatpush.bf16.msrb.mxu1 %v3609_v32 }
  0x76   :  { %681 = vmatpush.bf16.msrb.mxu2 %v3610_v31 }
  0x77   :  { %694 = vmatpush.bf16.msrb.mxu3 %v3611_v63 }
  0x78   :  { %656 = vmatpush.bf16.msrb.mxu0 %v2854_v36 }
  0x79   :  { %669 = vmatpush.bf16.msrb.mxu1 %v3612_v1 }
  0x7a   :  { %682 = vmatpush.bf16.msrb.mxu2 %v3613_v10 }
  0x7b   :  { %695 = vmatpush.bf16.msrb.mxu3 %v3614_v22 }
  0x7c   :  { %657 = vmatpush.bf16.msrb.mxu0 %v3615_v24 }
  0x7d   :  { %670 = vmatpush.bf16.msrb.mxu1 %v2894_v4 }
  0x7e   :  { %683 = vmatpush.bf16.msrb.mxu2 %v2896_v53 }
  0x7f   :  { %696 = vmatpush.bf16.msrb.mxu3 %v2908_v40  ;;  %v90_v40 = vld [vmem:[%s3517_s3] sm:$0xf] }
  0x80   :  { %658 = vmatpush.bf16.msrb.mxu0 %v2926_v26  ;;  %v3011_v53 = vperm.slane %v90_v40, 0 }
  0x81   :  { %671 = vmatpush.bf16.msrb.mxu1 %v2930_v0  ;;  %v3013_v0 = vperm.slane %v90_v40, 1 }
  0x82   :  { %684 = vmatpush.bf16.msrb.mxu2 %v2932_v39  ;;  %3616 = vst [vmem:[#allocation28_spill] sm:$0xff] %v3011_v53 }
  0x83   :  { %697 = vmatpush.bf16.msrb.mxu3 %v2935_v37  ;;  %3617 = vst [vmem:[#allocation29_spill] sm:$0xff] %v3013_v0 }
  0xa0   :  { %v264_v1 = vpop.f32.mrf.mxu0 }
  0xa1   :  { %v277_v10 = vpop.f32.mrf.mxu1 }
  0xa8   :  { %v266_v22 = vpop.f32.mrf.mxu0 }
  0xa9   :  { %v290_v63 = vpop.f32.mrf.mxu2  ;;  %v279_v24 = vpop.f32.mrf.mxu1 }
  0xaa   :  { %v303_v36 = vpop.f32.mrf.mxu3 }
  0xb1   :  { %v292_v4 = vpop.f32.mrf.mxu2 }
  0xb2   :  { %v305_v31 = vpop.f32.mrf.mxu3 }
  0xb3   :  { %v3017_v31 = vperm.slane %v90_v40, 3 }
  0xb5   :  { %3618 = vst [vmem:[#allocation30_spill] sm:$0xff] %v3017_v31 }
  0xc0   :  { %v476_v26 = vpop.f32.mrf.mxu0 }
  0xc1   :  { %v477_v39 = vadd.f32 %v476_v26, %v264_v1  ;;  %v489_v32 = vpop.f32.mrf.mxu1 }
  0xc2   :  { %v490_v37 = vadd.f32 %v489_v32, %v277_v10 }
  0xc3   :  { %v528_v49 = vadd.f32 %v3011_v53, %v477_v39 }
  0xc4   :  { %v529_v22 = vadd.f32 %v3013_v0, %v490_v37 }
  0xc5   :  { %v2098_v48 = vmul.f32 -1.442695, %v528_v49 }
  0xc6   :  { %v2099_v24 = vmul.f32 -1.442695, %v529_v22  ;;  %v3020_v22 = vperm.slane %v90_v40, 2 }
  0xc7   :  { %2201 = vpow2.f32 %v2098_v48 }
  0xc8   :  { %v502_v4 = vpop.f32.mrf.mxu2  ;;  %2203 = vpow2.f32 %v2099_v24  ;;  %v478_v13 = vpop.f32.mrf.mxu0  ;;  %3619 = vst [vmem:[#allocation31_spill] sm:$0xff] %v3020_v22 }
  0xc9   :  { %v515_v15 = vpop.f32.mrf.mxu3  ;;  %v491_v54 = vpop.f32.mrf.mxu1  ;;  %v503_v48 = vadd.f32 %v502_v4, %v290_v63 }
  0xca   :  { %v516_v11 = vadd.f32 %v515_v15, %v303_v36 }
  0xcb   :  { %v530_v13 = vadd.f32 %v3020_v22, %v503_v48 }
  0xcc   :  { %v531_v47 = vadd.f32 %v3017_v31, %v516_v11 }
  0xcd   :  { %v2202_v26 = vpop.eup %2201 }
  0xce   :  { %v2100_v1 = vmul.f32 -1.442695, %v531_v47  ;;  %v2204_v32 = vpop.eup %2203  ;;  %v535_v10 = vadd.f32 1.0, %v2202_v26 }
  0xcf   :  { %v554_v39 = vadd.f32 1.0, %v2204_v32 }
  0xd0   :  { %2205 = vpow2.f32 %v2100_v1  ;;  %v504_v37 = vpop.f32.mrf.mxu2  ;;  %v547_v32 = vand.u32 2147483648, %v535_v10  ;;  %vm541_vm2 = vweird.f32 %v535_v10 }
  0xd1   :  { %2207 = vrcp.f32 %v535_v10  ;;  %v517_v49 = vpop.f32.mrf.mxu3  ;;  %v566_v1 = vand.u32 2147483648, %v554_v39  ;;  %v564_v40 = vand.u32 2147483647, %v554_v39  ;;  %vm560_vm3 = vweird.f32 %v554_v39 }
  0xd2   :  { %2209 = vrcp.f32 %v554_v39  ;;  %v545_v49 = vand.u32 2147483647, %v535_v10  ;;  %v548_v48 = vor.u32 1.1754944e-38, %v547_v32 }
  0xd3   :  { %v567_v22 = vor.u32 1.1754944e-38, %v566_v1  ;;  %vm565_vm7 = vcmp.eq.f32.partialorder %v564_v40, 8.507059e+37  ;;  %v3624_v40 = vld [vmem:[#allocation7_spill] sm:$0xff] }
  0xd4   :  { %vm546_vm6 = vcmp.eq.f32.partialorder %v545_v49, 8.507059e+37 }
  0xd6   :  { %v2206_v24 = vpop.eup %2205 }
  0xd7   :  { %v2208_v0 = vpop.eup %2207  ;;  %v574_v54 = vadd.f32 1.0, %v2206_v24 }
  0xd8   :  { %v2210_v15 = vpop.eup %2209  ;;  %v537_v11 = vmul.f32 %v2208_v0, %v535_v10  ;;  %vm542_vm0 = vweird.f32 %v2208_v0 }
  0xd9   :  { %v556_v36 = vmul.f32 %v2210_v15, %v554_v39  ;;  %2211 = vrcp.f32 %v574_v54  ;;  %vm561_vm1 = vweird.f32 %v2210_v15  ;;  %vm543_vm4 = vmor %vm541_vm2, %vm542_vm0  ;;  %v586_v32 = vand.u32 2147483648, %v574_v54 }
  0xda   :  { %v538_v47 = vsub.f32 1.0, %v537_v11  ;;  %2213 = vtanh.f32 %v530_v13  ;;  %vm562_vm5 = vmor %vm560_vm3, %vm561_vm1  ;;  %vm580_vm9 = vweird.f32 %v574_v54 }
  0xdb   :  { %v557_v26 = vsub.f32 1.0, %v556_v36  ;;  %v587_v49 = vor.u32 1.1754944e-38, %v586_v32  ;;  %v3635_v32 = vld [vmem:[#allocation18_spill] sm:$0xff] }
  0xdc   :  { %v539_v37 = vmul.f32 %v2208_v0, %v538_v47 }
  0xdd   :  { %v558_v63 = vmul.f32 %v2210_v15, %v557_v26 }
  0xde   :  { %v540_v4 = vadd.f32 %v2208_v0, %v539_v37 }
  0xdf   :  { %v2212_v31 = vpop.eup %2211  ;;  %v559_v24 = vadd.f32 %v2210_v15, %v558_v63 }
  0xe0   :  { %v544_v11 = vsel %vm543_vm4, %v2208_v0, %v540_v4  ;;  %v576_v36 = vmul.f32 %v2212_v31, %v574_v54  ;;  %v2214_v13 = vpop.eup %2213  ;;  %vm581_vm8 = vweird.f32 %v2212_v31  ;;  %v584_v0 = vand.u32 2147483647, %v574_v54  ;;  %v3623_v54 = vld [vmem:[#allocation6_spill] sm:$0xff]  ;;  %v3625_v4 = vld [vmem:[#allocation8_spill] sm:$0xff] }
  0xe1   :  { %v549_v53 = vsel %vm546_vm6, %v548_v48, %v544_v11  ;;  %v563_v47 = vsel %vm562_vm5, %v2210_v15, %v559_v24  ;;  %vm582_vm10 = vmor %vm580_vm9, %vm581_vm8  ;;  %v3626_v48 = vld [vmem:[#allocation9_spill] sm:$0xff]  ;;  %v3627_v24 = vld [vmem:[#allocation10_spill] sm:$0xff] }
  0xe2   :  { %v568_v42 = vsel %vm565_vm7, %v567_v22, %v563_v47  ;;  %v591_v26 = vmul.f32 %v2214_v13, %v549_v53  ;;  %v577_v41 = vsub.f32 1.0, %v576_v36  ;;  %vm585_vm11 = vcmp.eq.f32.partialorder %v584_v0, 8.507059e+37  ;;  %v3621_v53 = vld [vmem:[#allocation4_spill] sm:$0xff]  ;;  %v3628_v11 = vld [vmem:[#allocation11_spill] sm:$0xff]  ;;  %v3630_v13 = vld [vmem:[#allocation13_spill] sm:$0xff] }
  0xe3   :  { %v590_v30 = vmul.f32 0.0, %v568_v42  ;;  %v3620_v42 = vld [vmem:[#allocation3_spill] sm:$0xff]  ;;  %v3629_v36 = vld [vmem:[#allocation12_spill] sm:$0xff]  ;;  %v3631_v47 = vld [vmem:[#allocation14_spill] sm:$0xff] }
  0xe4   :  { %v578_v37 = vmul.f32 %v2212_v31, %v577_v41  ;;  %v2101_v41 = vld [vmem:[%s3516_s0 + $0x4] sm:$0xf]  ;;  %v3636_v0 = vld [vmem:[#allocation19_spill] sm:$0xff] }
  0xe5   :  { %v3023_v10 = vadd.f32 %v591_v26, %v590_v30  ;;  %v3632_v26 = vld [vmem:[#allocation15_spill] sm:$0xff] }
  0xe6   :  { %v579_v39 = vadd.f32 %v2212_v31, %v578_v37  ;;  %v3633_v37 = vld [vmem:[#allocation16_spill] sm:$0xff] }
  0xe7   :  { %2215 = vtanh.f32 %v3023_v10 }
  0xe8   :  { %v583_v1 = vsel %vm582_vm10, %v2212_v31, %v579_v39  ;;  %v3622_v31 = vld [vmem:[#allocation5_spill] sm:$0xff] }
  0xe9   :  { %v588_v63 = vsel %vm585_vm11, %v587_v49, %v583_v1  ;;  %v3634_v39 = vld [vmem:[#allocation17_spill] sm:$0xff]  ;;  %v3637_v1 = vld [vmem:[#allocation20_spill] sm:$0xff] }
  0xea   :  { %v3638_v49 = vld [vmem:[#allocation21_spill] sm:$0xff] }
  0xed   :  { %v2216_v15 = vpop.eup %2215 }
  0xee   :  { %v594_v22 = vmul.f32 %v2216_v15, %v588_v63  ;;  %v3639_v15 = vld [vmem:[#allocation22_spill] sm:$0xff]  ;;  %v3640_v63 = vld [vmem:[#allocation23_spill] sm:$0xff] }
  0xf0   :  { %595 = vst [vmem:[%s3518_s4] sm:$0xff] %v594_v22  ;;  %v598_v30 = vpack.c.bf16 %v594_v22, %v594_v22  ;;  %v3641_v22 = vld [vmem:[#allocation24_spill] sm:$0xff] }
  0xf2   :  { %607 = vmatmul.bf16.vlgmr.msra.gmra.mxu0 %v598_v30  ;;  %620 = vmatmul.bf16.vlgmr.msra.gmra.mxu1 %v598_v30 }
  0xf3   :  { %633 = vmatmul.bf16.vlgmr.msra.gmra.mxu2 %v598_v30  ;;  %646 = vmatmul.bf16.vlgmr.msra.gmra.mxu3 %v598_v30  ;;  %v3642_v30 = vld [vmem:[#allocation25_spill] sm:$0xff] }
  0xf4   :  { %775 = vmatpush.bf16.msra.mxu0 %v2374_v3  ;;  %788 = vmatpush.bf16.msra.mxu1 %v2385_v7 }
  0xf5   :  { %801 = vmatpush.bf16.msra.mxu2 %v2387_v8  ;;  %814 = vmatpush.bf16.msra.mxu3 %v2399_v12 }
  0xf8   :  { %776 = vmatpush.bf16.msra.mxu0 %v2412_v16  ;;  %789 = vmatpush.bf16.msra.mxu1 %v2414_v17 }
  0xf9   :  { %802 = vmatpush.bf16.msra.mxu2 %v2426_v21  ;;  %815 = vmatpush.bf16.msra.mxu3 %v2437_v25 }
  0xfc   :  { %777 = vmatpush.bf16.msra.mxu0 %v2449_v29  ;;  %790 = vmatpush.bf16.msra.mxu1 %v2462_v33 }
  0xfd   :  { %803 = vmatpush.bf16.msra.mxu2 %v2464_v34  ;;  %816 = vmatpush.bf16.msra.mxu3 %v2476_v38 }
 0x100   :  { %778 = vmatpush.bf16.msra.mxu0 %v2494_v44  ;;  %791 = vmatpush.bf16.msra.mxu1 %v2498_v45 }
 0x101   :  { %804 = vmatpush.bf16.msra.mxu2 %v2500_v46  ;;  %817 = vmatpush.bf16.msra.mxu3 %v2512_v50 }
 0x102   :  { %659 = vmatmul.bf16.vlgmr.msrb.gmra.mxu0 %v2101_v41  ;;  %672 = vmatmul.bf16.vlgmr.msrb.gmra.mxu1 %v2101_v41 }
 0x103   :  { %685 = vmatmul.bf16.vlgmr.msrb.gmra.mxu2 %v2101_v41  ;;  %698 = vmatmul.bf16.vlgmr.msrb.gmra.mxu3 %v2101_v41  ;;  %v3643_v41 = vld [vmem:[#allocation26_spill] sm:$0xff] }
 0x104   :  { %779 = vmatpush.bf16.msra.mxu0 %v2530_v56  ;;  %792 = vmatpush.bf16.msra.mxu1 %v2534_v57 }
 0x105   :  { %805 = vmatpush.bf16.msra.mxu2 %v2536_v58  ;;  %818 = vmatpush.bf16.msra.mxu3 %v2548_v62 }
 0x108   :  { %780 = vmatpush.bf16.msra.mxu0 %v2566_v5  ;;  %793 = vmatpush.bf16.msra.mxu1 %v2570_v6 }
 0x109   :  { %806 = vmatpush.bf16.msra.mxu2 %v2572_v9  ;;  %819 = vmatpush.bf16.msra.mxu3 %v2584_v14 }
 0x10c   :  { %781 = vmatpush.bf16.msra.mxu0 %v2602_v23  ;;  %794 = vmatpush.bf16.msra.mxu1 %v2612_v27 }
 0x10d   :  { %807 = vmatpush.bf16.msra.mxu2 %v2614_v28  ;;  %820 = vmatpush.bf16.msra.mxu3 %v2626_v35 }
 0x110   :  { %782 = vmatpush.bf16.msra.mxu0 %v2647_v43  ;;  %795 = vmatpush.bf16.msra.mxu1 %v2660_v51 }
 0x111   :  { %808 = vmatpush.bf16.msra.mxu2 %v2662_v52  ;;  %821 = vmatpush.bf16.msra.mxu3 %v2671_v55 }
 0x114   :  { %827 = vmatpush.bf16.msrb.mxu0 %v2673_v59  ;;  %840 = vmatpush.bf16.msrb.mxu1 %v2675_v60 }
 0x115   :  { %853 = vmatpush.bf16.msrb.mxu2 %v2677_v61  ;;  %866 = vmatpush.bf16.msrb.mxu3 %v2689_v2 }
 0x118   :  { %828 = vmatpush.bf16.msrb.mxu0 %v2710_v18  ;;  %841 = vmatpush.bf16.msrb.mxu1 %v2714_v19 }
 0x119   :  { %854 = vmatpush.bf16.msrb.mxu2 %v2716_v20  ;;  %867 = vmatpush.bf16.msrb.mxu3 %v3620_v42 }
 0x11c   :  { %829 = vmatpush.bf16.msrb.mxu0 %v3621_v53  ;;  %842 = vmatpush.bf16.msrb.mxu1 %v3622_v31 }
 0x11d   :  { %855 = vmatpush.bf16.msrb.mxu2 %v3623_v54  ;;  %868 = vmatpush.bf16.msrb.mxu3 %v3624_v40 }
 0x120   :  { %830 = vmatpush.bf16.msrb.mxu0 %v3625_v4  ;;  %843 = vmatpush.bf16.msrb.mxu1 %v3626_v48  ;;  %v3646_v48 = vld [vmem:[#allocation29_spill] sm:$0xff] }
 0x121   :  { %856 = vmatpush.bf16.msrb.mxu2 %v3627_v24  ;;  %869 = vmatpush.bf16.msrb.mxu3 %v3628_v11  ;;  %v3645_v24 = vld [vmem:[#allocation28_spill] sm:$0xff] }
 0x124   :  { %831 = vmatpush.bf16.msrb.mxu0 %v3629_v36  ;;  %844 = vmatpush.bf16.msrb.mxu1 %v3630_v13 }
 0x125   :  { %857 = vmatpush.bf16.msrb.mxu2 %v3631_v47  ;;  %870 = vmatpush.bf16.msrb.mxu3 %v3632_v26 }
 0x128   :  { %832 = vmatpush.bf16.msrb.mxu0 %v3633_v37  ;;  %845 = vmatpush.bf16.msrb.mxu1 %v3634_v39  ;;  %v3644_v37 = vld [vmem:[#allocation27_spill] sm:$0xff] }
 0x129   :  { %858 = vmatpush.bf16.msrb.mxu2 %v3635_v32  ;;  %871 = vmatpush.bf16.msrb.mxu3 %v3636_v0 }
 0x12c   :  { %833 = vmatpush.bf16.msrb.mxu0 %v3637_v1  ;;  %846 = vmatpush.bf16.msrb.mxu1 %v3638_v49 }
 0x12d   :  { %859 = vmatpush.bf16.msrb.mxu2 %v3639_v15  ;;  %872 = vmatpush.bf16.msrb.mxu3 %v3640_v63 }
 0x130   :  { %834 = vmatpush.bf16.msrb.mxu0 %v3641_v22  ;;  %847 = vmatpush.bf16.msrb.mxu1 %v3642_v30 }
 0x131   :  { %860 = vmatpush.bf16.msrb.mxu2 %v3643_v41  ;;  %873 = vmatpush.bf16.msrb.mxu3 %v3644_v37 }
 0x16f   :  { %v608_v39 = vpop.f32.mrf.mxu0  ;;  %v621_v32 = vpop.f32.mrf.mxu1 }
 0x176   :  { %v634_v26 = vpop.f32.mrf.mxu2  ;;  %v647_v0 = vpop.f32.mrf.mxu3 }
 0x177   :  { %v610_v47 = vpop.f32.mrf.mxu0  ;;  %v623_v1 = vpop.f32.mrf.mxu1 }
 0x178   :  { %v3647_v1 = vld [vmem:[#allocation30_spill] sm:$0xff] }
 0x17e   :  { %v636_v13 = vpop.f32.mrf.mxu2  ;;  %v649_v49 = vpop.f32.mrf.mxu3 }
 0x17f   :  { %v660_v36 = vpop.f32.mrf.mxu0  ;;  %v673_v15 = vpop.f32.mrf.mxu1 }
 0x180   :  { %v661_v11 = vadd.f32 %v660_v36, %v608_v39  ;;  %v674_v63 = vadd.f32 %v673_v15, %v621_v32 }
 0x182   :  { %v703_v22 = vadd.f32 %v661_v11, %v3645_v24  ;;  %v704_v30 = vadd.f32 %v674_v63, %v3646_v48 }
 0x184   :  { %v2102_v4 = vmul.f32 -1.442695, %v703_v22  ;;  %v2103_v41 = vmul.f32 -1.442695, %v704_v30  ;;  %v3648_v30 = vld [vmem:[#allocation31_spill] sm:$0xff] }
 0x186   :  { %2217 = vpow2.f32 %v2102_v4  ;;  %v686_v37 = vpop.f32.mrf.mxu2  ;;  %v699_v40 = vpop.f32.mrf.mxu3 }
 0x187   :  { %2219 = vpow2.f32 %v2103_v41  ;;  %v700_v54 = vadd.f32 %v699_v40, %v647_v0  ;;  %v662_v31 = vpop.f32.mrf.mxu0  ;;  %v675_v47 = vpop.f32.mrf.mxu1  ;;  %v687_v15 = vadd.f32 %v686_v37, %v634_v26 }
 0x189   :  { %v706_v13 = vadd.f32 %v700_v54, %v3647_v1  ;;  %v705_v40 = vadd.f32 %v687_v15, %v3648_v30 }
 0x18b   :  { %v2104_v49 = vmul.f32 -1.442695, %v706_v13 }
 0x18c   :  { %v2218_v53 = vpop.eup %2217 }
 0x18d   :  { %v2220_v42 = vpop.eup %2219  ;;  %v710_v36 = vadd.f32 1.0, %v2218_v53  ;;  %2221 = vpow2.f32 %v2104_v49 }
 0x18e   :  { %v729_v39 = vadd.f32 1.0, %v2220_v42  ;;  %v701_v11 = vpop.f32.mrf.mxu3  ;;  %v688_v32 = vpop.f32.mrf.mxu2 }
 0x18f   :  { %2223 = vrcp.f32 %v710_v36  ;;  %v722_v13 = vand.u32 2147483648, %v710_v36  ;;  %v720_v49 = vand.u32 2147483647, %v710_v36  ;;  %vm716_vm14 = vweird.f32 %v710_v36 }
 0x190   :  { %2225 = vrcp.f32 %v729_v39  ;;  %v741_v53 = vand.u32 2147483648, %v729_v39  ;;  %v739_v26 = vand.u32 2147483647, %v729_v39  ;;  %vm735_vm15 = vweird.f32 %v729_v39 }
 0x191   :  { %v723_v15 = vor.u32 1.1754944e-38, %v722_v13  ;;  %vm721_vm2 = vcmp.eq.f32.partialorder %v720_v49, 8.507059e+37 }
 0x192   :  { %vm740_vm3 = vcmp.eq.f32.partialorder %v739_v26, 8.507059e+37  ;;  %v3653_v26 = vld [vmem:[#allocation6_spill] sm:$0xff] }
 0x193   :  { %v2222_v4 = vpop.eup %2221 }
 0x194   :  { %v749_v63 = vadd.f32 1.0, %v2222_v4 }
 0x195   :  { %v2224_v22 = vpop.eup %2223 }
 0x196   :  { %v2226_v31 = vpop.eup %2225  ;;  %v712_v0 = vmul.f32 %v2224_v22, %v710_v36  ;;  %2227 = vrcp.f32 %v749_v63  ;;  %vm717_vm12 = vweird.f32 %v2224_v22  ;;  %v761_v13 = vand.u32 2147483648, %v749_v63 }
 0x197   :  { %v731_v54 = vmul.f32 %v2226_v31, %v729_v39  ;;  %2229 = vtanh.f32 %v705_v40  ;;  %vm736_vm13 = vweird.f32 %v2226_v31  ;;  %vm718_vm0 = vmor %vm716_vm14, %vm717_vm12  ;;  %vm755_vm5 = vweird.f32 %v749_v63 }
 0x198   :  { %v713_v41 = vsub.f32 1.0, %v712_v0  ;;  %vm737_vm1 = vmor %vm735_vm15, %vm736_vm13  ;;  %v742_v0 = vor.u32 1.1754944e-38, %v741_v53  ;;  %v762_v49 = vor.u32 1.1754944e-38, %v761_v13  ;;  %v3665_v13 = vld [vmem:[#allocation18_spill] sm:$0xff] }
 0x199   :  { %v732_v47 = vsub.f32 1.0, %v731_v54 }
 0x19a   :  { %v714_v42 = vmul.f32 %v2224_v22, %v713_v41 }
 0x19b   :  { %v733_v11 = vmul.f32 %v2226_v31, %v732_v47 }
 0x19c   :  { %v2228_v37 = vpop.eup %2227  ;;  %v715_v32 = vadd.f32 %v2224_v22, %v714_v42 }
 0x19d   :  { %v734_v4 = vadd.f32 %v2226_v31, %v733_v11  ;;  %v751_v30 = vmul.f32 %v2228_v37, %v749_v63  ;;  %v2230_v40 = vpop.eup %2229  ;;  %vm756_vm4 = vweird.f32 %v2228_v37 }
 0x19e   :  { %v719_v54 = vsel %vm718_vm0, %v2224_v22, %v715_v32  ;;  %v759_v22 = vand.u32 2147483647, %v749_v63  ;;  %vm757_vm6 = vmor %vm755_vm5, %vm756_vm4  ;;  %v3652_v63 = vld [vmem:[#allocation5_spill] sm:$0xff]  ;;  %v3655_v32 = vld [vmem:[#allocation8_spill] sm:$0xff] }
 0x19f   :  { %v724_v1 = vsel %vm721_vm2, %v723_v15, %v719_v54  ;;  %v738_v41 = vsel %vm737_vm1, %v2226_v31, %v734_v4  ;;  %v752_v48 = vsub.f32 1.0, %v751_v30  ;;  %v3656_v15 = vld [vmem:[#allocation9_spill] sm:$0xff]  ;;  %v3657_v4 = vld [vmem:[#allocation10_spill] sm:$0xff]  ;;  %v3659_v54 = vld [vmem:[#allocation12_spill] sm:$0xff] }
 0x1a0   :  { %v743_v47 = vsel %vm740_vm3, %v742_v0, %v738_v41  ;;  %v766_v24 = vmul.f32 %v2230_v40, %v724_v1  ;;  %vm760_vm7 = vcmp.eq.f32.partialorder %v759_v22, 8.507059e+37  ;;  %v3651_v1 = vld [vmem:[#allocation4_spill] sm:$0xff]  ;;  %v3658_v0 = vld [vmem:[#allocation11_spill] sm:$0xff]  ;;  %v3660_v40 = vld [vmem:[#allocation13_spill] sm:$0xff] }
 0x1a1   :  { %v765_v20 = vmul.f32 %v743_v47, %v3023_v10  ;;  %v753_v42 = vmul.f32 %v2228_v37, %v752_v48  ;;  %v2106_v10 = vld [vmem:[%s3516_s0 + $0x8] sm:$0xf]  ;;  %v3649_v48 = vld [vmem:[#allocation2_spill] sm:$0xff] }
 0x1a2   :  { %v3661_v41 = vld [vmem:[#allocation14_spill] sm:$0xff]  ;;  %v3662_v47 = vld [vmem:[#allocation15_spill] sm:$0xff] }
 0x1a3   :  { %v3101_v36 = vadd.f32 %v766_v24, %v765_v20  ;;  %v754_v39 = vadd.f32 %v2228_v37, %v753_v42  ;;  %v3650_v24 = vld [vmem:[#allocation3_spill] sm:$0xff]  ;;  %v3663_v42 = vld [vmem:[#allocation16_spill] sm:$0xff] }
 0x1a4   :  { %v3666_v22 = vld [vmem:[#allocation19_spill] sm:$0xff] }
 0x1a5   :  { %2231 = vtanh.f32 %v3101_v36  ;;  %v758_v53 = vsel %vm757_vm6, %v2228_v37, %v754_v39  ;;  %v3654_v37 = vld [vmem:[#allocation7_spill] sm:$0xff]  ;;  %v3664_v39 = vld [vmem:[#allocation17_spill] sm:$0xff] }
 0x1a6   :  { %v763_v30 = vsel %vm760_vm7, %v762_v49, %v758_v53  ;;  %v3667_v53 = vld [vmem:[#allocation20_spill] sm:$0xff]  ;;  %v3668_v49 = vld [vmem:[#allocation21_spill] sm:$0xff] }
 0x1ab   :  { %v2232_v31 = vpop.eup %2231 }
 0x1ac   :  { %v769_v11 = vmul.f32 %v2232_v31, %v763_v30  ;;  %v3669_v31 = vld [vmem:[#allocation22_spill] sm:$0xff]  ;;  %v3670_v30 = vld [vmem:[#allocation23_spill] sm:$0xff] }
 0x1ae   :  { %2105 = vst [vmem:[%s3518_s4 + $0x8] sm:$0xff] %v769_v11  ;;  %v774_v20 = vpack.c.bf16 %v769_v11, %v769_v11  ;;  %v3671_v11 = vld [vmem:[#allocation24_spill] sm:$0xff] }
 0x1b0   :  { %783 = vmatmul.bf16.vlgmr.msra.gmra.mxu0 %v774_v20  ;;  %796 = vmatmul.bf16.vlgmr.msra.gmra.mxu1 %v774_v20 }
 0x1b1   :  { %809 = vmatmul.bf16.vlgmr.msra.gmra.mxu2 %v774_v20  ;;  %822 = vmatmul.bf16.vlgmr.msra.gmra.mxu3 %v774_v20  ;;  %v3672_v20 = vld [vmem:[#allocation25_spill] sm:$0xff] }
 0x1b2   :  { %951 = vmatpush.bf16.msra.mxu0 %v2374_v3  ;;  %964 = vmatpush.bf16.msra.mxu1 %v2385_v7 }
 0x1b3   :  { %977 = vmatpush.bf16.msra.mxu2 %v2387_v8  ;;  %990 = vmatpush.bf16.msra.mxu3 %v2399_v12 }
 0x1b6   :  { %952 = vmatpush.bf16.msra.mxu0 %v2412_v16  ;;  %965 = vmatpush.bf16.msra.mxu1 %v2414_v17 }
 0x1b7   :  { %978 = vmatpush.bf16.msra.mxu2 %v2426_v21  ;;  %991 = vmatpush.bf16.msra.mxu3 %v2437_v25 }
 0x1ba   :  { %953 = vmatpush.bf16.msra.mxu0 %v2449_v29  ;;  %966 = vmatpush.bf16.msra.mxu1 %v2462_v33 }
 0x1bb   :  { %979 = vmatpush.bf16.msra.mxu2 %v2464_v34  ;;  %992 = vmatpush.bf16.msra.mxu3 %v2476_v38 }
 0x1be   :  { %954 = vmatpush.bf16.msra.mxu0 %v2494_v44  ;;  %967 = vmatpush.bf16.msra.mxu1 %v2498_v45 }
 0x1bf   :  { %980 = vmatpush.bf16.msra.mxu2 %v2500_v46  ;;  %993 = vmatpush.bf16.msra.mxu3 %v2512_v50 }
 0x1c0   :  { %835 = vmatmul.bf16.vlgmr.msrb.gmra.mxu0 %v2106_v10  ;;  %848 = vmatmul.bf16.vlgmr.msrb.gmra.mxu1 %v2106_v10 }
 0x1c1   :  { %861 = vmatmul.bf16.vlgmr.msrb.gmra.mxu2 %v2106_v10  ;;  %874 = vmatmul.bf16.vlgmr.msrb.gmra.mxu3 %v2106_v10  ;;  %v3673_v10 = vld [vmem:[#allocation26_spill] sm:$0xff] }
 0x1c2   :  { %955 = vmatpush.bf16.msra.mxu0 %v2530_v56  ;;  %968 = vmatpush.bf16.msra.mxu1 %v2534_v57 }
 0x1c3   :  { %981 = vmatpush.bf16.msra.mxu2 %v2536_v58  ;;  %994 = vmatpush.bf16.msra.mxu3 %v2548_v62 }
 0x1c6   :  { %956 = vmatpush.bf16.msra.mxu0 %v2566_v5  ;;  %969 = vmatpush.bf16.msra.mxu1 %v2570_v6 }
 0x1c7   :  { %982 = vmatpush.bf16.msra.mxu2 %v2572_v9  ;;  %995 = vmatpush.bf16.msra.mxu3 %v2584_v14 }
 0x1ca   :  { %957 = vmatpush.bf16.msra.mxu0 %v2602_v23  ;;  %970 = vmatpush.bf16.msra.mxu1 %v2612_v27 }
 0x1cb   :  { %983 = vmatpush.bf16.msra.mxu2 %v2614_v28  ;;  %996 = vmatpush.bf16.msra.mxu3 %v2626_v35 }
 0x1ce   :  { %958 = vmatpush.bf16.msra.mxu0 %v2647_v43  ;;  %971 = vmatpush.bf16.msra.mxu1 %v2660_v51 }
 0x1cf   :  { %984 = vmatpush.bf16.msra.mxu2 %v2662_v52  ;;  %997 = vmatpush.bf16.msra.mxu3 %v2671_v55 }
 0x1d2   :  { %1003 = vmatpush.bf16.msrb.mxu0 %v2673_v59  ;;  %1016 = vmatpush.bf16.msrb.mxu1 %v2675_v60 }
 0x1d3   :  { %1029 = vmatpush.bf16.msrb.mxu2 %v2677_v61  ;;  %1042 = vmatpush.bf16.msrb.mxu3 %v2689_v2 }
 0x1d6   :  { %1004 = vmatpush.bf16.msrb.mxu0 %v2710_v18  ;;  %1017 = vmatpush.bf16.msrb.mxu1 %v2714_v19 }
 0x1d7   :  { %1030 = vmatpush.bf16.msrb.mxu2 %v3649_v48  ;;  %1043 = vmatpush.bf16.msrb.mxu3 %v3650_v24 }
 0x1da   :  { %1005 = vmatpush.bf16.msrb.mxu0 %v3651_v1  ;;  %1018 = vmatpush.bf16.msrb.mxu1 %v3652_v63 }
 0x1db   :  { %1031 = vmatpush.bf16.msrb.mxu2 %v3653_v26  ;;  %1044 = vmatpush.bf16.msrb.mxu3 %v3654_v37 }
 0x1de   :  { %1006 = vmatpush.bf16.msrb.mxu0 %v3655_v32  ;;  %1019 = vmatpush.bf16.msrb.mxu1 %v3656_v15  ;;  %v3676_v15 = vld [vmem:[#allocation29_spill] sm:$0xff] }
 0x1df   :  { %1032 = vmatpush.bf16.msrb.mxu2 %v3657_v4  ;;  %1045 = vmatpush.bf16.msrb.mxu3 %v3658_v0  ;;  %v3675_v4 = vld [vmem:[#allocation28_spill] sm:$0xff] }
 0x1e2   :  { %1007 = vmatpush.bf16.msrb.mxu0 %v3659_v54  ;;  %1020 = vmatpush.bf16.msrb.mxu1 %v3660_v40 }
 0x1e3   :  { %1033 = vmatpush.bf16.msrb.mxu2 %v3661_v41  ;;  %1046 = vmatpush.bf16.msrb.mxu3 %v3662_v47 }
 0x1e6   :  { %1008 = vmatpush.bf16.msrb.mxu0 %v3663_v42  ;;  %1021 = vmatpush.bf16.msrb.mxu1 %v3664_v39  ;;  %v3674_v42 = vld [vmem:[#allocation27_spill] sm:$0xff] }
 0x1e7   :  { %1034 = vmatpush.bf16.msrb.mxu2 %v3665_v13  ;;  %1047 = vmatpush.bf16.msrb.mxu3 %v3666_v22 }
 0x1ea   :  { %1009 = vmatpush.bf16.msrb.mxu0 %v3667_v53  ;;  %1022 = vmatpush.bf16.msrb.mxu1 %v3668_v49 }
 0x1eb   :  { %1035 = vmatpush.bf16.msrb.mxu2 %v3669_v31  ;;  %1048 = vmatpush.bf16.msrb.mxu3 %v3670_v30 }
 0x1ee   :  { %1010 = vmatpush.bf16.msrb.mxu0 %v3671_v11  ;;  %1023 = vmatpush.bf16.msrb.mxu1 %v3672_v20 }
 0x1ef   :  { %1036 = vmatpush.bf16.msrb.mxu2 %v3673_v10  ;;  %1049 = vmatpush.bf16.msrb.mxu3 %v3674_v42 }
 0x22d   :  { %v784_v39 = vpop.f32.mrf.mxu0  ;;  %v797_v13 = vpop.f32.mrf.mxu1 }
 0x234   :  { %v810_v47 = vpop.f32.mrf.mxu2  ;;  %v823_v22 = vpop.f32.mrf.mxu3 }
 0x235   :  { %v786_v41 = vpop.f32.mrf.mxu0  ;;  %v799_v53 = vpop.f32.mrf.mxu1 }
 0x236   :  { %v3677_v53 = vld [vmem:[#allocation30_spill] sm:$0xff] }
 0x23c   :  { %v812_v40 = vpop.f32.mrf.mxu2  ;;  %v825_v49 = vpop.f32.mrf.mxu3 }
 0x23d   :  { %v836_v54 = vpop.f32.mrf.mxu0  ;;  %v849_v31 = vpop.f32.mrf.mxu1 }
 0x23e   :  { %v837_v0 = vadd.f32 %v836_v54, %v784_v39  ;;  %v850_v30 = vadd.f32 %v849_v31, %v797_v13 }
 0x240   :  { %v879_v11 = vadd.f32 %v837_v0, %v3675_v4  ;;  %v880_v20 = vadd.f32 %v850_v30, %v3676_v15 }
 0x242   :  { %v2107_v32 = vmul.f32 -1.442695, %v879_v11  ;;  %v2108_v10 = vmul.f32 -1.442695, %v880_v20  ;;  %v3678_v20 = vld [vmem:[#allocation31_spill] sm:$0xff] }
 0x244   :  { %2233 = vpow2.f32 %v2107_v32  ;;  %v862_v42 = vpop.f32.mrf.mxu2  ;;  %v875_v37 = vpop.f32.mrf.mxu3 }
 0x245   :  { %2235 = vpow2.f32 %v2108_v10  ;;  %v876_v26 = vadd.f32 %v875_v37, %v823_v22  ;;  %v838_v63 = vpop.f32.mrf.mxu0  ;;  %v851_v41 = vpop.f32.mrf.mxu1  ;;  %v863_v31 = vadd.f32 %v862_v42, %v810_v47 }
 0x247   :  { %v882_v40 = vadd.f32 %v876_v26, %v3677_v53  ;;  %v881_v37 = vadd.f32 %v863_v31, %v3678_v20 }
 0x249   :  { %v2109_v49 = vmul.f32 -1.442695, %v882_v40 }
 0x24a   :  { %v2234_v1 = vpop.eup %2233 }
 0x24b   :  { %v2236_v24 = vpop.eup %2235  ;;  %v886_v54 = vadd.f32 1.0, %v2234_v1  ;;  %2237 = vpow2.f32 %v2109_v49 }
 0x24c   :  { %v905_v39 = vadd.f32 1.0, %v2236_v24  ;;  %v877_v0 = vpop.f32.mrf.mxu3  ;;  %v864_v13 = vpop.f32.mrf.mxu2 }
 0x24d   :  { %2239 = vrcp.f32 %v886_v54  ;;  %v898_v40 = vand.u32 2147483648, %v886_v54  ;;  %v896_v49 = vand.u32 2147483647, %v886_v54  ;;  %vm892_vm10 = vweird.f32 %v886_v54 }
 0x24e   :  { %2241 = vrcp.f32 %v905_v39  ;;  %v917_v1 = vand.u32 2147483648, %v905_v39  ;;  %v915_v47 = vand.u32 2147483647, %v905_v39  ;;  %vm911_vm11 = vweird.f32 %v905_v39 }
 0x24f   :  { %v899_v31 = vor.u32 1.1754944e-38, %v898_v40  ;;  %vm897_vm14 = vcmp.eq.f32.partialorder %v896_v49, 8.507059e+37 }
 0x250   :  { %vm916_vm15 = vcmp.eq.f32.partialorder %v915_v47, 8.507059e+37  ;;  %v3683_v47 = vld [vmem:[#allocation6_spill] sm:$0xff] }
 0x251   :  { %v2238_v32 = vpop.eup %2237 }
 0x252   :  { %v925_v30 = vadd.f32 1.0, %v2238_v32 }
 0x253   :  { %v2240_v11 = vpop.eup %2239 }
 0x254   :  { %v2242_v63 = vpop.eup %2241  ;;  %v888_v22 = vmul.f32 %v2240_v11, %v886_v54  ;;  %2243 = vrcp.f32 %v925_v30  ;;  %vm893_vm8 = vweird.f32 %v2240_v11  ;;  %v937_v40 = vand.u32 2147483648, %v925_v30 }
 0x255   :  { %v907_v26 = vmul.f32 %v2242_v63, %v905_v39  ;;  %2245 = vtanh.f32 %v881_v37  ;;  %vm912_vm9 = vweird.f32 %v2242_v63  ;;  %vm894_vm12 = vmor %vm892_vm10, %vm893_vm8  ;;  %vm931_vm1 = vweird.f32 %v925_v30 }
 0x256   :  { %v889_v10 = vsub.f32 1.0, %v888_v22  ;;  %vm913_vm13 = vmor %vm911_vm11, %vm912_vm9  ;;  %v918_v22 = vor.u32 1.1754944e-38, %v917_v1  ;;  %v938_v49 = vor.u32 1.1754944e-38, %v937_v40  ;;  %v3695_v40 = vld [vmem:[#allocation18_spill] sm:$0xff] }
 0x257   :  { %v908_v41 = vsub.f32 1.0, %v907_v26 }
 0x258   :  { %v890_v24 = vmul.f32 %v2240_v11, %v889_v10 }
 0x259   :  { %v909_v0 = vmul.f32 %v2242_v63, %v908_v41 }
 0x25a   :  { %v2244_v42 = vpop.eup %2243  ;;  %v891_v13 = vadd.f32 %v2240_v11, %v890_v24 }
 0x25b   :  { %v910_v32 = vadd.f32 %v2242_v63, %v909_v0  ;;  %v927_v20 = vmul.f32 %v2244_v42, %v925_v30  ;;  %v2246_v37 = vpop.eup %2245  ;;  %vm932_vm0 = vweird.f32 %v2244_v42 }
 0x25c   :  { %v895_v26 = vsel %vm894_vm12, %v2240_v11, %v891_v13  ;;  %v935_v11 = vand.u32 2147483647, %v925_v30  ;;  %vm933_vm2 = vmor %vm931_vm1, %vm932_vm0  ;;  %v3682_v30 = vld [vmem:[#allocation5_spill] sm:$0xff]  ;;  %v3685_v13 = vld [vmem:[#allocation8_spill] sm:$0xff] }
 0x25d   :  { %v900_v53 = vsel %vm897_vm14, %v899_v31, %v895_v26  ;;  %v914_v10 = vsel %vm913_vm13, %v2242_v63, %v910_v32  ;;  %v928_v15 = vsub.f32 1.0, %v927_v20  ;;  %v3686_v31 = vld [vmem:[#allocation9_spill] sm:$0xff]  ;;  %v3687_v32 = vld [vmem:[#allocation10_spill] sm:$0xff]  ;;  %v3689_v26 = vld [vmem:[#allocation12_spill] sm:$0xff] }
 0x25e   :  { %v919_v41 = vsel %vm916_vm15, %v918_v22, %v914_v10  ;;  %v942_v4 = vmul.f32 %v2246_v37, %v900_v53  ;;  %vm936_vm3 = vcmp.eq.f32.partialorder %v935_v11, 8.507059e+37  ;;  %v3681_v53 = vld [vmem:[#allocation4_spill] sm:$0xff]  ;;  %v3688_v22 = vld [vmem:[#allocation11_spill] sm:$0xff]  ;;  %v3690_v37 = vld [vmem:[#allocation13_spill] sm:$0xff] }
 0x25f   :  { %v941_v48 = vmul.f32 %v919_v41, %v3101_v36  ;;  %v929_v24 = vmul.f32 %v2244_v42, %v928_v15  ;;  %v3679_v15 = vld [vmem:[#allocation2_spill] sm:$0xff]  ;;  %v3692_v41 = vld [vmem:[#allocation15_spill] sm:$0xff] }
 0x260   :  { %v3691_v10 = vld [vmem:[#allocation14_spill] sm:$0xff]  ;;  %v3696_v11 = vld [vmem:[#allocation19_spill] sm:$0xff] }
 0x261   :  { %v3179_v54 = vadd.f32 %v942_v4, %v941_v48  ;;  %v930_v39 = vadd.f32 %v2244_v42, %v929_v24  ;;  %v2111_v48 = vld [vmem:[%s3516_s0 + $0xc] sm:$0xf]  ;;  %v3693_v24 = vld [vmem:[#allocation16_spill] sm:$0xff] }
 0x262   :  { %v3680_v4 = vld [vmem:[#allocation3_spill] sm:$0xff] }
 0x263   :  { %2247 = vtanh.f32 %v3179_v54  ;;  %v934_v1 = vsel %vm933_vm2, %v2244_v42, %v930_v39  ;;  %v3684_v42 = vld [vmem:[#allocation7_spill] sm:$0xff]  ;;  %v3694_v39 = vld [vmem:[#allocation17_spill] sm:$0xff] }
 0x264   :  { %v939_v20 = vsel %vm936_vm3, %v938_v49, %v934_v1  ;;  %v3697_v1 = vld [vmem:[#allocation20_spill] sm:$0xff]  ;;  %v3698_v49 = vld [vmem:[#allocation21_spill] sm:$0xff] }
 0x269   :  { %v2248_v63 = vpop.eup %2247 }
 0x26a   :  { %v945_v0 = vmul.f32 %v2248_v63, %v939_v20  ;;  %v3699_v63 = vld [vmem:[#allocation22_spill] sm:$0xff]  ;;  %v3700_v20 = vld [vmem:[#allocation23_spill] sm:$0xff] }
 0x26c   :  { %2110 = vst [vmem:[%s3518_s4 + $0x10] sm:$0xff] %v945_v0  ;;  %v950_v36 = vpack.c.bf16 %v945_v0, %v945_v0  ;;  %v3701_v0 = vld [vmem:[#allocation24_spill] sm:$0xff] }
 0x26e   :  { %959 = vmatmul.bf16.vlgmr.msra.gmra.mxu0 %v950_v36  ;;  %972 = vmatmul.bf16.vlgmr.msra.gmra.mxu1 %v950_v36 }
 0x26f   :  { %985 = vmatmul.bf16.vlgmr.msra.gmra.mxu2 %v950_v36  ;;  %998 = vmatmul.bf16.vlgmr.msra.gmra.mxu3 %v950_v36  ;;  %v3702_v36 = vld [vmem:[#allocation25_spill] sm:$0xff] }
 0x270   :  { %1127 = vmatpush.bf16.msra.mxu0 %v2374_v3  ;;  %1140 = vmatpush.bf16.msra.mxu1 %v2385_v7 }
 0x271   :  { %1153 = vmatpush.bf16.msra.mxu2 %v2387_v8  ;;  %1166 = vmatpush.bf16.msra.mxu3 %v2399_v12 }
 0x274   :  { %1128 = vmatpush.bf16.msra.mxu0 %v2412_v16  ;;  %1141 = vmatpush.bf16.msra.mxu1 %v2414_v17 }
 0x275   :  { %1154 = vmatpush.bf16.msra.mxu2 %v2426_v21  ;;  %1167 = vmatpush.bf16.msra.mxu3 %v2437_v25 }
 0x278   :  { %1129 = vmatpush.bf16.msra.mxu0 %v2449_v29  ;;  %1142 = vmatpush.bf16.msra.mxu1 %v2462_v33 }
 0x279   :  { %1155 = vmatpush.bf16.msra.mxu2 %v2464_v34  ;;  %1168 = vmatpush.bf16.msra.mxu3 %v2476_v38 }
 0x27c   :  { %1130 = vmatpush.bf16.msra.mxu0 %v2494_v44  ;;  %1143 = vmatpush.bf16.msra.mxu1 %v2498_v45 }
 0x27d   :  { %1156 = vmatpush.bf16.msra.mxu2 %v2500_v46  ;;  %1169 = vmatpush.bf16.msra.mxu3 %v2512_v50 }
 0x27e   :  { %1011 = vmatmul.bf16.vlgmr.msrb.gmra.mxu0 %v2111_v48  ;;  %1024 = vmatmul.bf16.vlgmr.msrb.gmra.mxu1 %v2111_v48 }
 0x27f   :  { %1037 = vmatmul.bf16.vlgmr.msrb.gmra.mxu2 %v2111_v48  ;;  %1050 = vmatmul.bf16.vlgmr.msrb.gmra.mxu3 %v2111_v48  ;;  %v3703_v48 = vld [vmem:[#allocation26_spill] sm:$0xff] }
 0x280   :  { %1131 = vmatpush.bf16.msra.mxu0 %v2530_v56  ;;  %1144 = vmatpush.bf16.msra.mxu1 %v2534_v57 }
 0x281   :  { %1157 = vmatpush.bf16.msra.mxu2 %v2536_v58  ;;  %1170 = vmatpush.bf16.msra.mxu3 %v2548_v62 }
 0x284   :  { %1132 = vmatpush.bf16.msra.mxu0 %v2566_v5  ;;  %1145 = vmatpush.bf16.msra.mxu1 %v2570_v6 }
 0x285   :  { %1158 = vmatpush.bf16.msra.mxu2 %v2572_v9  ;;  %1171 = vmatpush.bf16.msra.mxu3 %v2584_v14 }
 0x288   :  { %1133 = vmatpush.bf16.msra.mxu0 %v2602_v23  ;;  %1146 = vmatpush.bf16.msra.mxu1 %v2612_v27 }
 0x289   :  { %1159 = vmatpush.bf16.msra.mxu2 %v2614_v28  ;;  %1172 = vmatpush.bf16.msra.mxu3 %v2626_v35 }
 0x28c   :  { %1134 = vmatpush.bf16.msra.mxu0 %v2647_v43  ;;  %1147 = vmatpush.bf16.msra.mxu1 %v2660_v51 }
 0x28d   :  { %1160 = vmatpush.bf16.msra.mxu2 %v2662_v52  ;;  %1173 = vmatpush.bf16.msra.mxu3 %v2671_v55 }
 0x290   :  { %1179 = vmatpush.bf16.msrb.mxu0 %v2673_v59  ;;  %1192 = vmatpush.bf16.msrb.mxu1 %v2675_v60 }
 0x291   :  { %1205 = vmatpush.bf16.msrb.mxu2 %v2677_v61  ;;  %1218 = vmatpush.bf16.msrb.mxu3 %v2689_v2 }
 0x294   :  { %1180 = vmatpush.bf16.msrb.mxu0 %v2710_v18  ;;  %1193 = vmatpush.bf16.msrb.mxu1 %v2714_v19 }
 0x295   :  { %1206 = vmatpush.bf16.msrb.mxu2 %v3679_v15  ;;  %1219 = vmatpush.bf16.msrb.mxu3 %v3680_v4 }
 0x298   :  { %1181 = vmatpush.bf16.msrb.mxu0 %v3681_v53  ;;  %1194 = vmatpush.bf16.msrb.mxu1 %v3682_v30 }
 0x299   :  { %1207 = vmatpush.bf16.msrb.mxu2 %v3683_v47  ;;  %1220 = vmatpush.bf16.msrb.mxu3 %v3684_v42 }
 0x29c   :  { %1182 = vmatpush.bf16.msrb.mxu0 %v3685_v13  ;;  %1195 = vmatpush.bf16.msrb.mxu1 %v3686_v31  ;;  %v3706_v31 = vld [vmem:[#allocation29_spill] sm:$0xff] }
 0x29d   :  { %1208 = vmatpush.bf16.msrb.mxu2 %v3687_v32  ;;  %1221 = vmatpush.bf16.msrb.mxu3 %v3688_v22  ;;  %v3705_v32 = vld [vmem:[#allocation28_spill] sm:$0xff] }
 0x2a0   :  { %1183 = vmatpush.bf16.msrb.mxu0 %v3689_v26  ;;  %1196 = vmatpush.bf16.msrb.mxu1 %v3690_v37 }
 0x2a1   :  { %1209 = vmatpush.bf16.msrb.mxu2 %v3691_v10  ;;  %1222 = vmatpush.bf16.msrb.mxu3 %v3692_v41 }
 0x2a4   :  { %1184 = vmatpush.bf16.msrb.mxu0 %v3693_v24  ;;  %1197 = vmatpush.bf16.msrb.mxu1 %v3694_v39  ;;  %v3704_v24 = vld [vmem:[#allocation27_spill] sm:$0xff] }
 0x2a5   :  { %1210 = vmatpush.bf16.msrb.mxu2 %v3695_v40  ;;  %1223 = vmatpush.bf16.msrb.mxu3 %v3696_v11 }
 0x2a8   :  { %1185 = vmatpush.bf16.msrb.mxu0 %v3697_v1  ;;  %1198 = vmatpush.bf16.msrb.mxu1 %v3698_v49 }
 0x2a9   :  { %1211 = vmatpush.bf16.msrb.mxu2 %v3699_v63  ;;  %1224 = vmatpush.bf16.msrb.mxu3 %v3700_v20 }
 0x2ac   :  { %1186 = vmatpush.bf16.msrb.mxu0 %v3701_v0  ;;  %1199 = vmatpush.bf16.msrb.mxu1 %v3702_v36 }
 0x2ad   :  { %1212 = vmatpush.bf16.msrb.mxu2 %v3703_v48  ;;  %1225 = vmatpush.bf16.msrb.mxu3 %v3704_v24 }
 0x2eb   :  { %v960_v39 = vpop.f32.mrf.mxu0  ;;  %v973_v40 = vpop.f32.mrf.mxu1 }
 0x2f2   :  { %v986_v41 = vpop.f32.mrf.mxu2  ;;  %v999_v11 = vpop.f32.mrf.mxu3 }
 0x2f3   :  { %v962_v10 = vpop.f32.mrf.mxu0  ;;  %v975_v1 = vpop.f32.mrf.mxu1 }
 0x2f4   :  { %v3707_v1 = vld [vmem:[#allocation30_spill] sm:$0xff] }
 0x2fa   :  { %v988_v37 = vpop.f32.mrf.mxu2  ;;  %v1001_v49 = vpop.f32.mrf.mxu3 }
 0x2fb   :  { %v1012_v26 = vpop.f32.mrf.mxu0  ;;  %v1025_v63 = vpop.f32.mrf.mxu1 }
 0x2fc   :  { %v1013_v22 = vadd.f32 %v1012_v26, %v960_v39  ;;  %v1026_v20 = vadd.f32 %v1025_v63, %v973_v40 }
 0x2fe   :  { %v1055_v0 = vadd.f32 %v1013_v22, %v3705_v32  ;;  %v1056_v36 = vadd.f32 %v1026_v20, %v3706_v31 }
 0x300   :  { %v2112_v13 = vmul.f32 -1.442695, %v1055_v0  ;;  %v2113_v48 = vmul.f32 -1.442695, %v1056_v36  ;;  %v3708_v36 = vld [vmem:[#allocation31_spill] sm:$0xff] }
 0x302   :  { %2249 = vpow2.f32 %v2112_v13  ;;  %v1038_v24 = vpop.f32.mrf.mxu2  ;;  %v1051_v42 = vpop.f32.mrf.mxu3 }
 0x303   :  { %2251 = vpow2.f32 %v2113_v48  ;;  %v1052_v47 = vadd.f32 %v1051_v42, %v999_v11  ;;  %v1014_v30 = vpop.f32.mrf.mxu0  ;;  %v1027_v10 = vpop.f32.mrf.mxu1  ;;  %v1039_v63 = vadd.f32 %v1038_v24, %v986_v41 }
 0x305   :  { %v1058_v37 = vadd.f32 %v1052_v47, %v3707_v1  ;;  %v1057_v42 = vadd.f32 %v1039_v63, %v3708_v36 }
 0x307   :  { %v2114_v49 = vmul.f32 -1.442695, %v1058_v37 }
 0x308   :  { %v2250_v53 = vpop.eup %2249 }
 0x309   :  { %v2252_v4 = vpop.eup %2251  ;;  %v1062_v26 = vadd.f32 1.0, %v2250_v53  ;;  %2253 = vpow2.f32 %v2114_v49 }
 0x30a   :  { %v1081_v39 = vadd.f32 1.0, %v2252_v4  ;;  %v1053_v22 = vpop.f32.mrf.mxu3  ;;  %v1040_v40 = vpop.f32.mrf.mxu2 }
 0x30b   :  { %2255 = vrcp.f32 %v1062_v26  ;;  %v1074_v37 = vand.u32 2147483648, %v1062_v26  ;;  %v1072_v49 = vand.u32 2147483647, %v1062_v26  ;;  %vm1068_vm6 = vweird.f32 %v1062_v26 }
 0x30c   :  { %2257 = vrcp.f32 %v1081_v39  ;;  %v1093_v53 = vand.u32 2147483648, %v1081_v39  ;;  %v1091_v41 = vand.u32 2147483647, %v1081_v39  ;;  %vm1087_vm7 = vweird.f32 %v1081_v39 }
 0x30d   :  { %v1075_v63 = vor.u32 1.1754944e-38, %v1074_v37  ;;  %vm1073_vm10 = vcmp.eq.f32.partialorder %v1072_v49, 8.507059e+37 }
 0x30e   :  { %vm1092_vm11 = vcmp.eq.f32.partialorder %v1091_v41, 8.507059e+37  ;;  %v3713_v41 = vld [vmem:[#allocation6_spill] sm:$0xff] }
 0x30f   :  { %v2254_v13 = vpop.eup %2253 }
 0x310   :  { %v1101_v20 = vadd.f32 1.0, %v2254_v13 }
 0x311   :  { %v2256_v0 = vpop.eup %2255 }
 0x312   :  { %v2258_v30 = vpop.eup %2257  ;;  %v1064_v11 = vmul.f32 %v2256_v0, %v1062_v26  ;;  %2259 = vrcp.f32 %v1101_v20  ;;  %vm1069_vm4 = vweird.f32 %v2256_v0  ;;  %v1113_v37 = vand.u32 2147483648, %v1101_v20 }
 0x313   :  { %v1083_v47 = vmul.f32 %v2258_v30, %v1081_v39  ;;  %2261 = vtanh.f32 %v1057_v42  ;;  %vm1088_vm5 = vweird.f32 %v2258_v30  ;;  %vm1070_vm8 = vmor %vm1068_vm6, %vm1069_vm4  ;;  %vm1107_vm13 = vweird.f32 %v1101_v20 }
 0x314   :  { %v1065_v48 = vsub.f32 1.0, %v1064_v11  ;;  %vm1089_vm9 = vmor %vm1087_vm7, %vm1088_vm5  ;;  %v1094_v11 = vor.u32 1.1754944e-38, %v1093_v53  ;;  %v1114_v49 = vor.u32 1.1754944e-38, %v1113_v37  ;;  %v3725_v37 = vld [vmem:[#allocation18_spill] sm:$0xff] }
 0x315   :  { %v1084_v10 = vsub.f32 1.0, %v1083_v47 }
 0x316   :  { %v1066_v4 = vmul.f32 %v2256_v0, %v1065_v48 }
 0x317   :  { %v1085_v22 = vmul.f32 %v2258_v30, %v1084_v10 }
 0x318   :  { %v2260_v24 = vpop.eup %2259  ;;  %v1067_v40 = vadd.f32 %v2256_v0, %v1066_v4 }
 0x319   :  { %v1086_v13 = vadd.f32 %v2258_v30, %v1085_v22  ;;  %v1103_v36 = vmul.f32 %v2260_v24, %v1101_v20  ;;  %v2262_v42 = vpop.eup %2261  ;;  %vm1108_vm12 = vweird.f32 %v2260_v24 }
 0x31a   :  { %v1071_v47 = vsel %vm1070_vm8, %v2256_v0, %v1067_v40  ;;  %v1111_v0 = vand.u32 2147483647, %v1101_v20  ;;  %vm1109_vm14 = vmor %vm1107_vm13, %vm1108_vm12  ;;  %v3712_v20 = vld [vmem:[#allocation5_spill] sm:$0xff]  ;;  %v3715_v40 = vld [vmem:[#allocation8_spill] sm:$0xff] }
 0x31b   :  { %v1076_v1 = vsel %vm1073_vm10, %v1075_v63, %v1071_v47  ;;  %v1090_v48 = vsel %vm1089_vm9, %v2258_v30, %v1086_v13  ;;  %v1104_v31 = vsub.f32 1.0, %v1103_v36  ;;  %v3716_v63 = vld [vmem:[#allocation9_spill] sm:$0xff]  ;;  %v3717_v13 = vld [vmem:[#allocation10_spill] sm:$0xff]  ;;  %v3719_v47 = vld [vmem:[#allocation12_spill] sm:$0xff] }
 0x31c   :  { %v1095_v10 = vsel %vm1092_vm11, %v1094_v11, %v1090_v48  ;;  %v1118_v32 = vmul.f32 %v2262_v42, %v1076_v1  ;;  %vm1112_vm15 = vcmp.eq.f32.partialorder %v1111_v0, 8.507059e+37  ;;  %v3711_v1 = vld [vmem:[#allocation4_spill] sm:$0xff]  ;;  %v3718_v11 = vld [vmem:[#allocation11_spill] sm:$0xff]  ;;  %v3720_v42 = vld [vmem:[#allocation13_spill] sm:$0xff] }
 0x31d   :  { %v1117_v15 = vmul.f32 %v1095_v10, %v3179_v54  ;;  %v1105_v4 = vmul.f32 %v2260_v24, %v1104_v31  ;;  %v3709_v31 = vld [vmem:[#allocation2_spill] sm:$0xff]  ;;  %v3722_v10 = vld [vmem:[#allocation15_spill] sm:$0xff] }
 0x31e   :  { %v3721_v48 = vld [vmem:[#allocation14_spill] sm:$0xff]  ;;  %v3726_v0 = vld [vmem:[#allocation19_spill] sm:$0xff] }
 0x31f   :  { %v3257_v26 = vadd.f32 %v1118_v32, %v1117_v15  ;;  %v1106_v39 = vadd.f32 %v2260_v24, %v1105_v4  ;;  %v2116_v15 = vld [vmem:[%s3516_s0 + $0x10] sm:$0xf]  ;;  %v3710_v32 = vld [vmem:[#allocation3_spill] sm:$0xff] }
 0x320   :  { %v3723_v4 = vld [vmem:[#allocation16_spill] sm:$0xff] }
 0x321   :  { %2263 = vtanh.f32 %v3257_v26  ;;  %v1110_v53 = vsel %vm1109_vm14, %v2260_v24, %v1106_v39  ;;  %v3714_v24 = vld [vmem:[#allocation7_spill] sm:$0xff]  ;;  %v3724_v39 = vld [vmem:[#allocation17_spill] sm:$0xff] }
 0x322   :  { %v1115_v36 = vsel %vm1112_vm15, %v1114_v49, %v1110_v53  ;;  %v3727_v53 = vld [vmem:[#allocation20_spill] sm:$0xff]  ;;  %v3728_v49 = vld [vmem:[#allocation21_spill] sm:$0xff] }
 0x327   :  { %v2264_v30 = vpop.eup %2263 }
 0x328   :  { %v1121_v22 = vmul.f32 %v2264_v30, %v1115_v36  ;;  %v3729_v30 = vld [vmem:[#allocation22_spill] sm:$0xff]  ;;  %v3730_v36 = vld [vmem:[#allocation23_spill] sm:$0xff] }
 0x32a   :  { %2115 = vst [vmem:[%s3518_s4 + $0x18] sm:$0xff] %v1121_v22  ;;  %v1126_v54 = vpack.c.bf16 %v1121_v22, %v1121_v22  ;;  %v3731_v22 = vld [vmem:[#allocation24_spill] sm:$0xff] }
 0x32c   :  { %1135 = vmatmul.bf16.vlgmr.msra.gmra.mxu0 %v1126_v54  ;;  %1148 = vmatmul.bf16.vlgmr.msra.gmra.mxu1 %v1126_v54 }
 0x32d   :  { %1161 = vmatmul.bf16.vlgmr.msra.gmra.mxu2 %v1126_v54  ;;  %1174 = vmatmul.bf16.vlgmr.msra.gmra.mxu3 %v1126_v54  ;;  %v3732_v54 = vld [vmem:[#allocation25_spill] sm:$0xff] }
 0x32e   :  { %1303 = vmatpush.bf16.msra.mxu0 %v2374_v3  ;;  %1316 = vmatpush.bf16.msra.mxu1 %v2385_v7 }
 0x32f   :  { %1329 = vmatpush.bf16.msra.mxu2 %v2387_v8  ;;  %1342 = vmatpush.bf16.msra.mxu3 %v2399_v12 }
 0x332   :  { %1304 = vmatpush.bf16.msra.mxu0 %v2412_v16  ;;  %1317 = vmatpush.bf16.msra.mxu1 %v2414_v17 }
 0x333   :  { %1330 = vmatpush.bf16.msra.mxu2 %v2426_v21  ;;  %1343 = vmatpush.bf16.msra.mxu3 %v2437_v25 }
 0x336   :  { %1305 = vmatpush.bf16.msra.mxu0 %v2449_v29  ;;  %1318 = vmatpush.bf16.msra.mxu1 %v2462_v33 }
 0x337   :  { %1331 = vmatpush.bf16.msra.mxu2 %v2464_v34  ;;  %1344 = vmatpush.bf16.msra.mxu3 %v2476_v38 }
 0x33a   :  { %1306 = vmatpush.bf16.msra.mxu0 %v2494_v44  ;;  %1319 = vmatpush.bf16.msra.mxu1 %v2498_v45 }
 0x33b   :  { %1332 = vmatpush.bf16.msra.mxu2 %v2500_v46  ;;  %1345 = vmatpush.bf16.msra.mxu3 %v2512_v50 }
 0x33c   :  { %1187 = vmatmul.bf16.vlgmr.msrb.gmra.mxu0 %v2116_v15  ;;  %1200 = vmatmul.bf16.vlgmr.msrb.gmra.mxu1 %v2116_v15 }
 0x33d   :  { %1213 = vmatmul.bf16.vlgmr.msrb.gmra.mxu2 %v2116_v15  ;;  %1226 = vmatmul.bf16.vlgmr.msrb.gmra.mxu3 %v2116_v15  ;;  %v3733_v15 = vld [vmem:[#allocation26_spill] sm:$0xff] }
 0x33e   :  { %1307 = vmatpush.bf16.msra.mxu0 %v2530_v56  ;;  %1320 = vmatpush.bf16.msra.mxu1 %v2534_v57 }
 0x33f   :  { %1333 = vmatpush.bf16.msra.mxu2 %v2536_v58  ;;  %1346 = vmatpush.bf16.msra.mxu3 %v2548_v62 }
 0x342   :  { %1308 = vmatpush.bf16.msra.mxu0 %v2566_v5  ;;  %1321 = vmatpush.bf16.msra.mxu1 %v2570_v6 }
 0x343   :  { %1334 = vmatpush.bf16.msra.mxu2 %v2572_v9  ;;  %1347 = vmatpush.bf16.msra.mxu3 %v2584_v14 }
 0x346   :  { %1309 = vmatpush.bf16.msra.mxu0 %v2602_v23  ;;  %1322 = vmatpush.bf16.msra.mxu1 %v2612_v27 }
 0x347   :  { %1335 = vmatpush.bf16.msra.mxu2 %v2614_v28  ;;  %1348 = vmatpush.bf16.msra.mxu3 %v2626_v35 }
 0x34a   :  { %1310 = vmatpush.bf16.msra.mxu0 %v2647_v43  ;;  %1323 = vmatpush.bf16.msra.mxu1 %v2660_v51 }
 0x34b   :  { %1336 = vmatpush.bf16.msra.mxu2 %v2662_v52  ;;  %1349 = vmatpush.bf16.msra.mxu3 %v2671_v55 }
 0x34e   :  { %1355 = vmatpush.bf16.msrb.mxu0 %v2673_v59  ;;  %1368 = vmatpush.bf16.msrb.mxu1 %v2675_v60 }
 0x34f   :  { %1381 = vmatpush.bf16.msrb.mxu2 %v2677_v61  ;;  %1394 = vmatpush.bf16.msrb.mxu3 %v2689_v2 }
 0x352   :  { %1356 = vmatpush.bf16.msrb.mxu0 %v2710_v18  ;;  %1369 = vmatpush.bf16.msrb.mxu1 %v2714_v19 }
 0x353   :  { %1382 = vmatpush.bf16.msrb.mxu2 %v3709_v31  ;;  %1395 = vmatpush.bf16.msrb.mxu3 %v3710_v32 }
 0x356   :  { %1357 = vmatpush.bf16.msrb.mxu0 %v3711_v1  ;;  %1370 = vmatpush.bf16.msrb.mxu1 %v3712_v20 }
 0x357   :  { %1383 = vmatpush.bf16.msrb.mxu2 %v3713_v41  ;;  %1396 = vmatpush.bf16.msrb.mxu3 %v3714_v24 }
 0x35a   :  { %1358 = vmatpush.bf16.msrb.mxu0 %v3715_v40  ;;  %1371 = vmatpush.bf16.msrb.mxu1 %v3716_v63  ;;  %v3736_v63 = vld [vmem:[#allocation29_spill] sm:$0xff] }
 0x35b   :  { %1384 = vmatpush.bf16.msrb.mxu2 %v3717_v13  ;;  %1397 = vmatpush.bf16.msrb.mxu3 %v3718_v11  ;;  %v3735_v13 = vld [vmem:[#allocation28_spill] sm:$0xff] }
 0x35e   :  { %1359 = vmatpush.bf16.msrb.mxu0 %v3719_v47  ;;  %1372 = vmatpush.bf16.msrb.mxu1 %v3720_v42 }
 0x35f   :  { %1385 = vmatpush.bf16.msrb.mxu2 %v3721_v48  ;;  %1398 = vmatpush.bf16.msrb.mxu3 %v3722_v10 }
 0x362   :  { %1360 = vmatpush.bf16.msrb.mxu0 %v3723_v4  ;;  %1373 = vmatpush.bf16.msrb.mxu1 %v3724_v39  ;;  %v3734_v4 = vld [vmem:[#allocation27_spill] sm:$0xff] }
 0x363   :  { %1386 = vmatpush.bf16.msrb.mxu2 %v3725_v37  ;;  %1399 = vmatpush.bf16.msrb.mxu3 %v3726_v0 }
 0x366   :  { %1361 = vmatpush.bf16.msrb.mxu0 %v3727_v53  ;;  %1374 = vmatpush.bf16.msrb.mxu1 %v3728_v49 }
 0x367   :  { %1387 = vmatpush.bf16.msrb.mxu2 %v3729_v30  ;;  %1400 = vmatpush.bf16.msrb.mxu3 %v3730_v36 }
 0x36a   :  { %1362 = vmatpush.bf16.msrb.mxu0 %v3731_v22  ;;  %1375 = vmatpush.bf16.msrb.mxu1 %v3732_v54 }
 0x36b   :  { %1388 = vmatpush.bf16.msrb.mxu2 %v3733_v15  ;;  %1401 = vmatpush.bf16.msrb.mxu3 %v3734_v4 }
 0x3a9   :  { %v1136_v39 = vpop.f32.mrf.mxu0  ;;  %v1149_v37 = vpop.f32.mrf.mxu1 }
 0x3b0   :  { %v1162_v10 = vpop.f32.mrf.mxu2  ;;  %v1175_v0 = vpop.f32.mrf.mxu3 }
 0x3b1   :  { %v1138_v48 = vpop.f32.mrf.mxu0  ;;  %v1151_v53 = vpop.f32.mrf.mxu1 }
 0x3b2   :  { %v3737_v53 = vld [vmem:[#allocation30_spill] sm:$0xff] }
 0x3b8   :  { %v1164_v42 = vpop.f32.mrf.mxu2  ;;  %v1177_v49 = vpop.f32.mrf.mxu3 }
 0x3b9   :  { %v1188_v47 = vpop.f32.mrf.mxu0  ;;  %v1201_v30 = vpop.f32.mrf.mxu1 }
 0x3ba   :  { %v1189_v11 = vadd.f32 %v1188_v47, %v1136_v39  ;;  %v1202_v36 = vadd.f32 %v1201_v30, %v1149_v37 }
 0x3bc   :  { %v1231_v22 = vadd.f32 %v1189_v11, %v3735_v13  ;;  %v1232_v54 = vadd.f32 %v1202_v36, %v3736_v63 }
 0x3be   :  { %v2117_v40 = vmul.f32 -1.442695, %v1231_v22  ;;  %v2118_v15 = vmul.f32 -1.442695, %v1232_v54  ;;  %v3738_v54 = vld [vmem:[#allocation31_spill] sm:$0xff] }
 0x3c0   :  { %2265 = vpow2.f32 %v2117_v40  ;;  %v1214_v4 = vpop.f32.mrf.mxu2  ;;  %v1227_v24 = vpop.f32.mrf.mxu3 }
 0x3c1   :  { %2267 = vpow2.f32 %v2118_v15  ;;  %v1228_v41 = vadd.f32 %v1227_v24, %v1175_v0  ;;  %v1190_v20 = vpop.f32.mrf.mxu0  ;;  %v1203_v48 = vpop.f32.mrf.mxu1  ;;  %v1215_v30 = vadd.f32 %v1214_v4, %v1162_v10 }
 0x3c3   :  { %v1234_v42 = vadd.f32 %v1228_v41, %v3737_v53  ;;  %v1233_v24 = vadd.f32 %v1215_v30, %v3738_v54 }
 0x3c5   :  { %v2119_v49 = vmul.f32 -1.442695, %v1234_v42 }
 0x3c6   :  { %v2266_v1 = vpop.eup %2265 }
 0x3c7   :  { %v2268_v32 = vpop.eup %2267  ;;  %v1238_v47 = vadd.f32 1.0, %v2266_v1  ;;  %2269 = vpow2.f32 %v2119_v49 }
 0x3c8   :  { %v1257_v39 = vadd.f32 1.0, %v2268_v32  ;;  %v1229_v11 = vpop.f32.mrf.mxu3  ;;  %v1216_v37 = vpop.f32.mrf.mxu2 }
 0x3c9   :  { %2271 = vrcp.f32 %v1238_v47  ;;  %v1250_v42 = vand.u32 2147483648, %v1238_v47  ;;  %v1248_v49 = vand.u32 2147483647, %v1238_v47  ;;  %vm1244_vm2 = vweird.f32 %v1238_v47 }
 0x3ca   :  { %2273 = vrcp.f32 %v1257_v39  ;;  %v1269_v1 = vand.u32 2147483648, %v1257_v39  ;;  %v1267_v10 = vand.u32 2147483647, %v1257_v39  ;;  %vm1263_vm3 = vweird.f32 %v1257_v39 }
 0x3cb   :  { %v1251_v30 = vor.u32 1.1754944e-38, %v1250_v42  ;;  %vm1249_vm6 = vcmp.eq.f32.partialorder %v1248_v49, 8.507059e+37 }
 0x3cc   :  { %vm1268_vm7 = vcmp.eq.f32.partialorder %v1267_v10, 8.507059e+37  ;;  %v3743_v10 = vld [vmem:[#allocation6_spill] sm:$0xff] }
 0x3cd   :  { %v2270_v40 = vpop.eup %2269 }
 0x3ce   :  { %v1277_v36 = vadd.f32 1.0, %v2270_v40 }
 0x3cf   :  { %v2272_v22 = vpop.eup %2271 }
 0x3d0   :  { %v2274_v20 = vpop.eup %2273  ;;  %v1240_v0 = vmul.f32 %v2272_v22, %v1238_v47  ;;  %2275 = vrcp.f32 %v1277_v36  ;;  %vm1245_vm0 = vweird.f32 %v2272_v22  ;;  %v1289_v42 = vand.u32 2147483648, %v1277_v36 }
 0x3d1   :  { %v1259_v41 = vmul.f32 %v2274_v20, %v1257_v39  ;;  %2277 = vtanh.f32 %v1233_v24  ;;  %vm1264_vm1 = vweird.f32 %v2274_v20  ;;  %vm1246_vm4 = vmor %vm1244_vm2, %vm1245_vm0  ;;  %vm1283_vm9 = vweird.f32 %v1277_v36 }
 0x3d2   :  { %v1241_v15 = vsub.f32 1.0, %v1240_v0  ;;  %vm1265_vm5 = vmor %vm1263_vm3, %vm1264_vm1  ;;  %v1270_v0 = vor.u32 1.1754944e-38, %v1269_v1  ;;  %v1290_v49 = vor.u32 1.1754944e-38, %v1289_v42  ;;  %v3755_v42 = vld [vmem:[#allocation18_spill] sm:$0xff] }
 0x3d3   :  { %v1260_v48 = vsub.f32 1.0, %v1259_v41 }
 0x3d4   :  { %v1242_v32 = vmul.f32 %v2272_v22, %v1241_v15 }
 0x3d5   :  { %v1261_v11 = vmul.f32 %v2274_v20, %v1260_v48 }
 0x3d6   :  { %v2276_v4 = vpop.eup %2275  ;;  %v1243_v37 = vadd.f32 %v2272_v22, %v1242_v32 }
 0x3d7   :  { %v1262_v40 = vadd.f32 %v2274_v20, %v1261_v11  ;;  %v1279_v54 = vmul.f32 %v2276_v4, %v1277_v36  ;;  %v2278_v24 = vpop.eup %2277  ;;  %vm1284_vm8 = vweird.f32 %v2276_v4 }
 0x3d8   :  { %v1247_v41 = vsel %vm1246_vm4, %v2272_v22, %v1243_v37  ;;  %v1287_v22 = vand.u32 2147483647, %v1277_v36  ;;  %vm1285_vm10 = vmor %vm1283_vm9, %vm1284_vm8  ;;  %v3742_v36 = vld [vmem:[#allocation5_spill] sm:$0xff]  ;;  %v3745_v37 = vld [vmem:[#allocation8_spill] sm:$0xff] }
 0x3d9   :  { %v1252_v53 = vsel %vm1249_vm6, %v1251_v30, %v1247_v41  ;;  %v1266_v15 = vsel %vm1265_vm5, %v2274_v20, %v1262_v40  ;;  %v1280_v63 = vsub.f32 1.0, %v1279_v54  ;;  %v3746_v30 = vld [vmem:[#allocation9_spill] sm:$0xff]  ;;  %v3747_v40 = vld [vmem:[#allocation10_spill] sm:$0xff]  ;;  %v3749_v41 = vld [vmem:[#allocation12_spill] sm:$0xff] }
 0x3da   :  { %v1271_v48 = vsel %vm1268_vm7, %v1270_v0, %v1266_v15  ;;  %v1294_v13 = vmul.f32 %v2278_v24, %v1252_v53  ;;  %vm1288_vm11 = vcmp.eq.f32.partialorder %v1287_v22, 8.507059e+37  ;;  %v3741_v53 = vld [vmem:[#allocation4_spill] sm:$0xff]  ;;  %v3748_v0 = vld [vmem:[#allocation11_spill] sm:$0xff]  ;;  %v3750_v24 = vld [vmem:[#allocation13_spill] sm:$0xff] }
 0x3db   :  { %v1293_v31 = vmul.f32 %v1271_v48, %v3257_v26  ;;  %v1281_v32 = vmul.f32 %v2276_v4, %v1280_v63  ;;  %v3739_v63 = vld [vmem:[#allocation2_spill] sm:$0xff]  ;;  %v3752_v48 = vld [vmem:[#allocation15_spill] sm:$0xff] }
 0x3dc   :  { %v3751_v15 = vld [vmem:[#allocation14_spill] sm:$0xff]  ;;  %v3756_v22 = vld [vmem:[#allocation19_spill] sm:$0xff] }
 0x3dd   :  { %v3335_v47 = vadd.f32 %v1294_v13, %v1293_v31  ;;  %v1282_v39 = vadd.f32 %v2276_v4, %v1281_v32  ;;  %v2121_v31 = vld [vmem:[%s3516_s0 + $0x14] sm:$0xf]  ;;  %v3740_v13 = vld [vmem:[#allocation3_spill] sm:$0xff] }
 0x3de   :  { %v3753_v32 = vld [vmem:[#allocation16_spill] sm:$0xff] }
 0x3df   :  { %2279 = vtanh.f32 %v3335_v47  ;;  %v1286_v1 = vsel %vm1285_vm10, %v2276_v4, %v1282_v39  ;;  %v3744_v4 = vld [vmem:[#allocation7_spill] sm:$0xff]  ;;  %v3754_v39 = vld [vmem:[#allocation17_spill] sm:$0xff] }
 0x3e0   :  { %v1291_v54 = vsel %vm1288_vm11, %v1290_v49, %v1286_v1  ;;  %v3757_v1 = vld [vmem:[#allocation20_spill] sm:$0xff]  ;;  %v3758_v49 = vld [vmem:[#allocation21_spill] sm:$0xff] }
 0x3e5   :  { %v2280_v20 = vpop.eup %2279 }
 0x3e6   :  { %v1297_v11 = vmul.f32 %v2280_v20, %v1291_v54  ;;  %v3759_v20 = vld [vmem:[#allocation22_spill] sm:$0xff]  ;;  %v3760_v54 = vld [vmem:[#allocation23_spill] sm:$0xff] }
 0x3e8   :  { %2120 = vst [vmem:[%s3518_s4 + $0x20] sm:$0xff] %v1297_v11  ;;  %v1302_v26 = vpack.c.bf16 %v1297_v11, %v1297_v11  ;;  %v3761_v11 = vld [vmem:[#allocation24_spill] sm:$0xff] }
 0x3ea   :  { %1311 = vmatmul.bf16.vlgmr.msra.gmra.mxu0 %v1302_v26  ;;  %1324 = vmatmul.bf16.vlgmr.msra.gmra.mxu1 %v1302_v26 }
 0x3eb   :  { %1337 = vmatmul.bf16.vlgmr.msra.gmra.mxu2 %v1302_v26  ;;  %1350 = vmatmul.bf16.vlgmr.msra.gmra.mxu3 %v1302_v26  ;;  %v3762_v26 = vld [vmem:[#allocation25_spill] sm:$0xff] }
 0x3ec   :  { %1479 = vmatpush.bf16.msra.mxu0 %v2374_v3  ;;  %1492 = vmatpush.bf16.msra.mxu1 %v2385_v7 }
 0x3ed   :  { %1505 = vmatpush.bf16.msra.mxu2 %v2387_v8  ;;  %1518 = vmatpush.bf16.msra.mxu3 %v2399_v12 }
 0x3f0   :  { %1480 = vmatpush.bf16.msra.mxu0 %v2412_v16  ;;  %1493 = vmatpush.bf16.msra.mxu1 %v2414_v17 }
 0x3f1   :  { %1506 = vmatpush.bf16.msra.mxu2 %v2426_v21  ;;  %1519 = vmatpush.bf16.msra.mxu3 %v2437_v25 }
 0x3f4   :  { %1481 = vmatpush.bf16.msra.mxu0 %v2449_v29  ;;  %1494 = vmatpush.bf16.msra.mxu1 %v2462_v33 }
 0x3f5   :  { %1507 = vmatpush.bf16.msra.mxu2 %v2464_v34  ;;  %1520 = vmatpush.bf16.msra.mxu3 %v2476_v38 }
 0x3f8   :  { %1482 = vmatpush.bf16.msra.mxu0 %v2494_v44  ;;  %1495 = vmatpush.bf16.msra.mxu1 %v2498_v45 }
 0x3f9   :  { %1508 = vmatpush.bf16.msra.mxu2 %v2500_v46  ;;  %1521 = vmatpush.bf16.msra.mxu3 %v2512_v50 }
 0x3fa   :  { %1363 = vmatmul.bf16.vlgmr.msrb.gmra.mxu0 %v2121_v31  ;;  %1376 = vmatmul.bf16.vlgmr.msrb.gmra.mxu1 %v2121_v31 }
 0x3fb   :  { %1389 = vmatmul.bf16.vlgmr.msrb.gmra.mxu2 %v2121_v31  ;;  %1402 = vmatmul.bf16.vlgmr.msrb.gmra.mxu3 %v2121_v31  ;;  %v3763_v31 = vld [vmem:[#allocation26_spill] sm:$0xff] }
 0x3fc   :  { %1483 = vmatpush.bf16.msra.mxu0 %v2530_v56  ;;  %1496 = vmatpush.bf16.msra.mxu1 %v2534_v57 }
 0x3fd   :  { %1509 = vmatpush.bf16.msra.mxu2 %v2536_v58  ;;  %1522 = vmatpush.bf16.msra.mxu3 %v2548_v62 }
 0x400   :  { %1484 = vmatpush.bf16.msra.mxu0 %v2566_v5  ;;  %1497 = vmatpush.bf16.msra.mxu1 %v2570_v6 }
 0x401   :  { %1510 = vmatpush.bf16.msra.mxu2 %v2572_v9  ;;  %1523 = vmatpush.bf16.msra.mxu3 %v2584_v14 }
 0x404   :  { %1485 = vmatpush.bf16.msra.mxu0 %v2602_v23  ;;  %1498 = vmatpush.bf16.msra.mxu1 %v2612_v27 }
 0x405   :  { %1511 = vmatpush.bf16.msra.mxu2 %v2614_v28  ;;  %1524 = vmatpush.bf16.msra.mxu3 %v2626_v35 }
 0x408   :  { %1486 = vmatpush.bf16.msra.mxu0 %v2647_v43  ;;  %1499 = vmatpush.bf16.msra.mxu1 %v2660_v51 }
 0x409   :  { %1512 = vmatpush.bf16.msra.mxu2 %v2662_v52  ;;  %1525 = vmatpush.bf16.msra.mxu3 %v2671_v55 }
 0x40c   :  { %1531 = vmatpush.bf16.msrb.mxu0 %v2673_v59  ;;  %1544 = vmatpush.bf16.msrb.mxu1 %v2675_v60 }
 0x40d   :  { %1557 = vmatpush.bf16.msrb.mxu2 %v2677_v61  ;;  %1570 = vmatpush.bf16.msrb.mxu3 %v2689_v2 }
 0x410   :  { %1532 = vmatpush.bf16.msrb.mxu0 %v2710_v18  ;;  %1545 = vmatpush.bf16.msrb.mxu1 %v2714_v19 }
 0x411   :  { %1558 = vmatpush.bf16.msrb.mxu2 %v3739_v63  ;;  %1571 = vmatpush.bf16.msrb.mxu3 %v3740_v13 }
 0x414   :  { %1533 = vmatpush.bf16.msrb.mxu0 %v3741_v53  ;;  %1546 = vmatpush.bf16.msrb.mxu1 %v3742_v36 }
 0x415   :  { %1559 = vmatpush.bf16.msrb.mxu2 %v3743_v10  ;;  %1572 = vmatpush.bf16.msrb.mxu3 %v3744_v4 }
 0x418   :  { %1534 = vmatpush.bf16.msrb.mxu0 %v3745_v37  ;;  %1547 = vmatpush.bf16.msrb.mxu1 %v3746_v30  ;;  %v3766_v30 = vld [vmem:[#allocation29_spill] sm:$0xff] }
 0x419   :  { %1560 = vmatpush.bf16.msrb.mxu2 %v3747_v40  ;;  %1573 = vmatpush.bf16.msrb.mxu3 %v3748_v0  ;;  %v3765_v40 = vld [vmem:[#allocation28_spill] sm:$0xff] }
 0x41c   :  { %1535 = vmatpush.bf16.msrb.mxu0 %v3749_v41  ;;  %1548 = vmatpush.bf16.msrb.mxu1 %v3750_v24 }
 0x41d   :  { %1561 = vmatpush.bf16.msrb.mxu2 %v3751_v15  ;;  %1574 = vmatpush.bf16.msrb.mxu3 %v3752_v48 }
 0x420   :  { %1536 = vmatpush.bf16.msrb.mxu0 %v3753_v32  ;;  %1549 = vmatpush.bf16.msrb.mxu1 %v3754_v39  ;;  %v3764_v32 = vld [vmem:[#allocation27_spill] sm:$0xff] }
 0x421   :  { %1562 = vmatpush.bf16.msrb.mxu2 %v3755_v42  ;;  %1575 = vmatpush.bf16.msrb.mxu3 %v3756_v22 }
 0x424   :  { %1537 = vmatpush.bf16.msrb.mxu0 %v3757_v1  ;;  %1550 = vmatpush.bf16.msrb.mxu1 %v3758_v49 }
 0x425   :  { %1563 = vmatpush.bf16.msrb.mxu2 %v3759_v20  ;;  %1576 = vmatpush.bf16.msrb.mxu3 %v3760_v54 }
 0x428   :  { %1538 = vmatpush.bf16.msrb.mxu0 %v3761_v11  ;;  %1551 = vmatpush.bf16.msrb.mxu1 %v3762_v26 }
 0x429   :  { %1564 = vmatpush.bf16.msrb.mxu2 %v3763_v31  ;;  %1577 = vmatpush.bf16.msrb.mxu3 %v3764_v32 }
 0x467   :  { %v1312_v39 = vpop.f32.mrf.mxu0  ;;  %v1325_v42 = vpop.f32.mrf.mxu1 }
 0x46e   :  { %v1338_v48 = vpop.f32.mrf.mxu2  ;;  %v1351_v22 = vpop.f32.mrf.mxu3 }
 0x46f   :  { %v1314_v15 = vpop.f32.mrf.mxu0  ;;  %v1327_v1 = vpop.f32.mrf.mxu1 }
 0x470   :  { %v3767_v1 = vld [vmem:[#allocation30_spill] sm:$0xff] }
 0x476   :  { %v1340_v24 = vpop.f32.mrf.mxu2  ;;  %v1353_v49 = vpop.f32.mrf.mxu3 }
 0x477   :  { %v1364_v41 = vpop.f32.mrf.mxu0  ;;  %v1377_v20 = vpop.f32.mrf.mxu1 }
 0x478   :  { %v1365_v0 = vadd.f32 %v1364_v41, %v1312_v39  ;;  %v1378_v54 = vadd.f32 %v1377_v20, %v1325_v42 }
 0x47a   :  { %v1407_v11 = vadd.f32 %v1365_v0, %v3765_v40  ;;  %v1408_v26 = vadd.f32 %v1378_v54, %v3766_v30 }
 0x47c   :  { %v2122_v37 = vmul.f32 -1.442695, %v1407_v11  ;;  %v2123_v31 = vmul.f32 -1.442695, %v1408_v26  ;;  %v3768_v26 = vld [vmem:[#allocation31_spill] sm:$0xff] }
 0x47e   :  { %2281 = vpow2.f32 %v2122_v37  ;;  %v1390_v32 = vpop.f32.mrf.mxu2  ;;  %v1403_v4 = vpop.f32.mrf.mxu3 }
 0x47f   :  { %2283 = vpow2.f32 %v2123_v31  ;;  %v1404_v10 = vadd.f32 %v1403_v4, %v1351_v22  ;;  %v1366_v36 = vpop.f32.mrf.mxu0  ;;  %v1379_v15 = vpop.f32.mrf.mxu1  ;;  %v1391_v20 = vadd.f32 %v1390_v32, %v1338_v48 }
 0x481   :  { %v1410_v24 = vadd.f32 %v1404_v10, %v3767_v1  ;;  %v1409_v4 = vadd.f32 %v1391_v20, %v3768_v26 }
 0x483   :  { %v2124_v49 = vmul.f32 -1.442695, %v1410_v24 }
 0x484   :  { %v2282_v53 = vpop.eup %2281 }
 0x485   :  { %v2284_v13 = vpop.eup %2283  ;;  %v1414_v41 = vadd.f32 1.0, %v2282_v53  ;;  %2285 = vpow2.f32 %v2124_v49 }
 0x486   :  { %v1433_v39 = vadd.f32 1.0, %v2284_v13  ;;  %v1405_v0 = vpop.f32.mrf.mxu3  ;;  %v1392_v42 = vpop.f32.mrf.mxu2 }
 0x487   :  { %2287 = vrcp.f32 %v1414_v41  ;;  %v1426_v24 = vand.u32 2147483648, %v1414_v41  ;;  %v1424_v49 = vand.u32 2147483647, %v1414_v41  ;;  %vm1420_vm14 = vweird.f32 %v1414_v41 }
 0x488   :  { %2289 = vrcp.f32 %v1433_v39  ;;  %v1445_v53 = vand.u32 2147483648, %v1433_v39  ;;  %v1443_v48 = vand.u32 2147483647, %v1433_v39  ;;  %vm1439_vm15 = vweird.f32 %v1433_v39 }
 0x489   :  { %v1427_v20 = vor.u32 1.1754944e-38, %v1426_v24  ;;  %vm1425_vm2 = vcmp.eq.f32.partialorder %v1424_v49, 8.507059e+37 }
 0x48a   :  { %vm1444_vm3 = vcmp.eq.f32.partialorder %v1443_v48, 8.507059e+37 }
 0x48b   :  { %v2286_v37 = vpop.eup %2285 }
 0x48c   :  { %v1453_v54 = vadd.f32 1.0, %v2286_v37 }
 0x48d   :  { %v2288_v11 = vpop.eup %2287 }
 0x48e   :  { %v2290_v36 = vpop.eup %2289  ;;  %v1416_v22 = vmul.f32 %v2288_v11, %v1414_v41  ;;  %2291 = vrcp.f32 %v1453_v54  ;;  %vm1421_vm12 = vweird.f32 %v2288_v11  ;;  %v1465_v24 = vand.u32 2147483648, %v1453_v54 }
 0x48f   :  { %v1435_v10 = vmul.f32 %v2290_v36, %v1433_v39  ;;  %2293 = vtanh.f32 %v1409_v4  ;;  %vm1440_vm13 = vweird.f32 %v2290_v36  ;;  %vm1422_vm0 = vmor %vm1420_vm14, %vm1421_vm12  ;;  %vm1459_vm5 = vweird.f32 %v1453_v54 }
 0x490   :  { %v1417_v31 = vsub.f32 1.0, %v1416_v22  ;;  %vm1441_vm1 = vmor %vm1439_vm15, %vm1440_vm13  ;;  %v1446_v22 = vor.u32 1.1754944e-38, %v1445_v53  ;;  %v1466_v49 = vor.u32 1.1754944e-38, %v1465_v24 }
 0x491   :  { %v1436_v15 = vsub.f32 1.0, %v1435_v10 }
 0x492   :  { %v1418_v13 = vmul.f32 %v2288_v11, %v1417_v31 }
 0x493   :  { %v1437_v0 = vmul.f32 %v2290_v36, %v1436_v15 }
 0x494   :  { %v2292_v32 = vpop.eup %2291  ;;  %v1419_v42 = vadd.f32 %v2288_v11, %v1418_v13 }
 0x495   :  { %v1438_v37 = vadd.f32 %v2290_v36, %v1437_v0  ;;  %v1455_v26 = vmul.f32 %v2292_v32, %v1453_v54  ;;  %v2294_v4 = vpop.eup %2293  ;;  %vm1460_vm4 = vweird.f32 %v2292_v32 }
 0x496   :  { %v1423_v10 = vsel %vm1422_vm0, %v2288_v11, %v1419_v42  ;;  %v1463_v11 = vand.u32 2147483647, %v1453_v54  ;;  %vm1461_vm6 = vmor %vm1459_vm5, %vm1460_vm4 }
 0x497   :  { %v1428_v1 = vsel %vm1425_vm2, %v1427_v20, %v1423_v10  ;;  %v1442_v31 = vsel %vm1441_vm1, %v2290_v36, %v1438_v37  ;;  %v1456_v30 = vsub.f32 1.0, %v1455_v26 }
 0x498   :  { %v1447_v15 = vsel %vm1444_vm3, %v1446_v22, %v1442_v31  ;;  %v1470_v40 = vmul.f32 %v2294_v4, %v1428_v1  ;;  %vm1464_vm7 = vcmp.eq.f32.partialorder %v1463_v11, 8.507059e+37  ;;  %v3796_v1 = vld [vmem:[#allocation29_spill] sm:$0xff]  ;;  %v3797_v4 = vld [vmem:[#allocation30_spill] sm:$0xff] }
 0x499   :  { %v1469_v63 = vmul.f32 %v1447_v15, %v3335_v47  ;;  %v1457_v13 = vmul.f32 %v2292_v32, %v1456_v30  ;;  %v3795_v30 = vld [vmem:[#allocation28_spill] sm:$0xff] }
 0x49b   :  { %v3413_v41 = vadd.f32 %v1470_v40, %v1469_v63  ;;  %v1458_v39 = vadd.f32 %v2292_v32, %v1457_v13 }
 0x49d   :  { %2295 = vtanh.f32 %v3413_v41  ;;  %v1462_v53 = vsel %vm1461_vm6, %v2292_v32, %v1458_v39 }
 0x49e   :  { %v1467_v26 = vsel %vm1464_vm7, %v1466_v49, %v1462_v53 }
 0x4a3   :  { %v2296_v36 = vpop.eup %2295 }
 0x4a4   :  { %v1473_v0 = vmul.f32 %v2296_v36, %v1467_v26 }
 0x4a6   :  { %2125 = vst [vmem:[%s3518_s4 + $0x28] sm:$0xff] %v1473_v0  ;;  %v1478_v47 = vpack.c.bf16 %v1473_v0, %v1473_v0 }
 0x4a8   :  { %1487 = vmatmul.bf16.vlgmr.msra.gmra.mxu0 %v1478_v47  ;;  %1500 = vmatmul.bf16.vlgmr.msra.gmra.mxu1 %v1478_v47 }
 0x4a9   :  { %1513 = vmatmul.bf16.vlgmr.msra.gmra.mxu2 %v1478_v47  ;;  %1526 = vmatmul.bf16.vlgmr.msra.gmra.mxu3 %v1478_v47 }
 0x4aa   :  { %1655 = vmatpush.bf16.msra.mxu0 %v2374_v3  ;;  %1668 = vmatpush.bf16.msra.mxu1 %v2385_v7  ;;  %v2126_v3 = vld [vmem:[%s3516_s0 + $0x18] sm:$0xf]  ;;  %v3769_v7 = vld [vmem:[#allocation2_spill] sm:$0xff] }
 0x4ab   :  { %1681 = vmatpush.bf16.msra.mxu2 %v2387_v8  ;;  %1694 = vmatpush.bf16.msra.mxu3 %v2399_v12  ;;  %v3770_v8 = vld [vmem:[#allocation3_spill] sm:$0xff]  ;;  %v3771_v12 = vld [vmem:[#allocation4_spill] sm:$0xff] }
 0x4ae   :  { %1656 = vmatpush.bf16.msra.mxu0 %v2412_v16  ;;  %1669 = vmatpush.bf16.msra.mxu1 %v2414_v17  ;;  %v3772_v16 = vld [vmem:[#allocation5_spill] sm:$0xff]  ;;  %v3773_v17 = vld [vmem:[#allocation6_spill] sm:$0xff] }
 0x4af   :  { %1682 = vmatpush.bf16.msra.mxu2 %v2426_v21  ;;  %1695 = vmatpush.bf16.msra.mxu3 %v2437_v25  ;;  %v3774_v21 = vld [vmem:[#allocation7_spill] sm:$0xff]  ;;  %v3775_v25 = vld [vmem:[#allocation8_spill] sm:$0xff] }
 0x4b2   :  { %1657 = vmatpush.bf16.msra.mxu0 %v2449_v29  ;;  %1670 = vmatpush.bf16.msra.mxu1 %v2462_v33  ;;  %v3776_v29 = vld [vmem:[#allocation9_spill] sm:$0xff]  ;;  %v3777_v33 = vld [vmem:[#allocation10_spill] sm:$0xff] }
 0x4b3   :  { %1683 = vmatpush.bf16.msra.mxu2 %v2464_v34  ;;  %1696 = vmatpush.bf16.msra.mxu3 %v2476_v38  ;;  %v3778_v34 = vld [vmem:[#allocation11_spill] sm:$0xff]  ;;  %v3779_v38 = vld [vmem:[#allocation12_spill] sm:$0xff] }
 0x4b6   :  { %1658 = vmatpush.bf16.msra.mxu0 %v2494_v44  ;;  %1671 = vmatpush.bf16.msra.mxu1 %v2498_v45  ;;  %v3780_v44 = vld [vmem:[#allocation13_spill] sm:$0xff]  ;;  %v3781_v45 = vld [vmem:[#allocation14_spill] sm:$0xff] }
 0x4b7   :  { %1684 = vmatpush.bf16.msra.mxu2 %v2500_v46  ;;  %1697 = vmatpush.bf16.msra.mxu3 %v2512_v50  ;;  %v3782_v46 = vld [vmem:[#allocation15_spill] sm:$0xff]  ;;  %v3783_v50 = vld [vmem:[#allocation16_spill] sm:$0xff] }
 0x4b8   :  { %1539 = vmatmul.bf16.vlgmr.msrb.gmra.mxu0 %v2126_v3  ;;  %1552 = vmatmul.bf16.vlgmr.msrb.gmra.mxu1 %v2126_v3 }
 0x4b9   :  { %1565 = vmatmul.bf16.vlgmr.msrb.gmra.mxu2 %v2126_v3  ;;  %1578 = vmatmul.bf16.vlgmr.msrb.gmra.mxu3 %v2126_v3  ;;  %v3798_v3 = vld [vmem:[#allocation31_spill] sm:$0xff] }
 0x4ba   :  { %1659 = vmatpush.bf16.msra.mxu0 %v2530_v56  ;;  %1672 = vmatpush.bf16.msra.mxu1 %v2534_v57  ;;  %v3784_v56 = vld [vmem:[#allocation17_spill] sm:$0xff]  ;;  %v3785_v57 = vld [vmem:[#allocation18_spill] sm:$0xff] }
 0x4bb   :  { %1685 = vmatpush.bf16.msra.mxu2 %v2536_v58  ;;  %1698 = vmatpush.bf16.msra.mxu3 %v2548_v62  ;;  %v3786_v58 = vld [vmem:[#allocation19_spill] sm:$0xff]  ;;  %v3787_v62 = vld [vmem:[#allocation20_spill] sm:$0xff] }
 0x4be   :  { %1660 = vmatpush.bf16.msra.mxu0 %v2566_v5  ;;  %1673 = vmatpush.bf16.msra.mxu1 %v2570_v6  ;;  %v3788_v5 = vld [vmem:[#allocation21_spill] sm:$0xff]  ;;  %v3789_v6 = vld [vmem:[#allocation22_spill] sm:$0xff] }
 0x4bf   :  { %1686 = vmatpush.bf16.msra.mxu2 %v2572_v9  ;;  %1699 = vmatpush.bf16.msra.mxu3 %v2584_v14  ;;  %v3790_v9 = vld [vmem:[#allocation23_spill] sm:$0xff]  ;;  %v3791_v14 = vld [vmem:[#allocation24_spill] sm:$0xff] }
 0x4c2   :  { %1661 = vmatpush.bf16.msra.mxu0 %v2602_v23  ;;  %1674 = vmatpush.bf16.msra.mxu1 %v2612_v27  ;;  %v3792_v23 = vld [vmem:[#allocation25_spill] sm:$0xff]  ;;  %v3793_v27 = vld [vmem:[#allocation26_spill] sm:$0xff] }
 0x4c3   :  { %1687 = vmatpush.bf16.msra.mxu2 %v2614_v28  ;;  %1700 = vmatpush.bf16.msra.mxu3 %v2626_v35  ;;  %v3794_v28 = vld [vmem:[#allocation27_spill] sm:$0xff] }
 0x4c6   :  { %1662 = vmatpush.bf16.msra.mxu0 %v2647_v43  ;;  %1675 = vmatpush.bf16.msra.mxu1 %v2660_v51 }
 0x4c7   :  { %1688 = vmatpush.bf16.msra.mxu2 %v2662_v52  ;;  %1701 = vmatpush.bf16.msra.mxu3 %v2671_v55 }
 0x4ca   :  { %1707 = vmatpush.bf16.msrb.mxu0 %v2673_v59  ;;  %1720 = vmatpush.bf16.msrb.mxu1 %v2675_v60 }
 0x4cb   :  { %1733 = vmatpush.bf16.msrb.mxu2 %v2677_v61  ;;  %1746 = vmatpush.bf16.msrb.mxu3 %v2689_v2 }
 0x4ce   :  { %1708 = vmatpush.bf16.msrb.mxu0 %v2710_v18  ;;  %1721 = vmatpush.bf16.msrb.mxu1 %v2714_v19 }
 0x4cf   :  { %1734 = vmatpush.bf16.msrb.mxu2 %v3769_v7  ;;  %1747 = vmatpush.bf16.msrb.mxu3 %v3770_v8 }
 0x4d2   :  { %1709 = vmatpush.bf16.msrb.mxu0 %v3771_v12  ;;  %1722 = vmatpush.bf16.msrb.mxu1 %v3772_v16 }
 0x4d3   :  { %1735 = vmatpush.bf16.msrb.mxu2 %v3773_v17  ;;  %1748 = vmatpush.bf16.msrb.mxu3 %v3774_v21 }
 0x4d6   :  { %1710 = vmatpush.bf16.msrb.mxu0 %v3775_v25  ;;  %1723 = vmatpush.bf16.msrb.mxu1 %v3776_v29 }
 0x4d7   :  { %1736 = vmatpush.bf16.msrb.mxu2 %v3777_v33  ;;  %1749 = vmatpush.bf16.msrb.mxu3 %v3778_v34 }
 0x4da   :  { %1711 = vmatpush.bf16.msrb.mxu0 %v3779_v38  ;;  %1724 = vmatpush.bf16.msrb.mxu1 %v3780_v44 }
 0x4db   :  { %1737 = vmatpush.bf16.msrb.mxu2 %v3781_v45  ;;  %1750 = vmatpush.bf16.msrb.mxu3 %v3782_v46 }
 0x4de   :  { %1712 = vmatpush.bf16.msrb.mxu0 %v3783_v50  ;;  %1725 = vmatpush.bf16.msrb.mxu1 %v3784_v56 }
 0x4df   :  { %1738 = vmatpush.bf16.msrb.mxu2 %v3785_v57  ;;  %1751 = vmatpush.bf16.msrb.mxu3 %v3786_v58 }
 0x4e2   :  { %1713 = vmatpush.bf16.msrb.mxu0 %v3787_v62  ;;  %1726 = vmatpush.bf16.msrb.mxu1 %v3788_v5 }
 0x4e3   :  { %1739 = vmatpush.bf16.msrb.mxu2 %v3789_v6  ;;  %1752 = vmatpush.bf16.msrb.mxu3 %v3790_v9 }
 0x4e6   :  { %1714 = vmatpush.bf16.msrb.mxu0 %v3791_v14  ;;  %1727 = vmatpush.bf16.msrb.mxu1 %v3792_v23 }
 0x4e7   :  { %1740 = vmatpush.bf16.msrb.mxu2 %v3793_v27  ;;  %1753 = vmatpush.bf16.msrb.mxu3 %v3794_v28 }
 0x525   :  { %v1488_v35 = vpop.f32.mrf.mxu0  ;;  %v1501_v43 = vpop.f32.mrf.mxu1 }
 0x52c   :  { %v1514_v51 = vpop.f32.mrf.mxu2  ;;  %v1527_v52 = vpop.f32.mrf.mxu3 }
 0x52d   :  { %v1490_v55 = vpop.f32.mrf.mxu0  ;;  %v1503_v59 = vpop.f32.mrf.mxu1 }
 0x534   :  { %v1516_v60 = vpop.f32.mrf.mxu2  ;;  %v1529_v61 = vpop.f32.mrf.mxu3 }
 0x535   :  { %v1540_v2 = vpop.f32.mrf.mxu0  ;;  %v1553_v18 = vpop.f32.mrf.mxu1 }
 0x536   :  { %v1541_v19 = vadd.f32 %v1540_v2, %v1488_v35  ;;  %v1554_v63 = vadd.f32 %v1553_v18, %v1501_v43 }
 0x538   :  { %v1583_v40 = vadd.f32 %v1541_v19, %v3795_v30  ;;  %v1584_v54 = vadd.f32 %v1554_v63, %v3796_v1  ;;  %v2131_v19 = vld [vmem:[%s3516_s0 + $0x1c] sm:$0xf] }
 0x53a   :  { %v2127_v48 = vmul.f32 -1.442695, %v1583_v40  ;;  %v2128_v32 = vmul.f32 -1.442695, %v1584_v54 }
 0x53c   :  { %2297 = vpow2.f32 %v2127_v48  ;;  %v1566_v42 = vpop.f32.mrf.mxu2  ;;  %v1579_v20 = vpop.f32.mrf.mxu3 }
 0x53d   :  { %2299 = vpow2.f32 %v2128_v32  ;;  %v1580_v37 = vadd.f32 %v1579_v20, %v1527_v52  ;;  %v1542_v22 = vpop.f32.mrf.mxu0  ;;  %v1555_v10 = vpop.f32.mrf.mxu1  ;;  %v1567_v36 = vadd.f32 %v1566_v42, %v1514_v51 }
 0x53f   :  { %v1586_v31 = vadd.f32 %v1580_v37, %v3797_v4  ;;  %v1585_v7 = vadd.f32 %v1567_v36, %v3798_v3 }
 0x541   :  { %v2129_v15 = vmul.f32 -1.442695, %v1586_v31 }
 0x542   :  { %v2298_v13 = vpop.eup %2297 }
 0x543   :  { %v2300_v39 = vpop.eup %2299  ;;  %v1590_v24 = vadd.f32 1.0, %v2298_v13  ;;  %2301 = vpow2.f32 %v2129_v15 }
 0x544   :  { %v1609_v11 = vadd.f32 1.0, %v2300_v39  ;;  %v1581_v53 = vpop.f32.mrf.mxu3  ;;  %v1568_v49 = vpop.f32.mrf.mxu2 }
 0x545   :  { %2303 = vrcp.f32 %v1590_v24  ;;  %v1602_v25 = vand.u32 2147483648, %v1590_v24  ;;  %v1600_v34 = vand.u32 2147483647, %v1590_v24  ;;  %vm1596_vm10 = vweird.f32 %v1590_v24 }
 0x546   :  { %2305 = vrcp.f32 %v1609_v11  ;;  %v1621_v29 = vand.u32 2147483648, %v1609_v11  ;;  %v1619_v44 = vand.u32 2147483647, %v1609_v11  ;;  %vm1615_vm11 = vweird.f32 %v1609_v11 }
 0x547   :  { %v1603_v50 = vor.u32 1.1754944e-38, %v1602_v25  ;;  %vm1601_vm14 = vcmp.eq.f32.partialorder %v1600_v34, 8.507059e+37 }
 0x548   :  { %v1622_v58 = vor.u32 1.1754944e-38, %v1621_v29  ;;  %vm1620_vm15 = vcmp.eq.f32.partialorder %v1619_v44, 8.507059e+37 }
 0x549   :  { %v2302_v26 = vpop.eup %2301 }
 0x54a   :  { %v1629_v0 = vadd.f32 1.0, %v2302_v26 }
 0x54b   :  { %v2304_v47 = vpop.eup %2303 }
 0x54c   :  { %v2306_v8 = vpop.eup %2305  ;;  %v1592_v12 = vmul.f32 %v2304_v47, %v1590_v24  ;;  %2307 = vrcp.f32 %v1629_v0  ;;  %vm1597_vm8 = vweird.f32 %v2304_v47  ;;  %v1641_v52 = vand.u32 2147483648, %v1629_v0 }
 0x54d   :  { %v1611_v16 = vmul.f32 %v2306_v8, %v1609_v11  ;;  %2309 = vtanh.f32 %v1585_v7  ;;  %vm1616_vm9 = vweird.f32 %v2306_v8  ;;  %vm1598_vm12 = vmor %vm1596_vm10, %vm1597_vm8  ;;  %vm1635_vm1 = vweird.f32 %v1629_v0 }
 0x54e   :  { %v1593_v17 = vsub.f32 1.0, %v1592_v12  ;;  %vm1617_vm13 = vmor %vm1615_vm11, %vm1616_vm9  ;;  %v1639_v55 = vand.u32 2147483647, %v1629_v0  ;;  %v1642_v60 = vor.u32 1.1754944e-38, %v1641_v52 }
 0x54f   :  { %v1612_v21 = vsub.f32 1.0, %v1611_v16 }
 0x550   :  { %v1594_v33 = vmul.f32 %v2304_v47, %v1593_v17  ;;  %vm1640_vm3 = vcmp.eq.f32.partialorder %v1639_v55, 8.507059e+37 }
 0x551   :  { %v1613_v38 = vmul.f32 %v2306_v8, %v1612_v21 }
 0x552   :  { %v2308_v45 = vpop.eup %2307  ;;  %v1595_v46 = vadd.f32 %v2304_v47, %v1594_v33 }
 0x553   :  { %v1614_v56 = vadd.f32 %v2306_v8, %v1613_v38  ;;  %v1631_v57 = vmul.f32 %v2308_v45, %v1629_v0  ;;  %v2310_v5 = vpop.eup %2309  ;;  %vm1636_vm0 = vweird.f32 %v2308_v45 }
 0x554   :  { %v1599_v62 = vsel %vm1598_vm12, %v2304_v47, %v1595_v46  ;;  %vm1637_vm2 = vmor %vm1635_vm1, %vm1636_vm0 }
 0x555   :  { %v1604_v6 = vsel %vm1601_vm14, %v1603_v50, %v1599_v62  ;;  %v1618_v9 = vsel %vm1617_vm13, %v2306_v8, %v1614_v56  ;;  %v1632_v14 = vsub.f32 1.0, %v1631_v57 }
 0x556   :  { %v1623_v23 = vsel %vm1620_vm15, %v1622_v58, %v1618_v9  ;;  %v1646_v27 = vmul.f32 %v2310_v5, %v1604_v6 }
 0x557   :  { %v1645_v28 = vmul.f32 %v1623_v23, %v3413_v41  ;;  %v1633_v35 = vmul.f32 %v2308_v45, %v1632_v14 }
 0x559   :  { %v3491_v43 = vadd.f32 %v1646_v27, %v1645_v28  ;;  %v1634_v51 = vadd.f32 %v2308_v45, %v1633_v35 }
 0x55b   :  { %2311 = vtanh.f32 %v3491_v43  ;;  %v1638_v59 = vsel %vm1637_vm2, %v2308_v45, %v1634_v51 }
 0x55c   :  { %v1643_v2 = vsel %vm1640_vm3, %v1642_v60, %v1638_v59 }
 0x561   :  { %v2312_v61 = vpop.eup %2311 }
 0x562   :  { %v1649_v18 = vmul.f32 %v2312_v61, %v1643_v2 }
 0x564   :  { %2130 = vst [vmem:[%s3518_s4 + $0x30] sm:$0xff] %v1649_v18  ;;  %v1654_v41 = vpack.c.bf16 %v1649_v18, %v1649_v18 }
 0x566   :  { %1663 = vmatmul.bf16.vlgmr.msra.gmra.mxu0 %v1654_v41  ;;  %1676 = vmatmul.bf16.vlgmr.msra.gmra.mxu1 %v1654_v41 }
 0x567   :  { %1689 = vmatmul.bf16.vlgmr.msra.gmra.mxu2 %v1654_v41  ;;  %1702 = vmatmul.bf16.vlgmr.msra.gmra.mxu3 %v1654_v41 }
 0x576   :  { %1715 = vmatmul.bf16.vlgmr.msrb.gmra.mxu0 %v2131_v19  ;;  %1728 = vmatmul.bf16.vlgmr.msrb.gmra.mxu1 %v2131_v19 }
 0x577   :  { %1741 = vmatmul.bf16.vlgmr.msrb.gmra.mxu2 %v2131_v19  ;;  %1754 = vmatmul.bf16.vlgmr.msrb.gmra.mxu3 %v2131_v19 }
 0x5e3   :  { %v1664_v63 = vpop.f32.mrf.mxu0  ;;  %v1677_v40 = vpop.f32.mrf.mxu1 }
 0x5ea   :  { %v1690_v54 = vpop.f32.mrf.mxu2  ;;  %v1703_v48 = vpop.f32.mrf.mxu3 }
 0x5eb   :  { %v1666_v32 = vpop.f32.mrf.mxu0  ;;  %v1679_v42 = vpop.f32.mrf.mxu1 }
 0x5f2   :  { %v1692_v20 = vpop.f32.mrf.mxu2  ;;  %v1705_v37 = vpop.f32.mrf.mxu3 }
 0x5f3   :  { %v1716_v22 = vpop.f32.mrf.mxu0  ;;  %v1729_v10 = vpop.f32.mrf.mxu1 }
 0x5f4   :  { %v1717_v31 = vadd.f32 %v1716_v22, %v1664_v63  ;;  %v1730_v15 = vadd.f32 %v1729_v10, %v1677_v40 }
 0x5f6   :  { %v1759_v13 = vadd.f32 %v1717_v31, %v3795_v30  ;;  %v1760_v39 = vadd.f32 %v1730_v15, %v3796_v1 }
 0x5f8   :  { %v2132_v24 = vmul.f32 -1.442695, %v1759_v13  ;;  %v2133_v11 = vmul.f32 -1.442695, %v1760_v39 }
 0x5fa   :  { %2313 = vpow2.f32 %v2132_v24  ;;  %v1742_v53 = vpop.f32.mrf.mxu2  ;;  %v1755_v49 = vpop.f32.mrf.mxu3 }
 0x5fb   :  { %2315 = vpow2.f32 %v2133_v11  ;;  %v1756_v36 = vadd.f32 %v1755_v49, %v1703_v48  ;;  %v1718_v26 = vpop.f32.mrf.mxu0  ;;  %v1731_v0 = vpop.f32.mrf.mxu1  ;;  %v1743_v1 = vadd.f32 %v1742_v53, %v1690_v54 }
 0x5fd   :  { %v1762_v47 = vadd.f32 %v1756_v36, %v3797_v4  ;;  %v1761_v34 = vadd.f32 %v1743_v1, %v3798_v3 }
 0x5ff   :  { %v2134_v7 = vmul.f32 -1.442695, %v1762_v47 }
 0x600   :  { %v2314_v8 = vpop.eup %2313 }
 0x601   :  { %v2316_v12 = vpop.eup %2315  ;;  %v1766_v16 = vadd.f32 1.0, %v2314_v8  ;;  %2317 = vpow2.f32 %v2134_v7 }
 0x602   :  { %v1785_v17 = vadd.f32 1.0, %v2316_v12  ;;  %v1757_v30 = vpop.f32.mrf.mxu3  ;;  %v1744_v21 = vpop.f32.mrf.mxu2 }
 0x603   :  { %2319 = vrcp.f32 %v1766_v16  ;;  %v1778_v50 = vand.u32 2147483648, %v1766_v16  ;;  %v1776_v58 = vand.u32 2147483647, %v1766_v16  ;;  %vm1772_vm6 = vweird.f32 %v1766_v16 }
 0x604   :  { %2321 = vrcp.f32 %v1785_v17  ;;  %v1797_v56 = vand.u32 2147483648, %v1785_v17  ;;  %v1795_v5 = vand.u32 2147483647, %v1785_v17  ;;  %vm1791_vm7 = vweird.f32 %v1785_v17 }
 0x605   :  { %v1779_v3 = vor.u32 1.1754944e-38, %v1778_v50  ;;  %vm1777_vm10 = vcmp.eq.f32.partialorder %v1776_v58, 8.507059e+37 }
 0x606   :  { %v1798_v27 = vor.u32 1.1754944e-38, %v1797_v56  ;;  %vm1796_vm11 = vcmp.eq.f32.partialorder %v1795_v5, 8.507059e+37 }
 0x607   :  { %v2318_v25 = vpop.eup %2317 }
 0x608   :  { %v1805_v29 = vadd.f32 1.0, %v2318_v25 }
 0x609   :  { %v2320_v33 = vpop.eup %2319 }
 0x60a   :  { %v2322_v38 = vpop.eup %2321  ;;  %v1768_v44 = vmul.f32 %v2320_v33, %v1766_v16  ;;  %2323 = vrcp.f32 %v1805_v29  ;;  %vm1773_vm4 = vweird.f32 %v2320_v33  ;;  %v1817_v19 = vand.u32 2147483648, %v1805_v29 }
 0x60b   :  { %v1787_v4 = vmul.f32 %v2322_v38, %v1785_v17  ;;  %2325 = vtanh.f32 %v1761_v34  ;;  %vm1792_vm5 = vweird.f32 %v2322_v38  ;;  %vm1774_vm8 = vmor %vm1772_vm6, %vm1773_vm4  ;;  %vm1811_vm13 = vweird.f32 %v1805_v29 }
 0x60c   :  { %v1769_v45 = vsub.f32 1.0, %v1768_v44  ;;  %vm1793_vm9 = vmor %vm1791_vm7, %vm1792_vm5  ;;  %v1815_v63 = vand.u32 2147483647, %v1805_v29  ;;  %v1818_v54 = vor.u32 1.1754944e-38, %v1817_v19 }
 0x60d   :  { %v1788_v46 = vsub.f32 1.0, %v1787_v4 }
 0x60e   :  { %v1770_v57 = vmul.f32 %v2320_v33, %v1769_v45  ;;  %vm1816_vm15 = vcmp.eq.f32.partialorder %v1815_v63, 8.507059e+37 }
 0x60f   :  { %v1789_v62 = vmul.f32 %v2322_v38, %v1788_v46 }
 0x610   :  { %v2324_v6 = vpop.eup %2323  ;;  %v1771_v9 = vadd.f32 %v2320_v33, %v1770_v57 }
 0x611   :  { %v1790_v14 = vadd.f32 %v2322_v38, %v1789_v62  ;;  %v1807_v23 = vmul.f32 %v2324_v6, %v1805_v29  ;;  %v2326_v35 = vpop.eup %2325  ;;  %vm1812_vm12 = vweird.f32 %v2324_v6 }
 0x612   :  { %v1775_v28 = vsel %vm1774_vm8, %v2320_v33, %v1771_v9  ;;  %vm1813_vm14 = vmor %vm1811_vm13, %vm1812_vm12 }
 0x613   :  { %v1780_v51 = vsel %vm1777_vm10, %v1779_v3, %v1775_v28  ;;  %v1794_v52 = vsel %vm1793_vm9, %v2322_v38, %v1790_v14  ;;  %v1808_v55 = vsub.f32 1.0, %v1807_v23 }
 0x614   :  { %v1799_v59 = vsel %vm1796_vm11, %v1798_v27, %v1794_v52  ;;  %v1822_v60 = vmul.f32 %v2326_v35, %v1780_v51 }
 0x615   :  { %v1821_v61 = vmul.f32 %v1799_v59, %v3491_v43  ;;  %v1809_v2 = vmul.f32 %v2324_v6, %v1808_v55 }
 0x617   :  { %v1823_v18 = vadd.f32 %v1822_v60, %v1821_v61  ;;  %v1810_v41 = vadd.f32 %v2324_v6, %v1809_v2 }
 0x619   :  { %2327 = vtanh.f32 %v1823_v18  ;;  %1829 = vst [vmem:[%s3519_s6] sm:$0xff] %v1823_v18  ;;  %v1814_v40 = vsel %vm1813_vm14, %v2324_v6, %v1810_v41 }
 0x61a   :  { %v1819_v32 = vsel %vm1816_vm15, %v1818_v54, %v1814_v40 }
 0x61f   :  { %v2328_v48 = vpop.eup %2327 }
 0x620   :  { %v1825_v42 = vmul.f32 %v2328_v48, %v1819_v32 }
 0x622   :  { %2135 = vst [vmem:[%s3518_s4 + $0x38] sm:$0xff] %v1825_v42 }
 0x623   :  { %1828 = vst [vmem:[%s3520_s5] sm:$0xff] %v1825_v42 }

</bundles_post_ra>
